<compile_context>
chip_gen: v7x
topology: tpu7x:2x2x1
jax: 0.10.0
libtpu: 0.0.40
codegen_flags: <defaults>
</compile_context>

<pallas_src>
import functools
import numpy as np
import jax
import jax.numpy as jnp
from jax import lax
from jax.experimental import pallas as pl
from jax.experimental.pallas import tpu as pltpu

# ----------------------------- model configuration -----------------------------
IN_C = 1          # inChannels
C1 = 16           # cnnChannels1
C2 = 16           # cnnChannels2
H = 16            # inH
W = 16            # inW
K = 5             # kernel_size = [3,5,7,9][1]
PAD = 2           # round((K-1)/2)
OUTPUTS = 20
BN_EPS = 1e-5

HP1, WP1 = H // 2, W // 2        # 8, 8   spatial after pool1
HP2, WP2 = H // 4, W // 4        # 4, 4   spatial after pool2
S = H * W                        # 256    flat input spatial (IN_C == 1)
SP1 = HP1 * WP1                  # 64
SP2 = HP2 * WP2                  # 16
N1Q = C1 * SP1                   # 1024   conv1 lanes per pool quadrant
N1 = 4 * N1Q                     # 4096   conv1 output lanes (quadrant-slab layout)
N2IN = C1 * SP1                  # 1024   compact pooled-1 lanes (conv2 matmul K dim)
N2Q = C2 * SP2                   # 256    conv2 lanes per pool quadrant
N2 = 4 * N2Q                     # 1024   conv2 output lanes
FLAT = C2 * SP2                  # 256    cnnFlattenedSize (== compact pooled-2 lanes)
DEC_OUT = IN_C * H * W           # 256    decoder Linear output


# ----------------------------- per-generation tuning -----------------------------
def _device_tuning():
    """Returns (max batch rows per grid step, vmem_limit_bytes, pool maxes in bf16?)."""
    try:
        kind = jax.devices()[0].device_kind.lower()
    except Exception:
        kind = ""
    if "v7" in kind:
        # 64 MiB VMEM per TensorCore, 2 TCs/chip -> smaller tile, modest vmem limit.
        return 256, 48 * 1024 * 1024, True
    if "v6" in kind:
        return 512, 64 * 1024 * 1024, True
    if any(t in kind for t in ("v2", "v3", "v4", "v5")):
        # no native bf16 VALU on these -> keep pooling maxes in f32.
        return 512, 64 * 1024 * 1024, False
    return 256, 48 * 1024 * 1024, True


_BLK_MAX, _VMEM_BYTES, _POOL_BF16 = _device_tuning()


# ----------------------------- the fused Pallas kernel -----------------------------
def _cnn_ae1_kernel(x_ref, w1_ref, b1_ref, w2_ref, b2_ref,
                    w3_ref, b3_ref, w4_ref, b4_ref, out_ref, *, pool_bf16):
    # x_ref: (BLK, 256) bf16 -- one flattened 16x16 image per row.
    x = x_ref[...]

    # BN2d(1) + Conv2d(1->16,k5,p2) + ReLU (BN & zero padding folded into W1/b1).
    # Output columns are laid out in 2x2 pool-quadrant slabs.
    a1 = jnp.dot(x, w1_ref[...], preferred_element_type=jnp.float32) + b1_ref[...]
    a1 = jnp.maximum(a1, 0.0)                                      # (BLK, 4096)
    if pool_bf16:
        a1 = a1.astype(jnp.bfloat16)

    # MaxPool2d(2,2): plain VPU max of four contiguous quadrant slabs -> compact (BLK, 1024),
    # lane = ci*64 + hp*8 + wp.  No XLU rolls, no stale lanes.
    m = jnp.maximum(jnp.maximum(a1[:, 0 * N1Q:1 * N1Q], a1[:, 1 * N1Q:2 * N1Q]),
                    jnp.maximum(a1[:, 2 * N1Q:3 * N1Q], a1[:, 3 * N1Q:4 * N1Q]))
    m = m.astype(jnp.bfloat16)

    # BN2d(16) + Conv2d(16->16,k5,p2) + ReLU folded into a dense (1024,1024) matrix.
    a2 = jnp.dot(m, w2_ref[...], preferred_element_type=jnp.float32) + b2_ref[...]
    a2 = jnp.maximum(a2, 0.0)                                      # (BLK, 1024)
    if pool_bf16:
        a2 = a2.astype(jnp.bfloat16)

    # MaxPool2d(2,2) -> compact (BLK, 256); lane = co*16 + h4*4 + w4 == PyTorch flatten order.
    p = jnp.maximum(jnp.maximum(a2[:, 0 * N2Q:1 * N2Q], a2[:, 1 * N2Q:2 * N2Q]),
                    jnp.maximum(a2[:, 2 * N2Q:3 * N2Q], a2[:, 3 * N2Q:4 * N2Q]))
    p = p.astype(jnp.bfloat16)

    # flatten + BN1d(256) + Linear(256->20) (folded into W3/b3) + exact sigmoid.
    logits = jnp.dot(p, w3_ref[...], preferred_element_type=jnp.float32) + b3_ref[...]
    z = 1.0 / (1.0 + jnp.exp(-logits))                             # (BLK, 20)

    # decoder: BN1d(20) + Linear(20->256) (folded into W4/b4) + ReLU -> lane-dense output.
    dec = jnp.dot(z.astype(jnp.bfloat16), w4_ref[...],
                  preferred_element_type=jnp.float32) + b4_ref[...]
    out_ref[...] = jnp.maximum(dec, 0.0)


def _const_spec(shape):
    """BlockSpec for a grid-constant weight/bias: single-buffered (no second pipeline copy)."""
    index_map = lambda i: (0,) * len(shape)
    try:
        return pl.BlockSpec(shape, index_map, pipeline_mode=pl.Buffered(1))
    except (AttributeError, TypeError):   # older JAX without pipeline_mode support
        return pl.BlockSpec(shape, index_map)


def cnn_ae_1_pallas(x2, pp, blk, vmem_bytes, pool_bf16):
    b = x2.shape[0]
    nb = pl.cdiv(b, blk)      # ragged last block handled by Pallas (no padded input copy)
    kernel = functools.partial(_cnn_ae1_kernel, pool_bf16=pool_bf16)
    return pl.pallas_call(
        kernel,
        out_shape=jax.ShapeDtypeStruct((b, DEC_OUT), jnp.float32),
        grid=(nb,),
        in_specs=[
            pl.BlockSpec((blk, S), lambda i: (i, 0)),
            _const_spec((S, N1)), _const_spec((1, N1)),
            _const_spec((N2IN, N2)), _const_spec((1, N2)),
            _const_spec((FLAT, OUTPUTS)), _const_spec((1, OUTPUTS)),
            _const_spec((OUTPUTS, DEC_OUT)), _const_spec((1, DEC_OUT)),
        ],
        out_specs=pl.BlockSpec((blk, DEC_OUT), lambda i: (i, 0)),
        compiler_params=pltpu.CompilerParams(
            dimension_semantics=("parallel",),
            vmem_limit_bytes=vmem_bytes),
    )(x2, pp['W1'], pp['b1'], pp['W2'], pp['b2'],
      pp['W3'], pp['b3'], pp['W4'], pp['b4'])


@jax.jit
def cnn_ae_1_forward(x_nchw, pp):
    """x_nchw: (B, IN_C, H, W) -> (B, IN_C, H, W), eval-mode CNN_AE_1 forward."""
    B = x_nchw.shape[0]
    # bf16 input halves HBM->VMEM DMA; row index r = h*16 + w (IN_C == 1), a free reshape.
    x2 = x_nchw.reshape(B, IN_C * S).astype(jnp.bfloat16)
    blk = min(B, _BLK_MAX)
    out = cnn_ae_1_pallas(x2, pp, blk, _VMEM_BYTES, _POOL_BF16)
    return out.reshape(B, IN_C, H, W)


# ----------------------------- parameters & host-side folding -----------------------------
def fold_bn(gamma, beta, mean, var):
    gamma = np.asarray(gamma, np.float32)
    beta = np.asarray(beta, np.float32)
    mean = np.asarray(mean, np.float32)
    var = np.asarray(var, np.float32)
    scale = gamma / np.sqrt(var + BN_EPS)
    shift = beta - mean * scale
    return scale, shift


def init_params(key):
    ks = jax.random.split(key, 24)
    n = lambda k, shape, s: s * jax.random.normal(k, shape, jnp.float32)
    u = lambda k, shape, lo, hi: jax.random.uniform(k, shape, jnp.float32, lo, hi)
    return dict(
        bn0_gamma=u(ks[0], (IN_C,), 0.5, 1.5), bn0_beta=n(ks[1], (IN_C,), 0.1),
        bn0_mean=n(ks[2], (IN_C,), 0.1), bn0_var=u(ks[3], (IN_C,), 0.5, 1.5),
        w1=n(ks[4], (C1, IN_C, K, K), 0.2), b1=n(ks[5], (C1,), 0.05),
        bn1_gamma=u(ks[6], (C1,), 0.5, 1.5), bn1_beta=n(ks[7], (C1,), 0.1),
        bn1_mean=n(ks[8], (C1,), 0.1), bn1_var=u(ks[9], (C1,), 0.5, 1.5),
        w2=n(ks[10], (C2, C1, K, K), 0.08), b2=n(ks[11], (C2,), 0.05),
        bnf_gamma=u(ks[12], (FLAT,), 0.5, 1.5), bnf_beta=n(ks[13], (FLAT,), 0.1),
        bnf_mean=n(ks[14], (FLAT,), 0.1), bnf_var=u(ks[15], (FLAT,), 0.5, 1.5),
        fc1_w=n(ks[16], (OUTPUTS, FLAT), 1.0 / np.sqrt(FLAT)), fc1_b=n(ks[17], (OUTPUTS,), 0.05),
        dbn_gamma=u(ks[18], (OUTPUTS,), 0.5, 1.5), dbn_beta=n(ks[19], (OUTPUTS,), 0.1),
        dbn_mean=n(ks[20], (OUTPUTS,), 0.1), dbn_var=u(ks[21], (OUTPUTS,), 0.5, 1.5),
        dnn1_w=n(ks[22], (DEC_OUT, OUTPUTS), 1.0 / np.sqrt(OUTPUTS)), dnn1_b=n(ks[23], (DEC_OUT,), 0.05),
    )


def prepare_params(p):
    """Fold BN(eval), conv zero-padding, conv taps, pool-quadrant lane layout and the PyTorch
    flatten order into four dense matrices + biases (weights stored bf16, biases f32)."""
    w1 = np.asarray(p['w1'], np.float32)          # (C1, IN_C, K, K)
    b1 = np.asarray(p['b1'], np.float32)
    w2 = np.asarray(p['w2'], np.float32)          # (C2, C1, K, K)
    b2 = np.asarray(p['b2'], np.float32)
    fc1_w = np.asarray(p['fc1_w'], np.float32)    # (OUTPUTS, FLAT)
    fc1_b = np.asarray(p['fc1_b'], np.float32)
    dnn1_w = np.asarray(p['dnn1_w'], np.float32)  # (DEC_OUT, OUTPUTS)
    dnn1_b = np.asarray(p['dnn1_b'], np.float32)

    s0, h0 = fold_bn(p['bn0_gamma'], p['bn0_beta'], p['bn0_mean'], p['bn0_var'])
    s1, h1 = fold_bn(p['bn1_gamma'], p['bn1_beta'], p['bn1_mean'], p['bn1_var'])
    sf, hf = fold_bn(p['bnf_gamma'], p['bnf_beta'], p['bnf_mean'], p['bnf_var'])
    sd, hd = fold_bn(p['dbn_gamma'], p['dbn_beta'], p['dbn_mean'], p['dbn_var'])

    # ---- stage 1: BN2d(1) + conv1 as (256 -> 4096); column = q*1024 + co*64 + hp*8 + wp,
    #      with q = (h%2)*2 + (w%2) the position inside the 2x2 max-pool window. ----
    W1_raw = np.zeros((S, N1), np.float32)
    co_cols = np.arange(C1) * SP1
    for oh in range(H):
        hp, qh = oh // 2, oh % 2
        for ow in range(W):
            wp, qw = ow // 2, ow % 2
            cols = (qh * 2 + qw) * N1Q + co_cols + hp * WP1 + wp          # (C1,)
            for kh in range(K):
                ih = oh + kh - PAD
                if ih < 0 or ih >= H:
                    continue
                for kw in range(K):
                    iw = ow + kw - PAD
                    if iw < 0 or iw >= W:
                        continue
                    W1_raw[ih * W + iw, cols] += w1[:, 0, kh, kw]
    W1m = float(s0[0]) * W1_raw
    b1v = float(h0[0]) * W1_raw.sum(axis=0) + np.tile(np.repeat(b1, SP1), 4)

    # ---- stage 2: BN2d(16) + conv2 as (1024 -> 1024); rows are the compact pooled-1 lanes
    #      ci*64 + hp*8 + wp, columns q*256 + co*16 + h4*4 + w4. ----
    W2_raw = np.zeros((N2IN, N2), np.float32)
    ci_rows = np.arange(C1) * SP1
    co2_cols = np.arange(C2) * SP2
    for oh in range(HP1):
        h4, qh = oh // 2, oh % 2
        for ow in range(WP1):
            w4, qw = ow // 2, ow % 2
            cols = (qh * 2 + qw) * N2Q + co2_cols + h4 * WP2 + w4         # (C2,)
            for kh in range(K):
                ih = oh + kh - PAD
                if ih < 0 or ih >= HP1:
                    continue
                for kw in range(K):
                    iw = ow + kw - PAD
                    if iw < 0 or iw >= WP1:
                        continue
                    rows = ci_rows + ih * WP1 + iw                        # (C1,)
                    W2_raw[np.ix_(rows, cols)] += w2[:, :, kh, kw].T      # (ci, co)
    s1big = np.repeat(s1, SP1)
    h1big = np.repeat(h1, SP1)
    W2m = W2_raw * s1big[:, None]
    b2v = h1big @ W2_raw + np.tile(np.repeat(b2, SP2), 4)

    # ---- stage 3: compact pooled-2 lane co*16 + h4*4 + w4 IS the PyTorch flatten index,
    #      so BN1d(256) + FC1 fold directly into a (256 -> 20) matrix. ----
    W3m = sf[:, None] * fc1_w.T
    b3v = fc1_w @ hf + fc1_b

    # ---- stage 4: decoder BN1d(20) + D_NN1 as a (20 -> 256) matrix. ----
    W4m = sd[:, None] * dnn1_w.T
    b4v = dnn1_w @ hd + dnn1_b

    return dict(
        W1=jnp.asarray(W1m, jnp.bfloat16), b1=jnp.asarray(b1v[None, :], jnp.float32),
        W2=jnp.asarray(W2m, jnp.bfloat16), b2=jnp.asarray(b2v[None, :], jnp.float32),
        W3=jnp.asarray(W3m, jnp.bfloat16), b3=jnp.asarray(b3v[None, :], jnp.float32),
        W4=jnp.asarray(W4m, jnp.bfloat16), b4=jnp.asarray(b4v[None, :], jnp.float32),
    )


# ----------------------------- pure-JAX reference -----------------------------
def reference_forward(x, p):
    s0, h0 = fold_bn(p['bn0_gamma'], p['bn0_beta'], p['bn0_mean'], p['bn0_var'])
    s1, h1 = fold_bn(p['bn1_gamma'], p['bn1_beta'], p['bn1_mean'], p['bn1_var'])
    sf, hf = fold_bn(p['bnf_gamma'], p['bnf_beta'], p['bnf_mean'], p['bnf_var'])
    sd, hd = fold_bn(p['dbn_gamma'], p['dbn_beta'], p['dbn_mean'], p['dbn_var'])
    dn = ('NCHW', 'OIHW', 'NCHW')
    y = x * s0[None, :, None, None] + h0[None, :, None, None]
    y = lax.conv_general_dilated(y, p['w1'], (1, 1), ((PAD, PAD), (PAD, PAD)), dimension_numbers=dn)
    y = jnp.maximum(y + p['b1'][None, :, None, None], 0.0)
    y = lax.reduce_window(y, -jnp.inf, lax.max, (1, 1, 2, 2), (1, 1, 2, 2), 'VALID')
    y = y * s1[None, :, None, None] + h1[None, :, None, None]
    y = lax.conv_general_dilated(y, p['w2'], (1, 1), ((PAD, PAD), (PAD, PAD)), dimension_numbers=dn)
    y = jnp.maximum(y + p['b2'][None, :, None, None], 0.0)
    y = lax.reduce_window(y, -jnp.inf, lax.max, (1, 1, 2, 2), (1, 1, 2, 2), 'VALID')
    f = y.reshape(x.shape[0], -1)
    f = f * sf[None, :] + hf[None, :]
    z = jax.nn.sigmoid(f @ p['fc1_w'].T + p['fc1_b'][None, :])
    d = z * sd[None, :] + hd[None, :]
    o = jnp.maximum(d @ p['dnn1_w'].T + p['dnn1_b'][None, :], 0.0)
    return o.reshape(x.shape[0], IN_C, H, W)


if __name__ == "__main__":
    key = jax.random.PRNGKey(0)
    raw = init_params(key)
    pp = prepare_params(raw)
    x = jax.random.normal(jax.random.fold_in(key, 123), (2, IN_C, H, W), jnp.float32)

    out = jax.block_until_ready(cnn_ae_1_forward(x, pp))
    assert out.shape == (2, IN_C, H, W) and out.dtype == jnp.float32

    ref = jax.block_until_ready(reference_forward(x, raw))
    if np.allclose(np.asarray(out), np.asarray(ref), atol=5e-2, rtol=5e-2):
        print("KERNEL_OK")
    else:
        print(f"MISMATCH max_abs_err={float(jnp.max(jnp.abs(out - ref)))}")
</pallas_src>

<mosaic_0001>
module attributes {stable_mosaic.version = 11 : i64} {
  func.func @_cnn_ae1_kernel(%arg0: i32, %arg1: memref<2x256xbf16, #tpu.memory_space<vmem>>, %arg2: memref<256x4096xbf16, #tpu.memory_space<vmem>>, %arg3: memref<1x4096xf32, #tpu.memory_space<vmem>>, %arg4: memref<1024x1024xbf16, #tpu.memory_space<vmem>>, %arg5: memref<1x1024xf32, #tpu.memory_space<vmem>>, %arg6: memref<256x20xbf16, #tpu.memory_space<vmem>>, %arg7: memref<1x20xf32, #tpu.memory_space<vmem>>, %arg8: memref<20x256xbf16, #tpu.memory_space<vmem>>, %arg9: memref<1x256xf32, #tpu.memory_space<vmem>>, %arg10: memref<2x256xf32, #tpu.memory_space<vmem>>) attributes {dimension_semantics = [#tpu.dimension_semantics<parallel>], iteration_bounds = array<i64: 1>, scalar_prefetch = 0 : i64, scratch_operands = 0 : i64, tpu.core_type = #tpu.core_type<tc>, window_params = [{transform_indices = @transform_0, window_bounds = array<i64: 2, 256>}, {pipeline_mode = #tpu.pipeline_mode<synchronous>, transform_indices = @transform_1, window_bounds = array<i64: 256, 4096>}, {pipeline_mode = #tpu.pipeline_mode<synchronous>, transform_indices = @transform_2, window_bounds = array<i64: 1, 4096>}, {pipeline_mode = #tpu.pipeline_mode<synchronous>, transform_indices = @transform_3, window_bounds = array<i64: 1024, 1024>}, {pipeline_mode = #tpu.pipeline_mode<synchronous>, transform_indices = @transform_4, window_bounds = array<i64: 1, 1024>}, {pipeline_mode = #tpu.pipeline_mode<synchronous>, transform_indices = @transform_5, window_bounds = array<i64: 256, 20>}, {pipeline_mode = #tpu.pipeline_mode<synchronous>, transform_indices = @transform_6, window_bounds = array<i64: 1, 20>}, {pipeline_mode = #tpu.pipeline_mode<synchronous>, transform_indices = @transform_7, window_bounds = array<i64: 20, 256>}, {pipeline_mode = #tpu.pipeline_mode<synchronous>, transform_indices = @transform_8, window_bounds = array<i64: 1, 256>}, {transform_indices = @transform_9, window_bounds = array<i64: 2, 256>}]} {
    %c0 = arith.constant 0 : index
    %c0_0 = arith.constant 0 : index
    %0 = vector.load %arg1[%c0, %c0_0] : memref<2x256xbf16, #tpu.memory_space<vmem>>, vector<2x256xbf16>
    %c0_1 = arith.constant 0 : index
    %c0_2 = arith.constant 0 : index
    %1 = vector.load %arg2[%c0_1, %c0_2] : memref<256x4096xbf16, #tpu.memory_space<vmem>>, vector<256x4096xbf16>
    %cst = arith.constant dense<0.000000e+00> : vector<2x4096xf32>
    %2 = tpu.matmul %0, %1, %cst {dimension_numbers = #tpu.dot_dimension_numbers<[1], [0], [0], [1], [0, 0, 1, 1], [], []>} : vector<2x256xbf16>, vector<256x4096xbf16>, vector<2x4096xf32> -> vector<2x4096xf32>
    %c0_3 = arith.constant 0 : index
    %c0_4 = arith.constant 0 : index
    %3 = vector.load %arg3[%c0_3, %c0_4] : memref<1x4096xf32, #tpu.memory_space<vmem>>, vector<1x4096xf32>
    %4 = vector.broadcast %3 : vector<1x4096xf32> to vector<2x4096xf32>
    %5 = arith.addf %2, %4 : vector<2x4096xf32>
    %cst_5 = arith.constant 0.000000e+00 : f32
    %6 = vector.broadcast %cst_5 : f32 to vector<2x4096xf32>
    %7 = arith.maximumf %5, %6 : vector<2x4096xf32>
    %8 = arith.truncf %7 : vector<2x4096xf32> to vector<2x4096xbf16>
    %9 = vector.extract_strided_slice %8 {offsets = [0, 0], sizes = [2, 1024], strides = [1, 1]} : vector<2x4096xbf16> to vector<2x1024xbf16>
    %10 = vector.extract_strided_slice %8 {offsets = [0, 1024], sizes = [2, 1024], strides = [1, 1]} : vector<2x4096xbf16> to vector<2x1024xbf16>
    %11 = arith.maximumf %9, %10 : vector<2x1024xbf16>
    %12 = vector.extract_strided_slice %8 {offsets = [0, 2048], sizes = [2, 1024], strides = [1, 1]} : vector<2x4096xbf16> to vector<2x1024xbf16>
    %13 = vector.extract_strided_slice %8 {offsets = [0, 3072], sizes = [2, 1024], strides = [1, 1]} : vector<2x4096xbf16> to vector<2x1024xbf16>
    %14 = arith.maximumf %12, %13 : vector<2x1024xbf16>
    %15 = arith.maximumf %11, %14 : vector<2x1024xbf16>
    %c0_6 = arith.constant 0 : index
    %c0_7 = arith.constant 0 : index
    %16 = vector.load %arg4[%c0_6, %c0_7] : memref<1024x1024xbf16, #tpu.memory_space<vmem>>, vector<1024x1024xbf16>
    %cst_8 = arith.constant dense<0.000000e+00> : vector<2x1024xf32>
    %17 = tpu.matmul %15, %16, %cst_8 {dimension_numbers = #tpu.dot_dimension_numbers<[1], [0], [0], [1], [0, 0, 1, 1], [], []>} : vector<2x1024xbf16>, vector<1024x1024xbf16>, vector<2x1024xf32> -> vector<2x1024xf32>
    %c0_9 = arith.constant 0 : index
    %c0_10 = arith.constant 0 : index
    %18 = vector.load %arg5[%c0_9, %c0_10] : memref<1x1024xf32, #tpu.memory_space<vmem>>, vector<1x1024xf32>
    %19 = vector.broadcast %18 : vector<1x1024xf32> to vector<2x1024xf32>
    %20 = arith.addf %17, %19 : vector<2x1024xf32>
    %cst_11 = arith.constant 0.000000e+00 : f32
    %21 = vector.broadcast %cst_11 : f32 to vector<2x1024xf32>
    %22 = arith.maximumf %20, %21 : vector<2x1024xf32>
    %23 = arith.truncf %22 : vector<2x1024xf32> to vector<2x1024xbf16>
    %24 = vector.extract_strided_slice %23 {offsets = [0, 0], sizes = [2, 256], strides = [1, 1]} : vector<2x1024xbf16> to vector<2x256xbf16>
    %25 = vector.extract_strided_slice %23 {offsets = [0, 256], sizes = [2, 256], strides = [1, 1]} : vector<2x1024xbf16> to vector<2x256xbf16>
    %26 = arith.maximumf %24, %25 : vector<2x256xbf16>
    %27 = vector.extract_strided_slice %23 {offsets = [0, 512], sizes = [2, 256], strides = [1, 1]} : vector<2x1024xbf16> to vector<2x256xbf16>
    %28 = vector.extract_strided_slice %23 {offsets = [0, 768], sizes = [2, 256], strides = [1, 1]} : vector<2x1024xbf16> to vector<2x256xbf16>
    %29 = arith.maximumf %27, %28 : vector<2x256xbf16>
    %30 = arith.maximumf %26, %29 : vector<2x256xbf16>
    %c0_12 = arith.constant 0 : index
    %c0_13 = arith.constant 0 : index
    %31 = vector.load %arg6[%c0_12, %c0_13] : memref<256x20xbf16, #tpu.memory_space<vmem>>, vector<256x20xbf16>
    %cst_14 = arith.constant dense<0.000000e+00> : vector<2x20xf32>
    %32 = tpu.matmul %30, %31, %cst_14 {dimension_numbers = #tpu.dot_dimension_numbers<[1], [0], [0], [1], [0, 0, 1, 1], [], []>} : vector<2x256xbf16>, vector<256x20xbf16>, vector<2x20xf32> -> vector<2x20xf32>
    %c0_15 = arith.constant 0 : index
    %c0_16 = arith.constant 0 : index
    %33 = vector.load %arg7[%c0_15, %c0_16] : memref<1x20xf32, #tpu.memory_space<vmem>>, vector<1x20xf32>
    %34 = vector.broadcast %33 : vector<1x20xf32> to vector<2x20xf32>
    %35 = arith.addf %32, %34 : vector<2x20xf32>
    %cst_17 = arith.constant 0.000000e+00 : f32
    %36 = vector.broadcast %cst_17 : f32 to vector<2x20xf32>
    %37 = arith.subf %36, %35 : vector<2x20xf32>
    %38 = math.exp %37 : vector<2x20xf32>
    %cst_18 = arith.constant 1.000000e+00 : f32
    %39 = vector.broadcast %cst_18 : f32 to vector<2x20xf32>
    %40 = arith.addf %39, %38 : vector<2x20xf32>
    %cst_19 = arith.constant 1.000000e+00 : f32
    %41 = vector.broadcast %cst_19 : f32 to vector<2x20xf32>
    %42 = arith.divf %41, %40 : vector<2x20xf32>
    %43 = arith.truncf %42 : vector<2x20xf32> to vector<2x20xbf16>
    %c0_20 = arith.constant 0 : index
    %c0_21 = arith.constant 0 : index
    %44 = vector.load %arg8[%c0_20, %c0_21] : memref<20x256xbf16, #tpu.memory_space<vmem>>, vector<20x256xbf16>
    %cst_22 = arith.constant dense<0.000000e+00> : vector<2x256xf32>
    %45 = tpu.matmul %43, %44, %cst_22 {dimension_numbers = #tpu.dot_dimension_numbers<[1], [0], [0], [1], [0, 0, 1, 1], [], []>} : vector<2x20xbf16>, vector<20x256xbf16>, vector<2x256xf32> -> vector<2x256xf32>
    %c0_23 = arith.constant 0 : index
    %c0_24 = arith.constant 0 : index
    %46 = vector.load %arg9[%c0_23, %c0_24] : memref<1x256xf32, #tpu.memory_space<vmem>>, vector<1x256xf32>
    %47 = vector.broadcast %46 : vector<1x256xf32> to vector<2x256xf32>
    %48 = arith.addf %45, %47 : vector<2x256xf32>
    %cst_25 = arith.constant 0.000000e+00 : f32
    %49 = vector.broadcast %cst_25 : f32 to vector<2x256xf32>
    %50 = arith.maximumf %48, %49 : vector<2x256xf32>
    %c0_26 = arith.constant 0 : index
    %c0_27 = arith.constant 0 : index
    %51 = vector.load %arg10[%c0_26, %c0_27] : memref<2x256xf32, #tpu.memory_space<vmem>>, vector<2x256xf32>
    tpu.vector_store %arg10[%c0_26, %c0_27], %50 {strides = array<i32>} : memref<2x256xf32, #tpu.memory_space<vmem>>, vector<2x256xf32>,
    return
  }
  func.func @transform_0(%arg0: i32) -> (i32, i32) {
    %c0_i32 = arith.constant 0 : i32
    %c0_i32_0 = arith.constant 0 : i32
    return %arg0, %c0_i32 : i32, i32
  }
  func.func @transform_1(%arg0: i32) -> (i32, i32) {
    %c0_i32 = arith.constant 0 : i32
    %c0_i32_0 = arith.constant 0 : i32
    %c0_i32_1 = arith.constant 0 : i32
    return %c0_i32, %c0_i32_0 : i32, i32
  }
  func.func @transform_2(%arg0: i32) -> (i32, i32) {
    %c0_i32 = arith.constant 0 : i32
    %c0_i32_0 = arith.constant 0 : i32
    %c0_i32_1 = arith.constant 0 : i32
    return %c0_i32, %c0_i32_0 : i32, i32
  }
  func.func @transform_3(%arg0: i32) -> (i32, i32) {
    %c0_i32 = arith.constant 0 : i32
    %c0_i32_0 = arith.constant 0 : i32
    %c0_i32_1 = arith.constant 0 : i32
    return %c0_i32, %c0_i32_0 : i32, i32
  }
  func.func @transform_4(%arg0: i32) -> (i32, i32) {
    %c0_i32 = arith.constant 0 : i32
    %c0_i32_0 = arith.constant 0 : i32
    %c0_i32_1 = arith.constant 0 : i32
    return %c0_i32, %c0_i32_0 : i32, i32
  }
  func.func @transform_5(%arg0: i32) -> (i32, i32) {
    %c0_i32 = arith.constant 0 : i32
    %c0_i32_0 = arith.constant 0 : i32
    %c0_i32_1 = arith.constant 0 : i32
    return %c0_i32, %c0_i32_0 : i32, i32
  }
  func.func @transform_6(%arg0: i32) -> (i32, i32) {
    %c0_i32 = arith.constant 0 : i32
    %c0_i32_0 = arith.constant 0 : i32
    %c0_i32_1 = arith.constant 0 : i32
    return %c0_i32, %c0_i32_0 : i32, i32
  }
  func.func @transform_7(%arg0: i32) -> (i32, i32) {
    %c0_i32 = arith.constant 0 : i32
    %c0_i32_0 = arith.constant 0 : i32
    %c0_i32_1 = arith.constant 0 : i32
    return %c0_i32, %c0_i32_0 : i32, i32
  }
  func.func @transform_8(%arg0: i32) -> (i32, i32) {
    %c0_i32 = arith.constant 0 : i32
    %c0_i32_0 = arith.constant 0 : i32
    %c0_i32_1 = arith.constant 0 : i32
    return %c0_i32, %c0_i32_0 : i32, i32
  }
  func.func @transform_9(%arg0: i32) -> (i32, i32) {
    %c0_i32 = arith.constant 0 : i32
    %c0_i32_0 = arith.constant 0 : i32
    return %arg0, %c0_i32 : i32, i32
  }
}

</mosaic_0001>

<bundles_post_ra>
// kernel: cnn_ae_1_forward.1
= control target key start
LH: loop header
LB: loop body
LE: loop exit
PB: predicated region body
PF: predicated region fallthrough
CT: control target
= control target key end

     0   :  { %14 = vsyncpa [#allocation3], 0  ;;  %s10114_s0 = inlined_call_operand.vmem [shape: bf16[2,256], index: 0, kind: input, shape index: {}]   ;;  %s10115_s1 = inlined_call_operand.hbm [shape: bf16[256,4096], index: 1, kind: input, shape index: {}]   ;;  %s10116_s2 = inlined_call_operand.hbm [shape: f32[1,4096], index: 2, kind: input, shape index: {}]   ;;  %s10117_s3 = inlined_call_operand.hbm [shape: bf16[1024,1024], index: 3, kind: input, shape index: {}]   ;;  %s10118_s4 = inlined_call_operand.hbm [shape: f32[1,1024], index: 4, kind: input, shape index: {}]   ;;  %s10119_s5 = inlined_call_operand.vmem [shape: bf16[256,20], index: 5, kind: input, shape index: {}]   ;;  %s10120_s6 = inlined_call_operand.hbm [shape: f32[1,20], index: 6, kind: input, shape index: {}]   ;;  %s10121_s7 = inlined_call_operand.hbm [shape: bf16[20,256], index: 7, kind: input, shape index: {}]   ;;  %s10122_s8 = inlined_call_operand.hbm [shape: f32[1,256], index: 8, kind: input, shape index: {}]   ;;  %s10123_s9 = inlined_call_operand.vmem [shape: f32[2,256], index: 9, kind: output, shape index: {}]  }
   0x1   :  { %15 = vsyncpa [#allocation5], 0 }
   0x2   :  { %16 = vsyncpa [#allocation8], 0 }
   0x3   :  { %17 = vsyncpa [#allocation11], 0  ;;  %s9536_s30 = smov [#allocation4]   ;;  %s9537_s11 = smov [#allocation7]  }
   0x4   :  { %s38_s10 = sshll.u32 %s9536_s30, 4  ;;  %s60_s12 = sshll.u32 %s9537_s11, 4  ;;  %s39_s10 = int_to_ptr.vmem [resolvable:$true] %s38_s10  ;;  %s61_s12 = int_to_ptr.vmem [resolvable:$true] %s60_s12 }
   0x5   :  { %s9374_s15 = scalar_lea.hbm %s10116_s2, 512 }
   0x6   :  { %p9375_p0 = scmp.ne.s32.totalorder %s10116_s2, %s9374_s15  ;;  %p9378_p1 = scmp.lt.u32.totalorder %s9374_s15, %s10116_s2 }
   0x8   :  { %p9380_p2 = pnand %p9378_p1, %p9375_p0 }
   0xa   :  { %9383 = shalt.err (!%p9380_p2)
}
   0xb   :  { %s9384_s20 = scalar_lea.vmem %s39_s10, 512  ;;  %p9389_p4 = scmp.lt.s32.totalorder %s39_s10, %s39_s10 }
   0xc   :  { %p9385_p3 = scmp.ne.s32.totalorder %s39_s10, %s9384_s20  ;;  %p9390_p5 = scmp.lt.s32.totalorder %s9384_s20, %s9384_s20 }
   0xe   :  { %p9391_p6 = por %p9390_p5, %p9389_p4 }
  0x10   :  { %p9392_p7 = pnand %p9391_p6, %p9385_p3 }
  0x12   :  { %9395 = shalt.err (!%p9392_p7)
}
  0x13   :  { %41 = dma.hbm_to_vmem [thread:$0]  %s10116_s2, 512, %s39_s10, [#allocation5]  }
  0x14   :  { %s9396_s25 = scalar_lea.hbm %s10118_s4, 128 }
  0x15   :  { %p9397_p8 = scmp.ne.s32.totalorder %s10118_s4, %s9396_s25  ;;  %p9400_p9 = scmp.lt.u32.totalorder %s9396_s25, %s10118_s4 }
  0x17   :  { %p9402_p10 = pnand %p9400_p9, %p9397_p8 }
  0x19   :  { %9405 = shalt.err (!%p9402_p10)
}
  0x1a   :  { %s9406_s30 = scalar_lea.vmem %s61_s12, 128  ;;  %p9411_p12 = scmp.lt.s32.totalorder %s61_s12, %s61_s12 }
  0x1b   :  { %p9407_p11 = scmp.ne.s32.totalorder %s61_s12, %s9406_s30  ;;  %p9412_p13 = scmp.lt.s32.totalorder %s9406_s30, %s9406_s30 }
  0x1d   :  { %p9413_p0 = por %p9412_p13, %p9411_p12 }
  0x1f   :  { %p9414_p1 = pnand %p9413_p0, %p9407_p11 }
  0x21   :  { %9417 = shalt.err (!%p9414_p1)
}
  0x22   :  { %63 = dma.hbm_to_vmem [thread:$0]  %s10118_s4, 128, %s61_s12, [#allocation8]  }
  0x23   :  { %s9538_s11 = smov [#allocation10]   ;;  %s9418_s16 = scalar_lea.hbm %s10121_s7, 384 }
  0x24   :  { %s81_s13 = sshll.u32 %s9538_s11, 4  ;;  %p9419_p2 = scmp.ne.s32.totalorder %s10121_s7, %s9418_s16  ;;  %s82_s13 = int_to_ptr.vmem [resolvable:$true] %s81_s13 }
  0x25   :  { %p9422_p3 = scmp.lt.u32.totalorder %s9418_s16, %s10121_s7 }
  0x27   :  { %p9424_p4 = pnand %p9422_p3, %p9419_p2 }
  0x29   :  { %9427 = shalt.err (!%p9424_p4)
}
  0x2a   :  { %s9428_s21 = scalar_lea.vmem %s82_s13, 384  ;;  %p9433_p6 = scmp.lt.s32.totalorder %s82_s13, %s82_s13 }
  0x2b   :  { %p9429_p5 = scmp.ne.s32.totalorder %s82_s13, %s9428_s21  ;;  %p9434_p7 = scmp.lt.s32.totalorder %s9428_s21, %s9428_s21 }
  0x2d   :  { %p9435_p8 = por %p9434_p7, %p9433_p6 }
  0x2f   :  { %p9436_p9 = pnand %p9435_p8, %p9429_p5 }
  0x31   :  { %9439 = shalt.err (!%p9436_p9)
}
  0x32   :  { %s9539_s4 = smov 128   ;;  %s9540_s12 = smov 8  }
  0x33   :  { %87 = dma.hbm_to_vmem [thread:$0]  %s10121_s7, 384, %s82_s13, [#allocation11], %s9539_s4, %s9539_s4, %s9540_s12  }
  0x34   :  { %s9541_s24 = smov [#allocation2]   ;;  %s9440_s28 = scalar_lea.hbm %s10115_s1, 65536 }
  0x35   :  { %s25_s25 = sshll.u32 %s9541_s24, 4  ;;  %p9441_p10 = scmp.ne.s32.totalorder %s10115_s1, %s9440_s28  ;;  %s26_s25 = int_to_ptr.vmem [resolvable:$true] %s25_s25 }
  0x36   :  { %p9444_p11 = scmp.lt.u32.totalorder %s9440_s28, %s10115_s1 }
  0x38   :  { %p9446_p12 = pnand %p9444_p11, %p9441_p10 }
  0x3a   :  { %9449 = shalt.err (!%p9446_p12)
}
  0x3b   :  { %s9450_s11 = scalar_lea.vmem %s26_s25, 65536  ;;  %p9455_p0 = scmp.lt.s32.totalorder %s26_s25, %s26_s25 }
  0x3c   :  { %p9451_p13 = scmp.ne.s32.totalorder %s26_s25, %s9450_s11  ;;  %p9456_p1 = scmp.lt.s32.totalorder %s9450_s11, %s9450_s11 }
  0x3e   :  { %p9457_p2 = por %p9456_p1, %p9455_p0 }
  0x40   :  { %p9458_p3 = pnand %p9457_p2, %p9451_p13 }
  0x42   :  { %9461 = shalt.err (!%p9458_p3)
}
  0x43   :  { %s9542_s7 = smov 2048   ;;  %s9543_s15 = smov [#allocation6]  }
  0x44   :  { %31 = dma.hbm_to_vmem [thread:$0]  %s10115_s1, 65536, %s26_s25, [#allocation3], %s9542_s7, %s9542_s7, %s9539_s4  }
  0x45   :  { %s47_s16 = sshll.u32 %s9543_s15, 4  ;;  %s9462_s19 = scalar_lea.hbm %s10117_s3, 65536  ;;  %s48_s16 = int_to_ptr.vmem [resolvable:$true] %s47_s16 }
  0x46   :  { %p9463_p4 = scmp.ne.s32.totalorder %s10117_s3, %s9462_s19  ;;  %p9466_p5 = scmp.lt.u32.totalorder %s9462_s19, %s10117_s3 }
  0x48   :  { %p9468_p6 = pnand %p9466_p5, %p9463_p4 }
  0x4a   :  { %9471 = shalt.err (!%p9468_p6)
}
  0x4b   :  { %s9472_s23 = scalar_lea.vmem %s48_s16, 65536  ;;  %p9477_p8 = scmp.lt.s32.totalorder %s48_s16, %s48_s16 }
  0x4c   :  { %p9473_p7 = scmp.ne.s32.totalorder %s48_s16, %s9472_s23  ;;  %p9478_p9 = scmp.lt.s32.totalorder %s9472_s23, %s9472_s23 }
  0x4e   :  { %p9479_p10 = por %p9478_p9, %p9477_p8 }
  0x50   :  { %p9480_p11 = pnand %p9479_p10, %p9473_p7 }
  0x52   :  { %9483 = shalt.err (!%p9480_p11)
}
  0x53   :  { %s9544_s1 = smov 512   ;;  %s9545_s4 = smov 32  }
  0x54   :  { %53 = dma.hbm_to_vmem [thread:$0]  %s10117_s3, 65536, %s48_s16, [#allocation5], %s9544_s1, %s9544_s1, %s9545_s4  }
  0x55   :  { %s9546_s26 = smov [#allocation9]   ;;  %s9547_s28 = smov [#allocation12]  }
  0x56   :  { %s72_s27 = sshll.u32 %s9546_s26, 4  ;;  %s94_s29 = sshll.u32 %s9547_s28, 4  ;;  %s73_s27 = int_to_ptr.vmem [resolvable:$true] %s72_s27  ;;  %s95_s29 = int_to_ptr.vmem [resolvable:$true] %s94_s29 }
  0x57   :  { %s9484_s10 = scalar_lea.hbm %s10120_s6, 16 }
  0x58   :  { %p9485_p12 = scmp.ne.s32.totalorder %s10120_s6, %s9484_s10  ;;  %p9488_p13 = scmp.lt.u32.totalorder %s9484_s10, %s10120_s6 }
  0x5a   :  { %p9490_p0 = pnand %p9488_p13, %p9485_p12 }
  0x5c   :  { %9493 = shalt.err (!%p9490_p0)
}
  0x5d   :  { %s9494_s3 = scalar_lea.vmem %s73_s27, 16  ;;  %s9498_s15 = scalar_lea.vmem %s73_s27, 32 }
  0x5e   :  { %p9495_p1 = scmp.ne.s32.totalorder %s73_s27, %s9494_s3  ;;  %p9499_p2 = scmp.lt.s32.totalorder %s73_s27, %s73_s27 }
  0x5f   :  { %p9500_p3 = scmp.lt.s32.totalorder %s9498_s15, %s9494_s3 }
  0x61   :  { %p9501_p4 = por %p9500_p3, %p9499_p2 }
  0x63   :  { %p9502_p5 = pnand %p9501_p4, %p9495_p1 }
  0x65   :  { %9505 = shalt.err (!%p9502_p5)
}
  0x66   :  { %75 = dma.hbm_to_vmem [thread:$0]  %s10120_s6, 16, %s73_s27, [#allocation8]  }
  0x67   :  { %s9506_s20 = scalar_lea.hbm %s10122_s8, 32 }
  0x68   :  { %p9507_p6 = scmp.ne.s32.totalorder %s10122_s8, %s9506_s20  ;;  %p9510_p7 = scmp.lt.u32.totalorder %s9506_s20, %s10122_s8 }
  0x6a   :  { %p9512_p8 = pnand %p9510_p7, %p9507_p6 }
  0x6c   :  { %9515 = shalt.err (!%p9512_p8)
}
  0x6d   :  { %s9516_s1 = scalar_lea.vmem %s95_s29, 32  ;;  %p9521_p10 = scmp.lt.s32.totalorder %s95_s29, %s95_s29 }
  0x6e   :  { %p9517_p9 = scmp.ne.s32.totalorder %s95_s29, %s9516_s1  ;;  %p9522_p11 = scmp.lt.s32.totalorder %s9516_s1, %s9516_s1 }
  0x70   :  { %p9523_p12 = por %p9522_p11, %p9521_p10 }
  0x72   :  { %p9524_p13 = pnand %p9523_p12, %p9517_p9 }
  0x74   :  { %9527 = shalt.err (!%p9524_p13)
}
  0x75   :  { %97 = dma.hbm_to_vmem [thread:$0]  %s10122_s8, 32, %s95_s29, [#allocation11]  }
  0x76   :  { %9528 = dma.done.wait [#allocation3], 65536  }
  0x77   :  { %9529 = vsyncadd [#allocation3], 4294901760 }
  0x78   :  { %9530 = dma.done.wait [#allocation5], 66048  }
  0x79   :  { %9531 = vsyncadd [#allocation5], 4294901248 }
  0x7a   :  { %9532 = dma.done.wait [#allocation8], 144  }
  0x7b   :  { %9533 = vsyncadd [#allocation8], 4294967152 }
  0x7c   :  { %9534 = dma.done.wait [#allocation11], 416  }
  0x7d   :  { %9535 = vsyncadd [#allocation11], 4294966880  ;;  %v121_v0 = vld [vmem:[#allocation2] sm:$0xff]  ;;  %v122_v2 = vld [vmem:[#allocation2 + $0x8] sm:$0xff]  ;;  %v641_v35 = vlaneseq  ;;  %v9548_v36 = vmov 1966171168  }
  0x7e   :  { %v137_v1 = vld [vmem:[#allocation2 + $0x80] sm:$0xff]  ;;  %v138_v4 = vld [vmem:[#allocation2 + $0x88] sm:$0xff]  ;;  %v811_v37 = vunpack.c.l.s4 %v9548_v36  ;;  %vm8138_vm0 = vcmask 1041408   ;;  %vm8134_vm1 = vcmask 162816  }
  0x7f   :  { %v8210_v3 = vcombine.high %v121_v0, %v137_v1  ;;  %v8209_v5 = vcombine.low %v121_v0, %v137_v1  ;;  %v153_v6 = vld [vmem:[#allocation2 + $0x100] sm:$0xff]  ;;  %v8212_v8 = vcombine.high %v122_v2, %v138_v4  ;;  %v8211_v9 = vcombine.low %v122_v2, %v138_v4  ;;  %v154_v11 = vld [vmem:[#allocation2 + $0x108] sm:$0xff] }
  0x80   :  { %v169_v7 = vld [vmem:[#allocation2 + $0x180] sm:$0xff]  ;;  %v170_v12 = vld [vmem:[#allocation2 + $0x188] sm:$0xff]  ;;  %v9684_v46 = vshrl.u32 %v641_v35, 7  ;;  %v812_v47 = vunpack.c.0.s8 %v811_v37 }
  0x81   :  { %v8242_v10 = vcombine.high %v153_v6, %v169_v7  ;;  %v185_v13 = vld [vmem:[#allocation2 + $0x200] sm:$0xff]  ;;  %3386 = vmatprep.subr.bf16.mxu0 %v8210_v3  ;;  %v8244_v14 = vcombine.high %v154_v11, %v170_v12  ;;  %v186_v16 = vld [vmem:[#allocation2 + $0x208] sm:$0xff]  ;;  %3427 = vmatprep.subr.bf16.mxu1 %v8212_v8  ;;  %v8241_v18 = vcombine.low %v153_v6, %v169_v7 }
  0x82   :  { %v201_v15 = vld [vmem:[#allocation2 + $0x280] sm:$0xff]  ;;  %v202_v17 = vld [vmem:[#allocation2 + $0x288] sm:$0xff]  ;;  %3387 = vmatpush1.bf16.msra.mxu0 %v8209_v5  ;;  %3428 = vmatpush1.bf16.msra.mxu1 %v8211_v9  ;;  %v8243_v19 = vcombine.low %v154_v11, %v170_v12  ;;  %v9687_v56 = vsub.s32 %v812_v47, %v9684_v46 }
  0x83   :  { %3388 = vmatprep.subr.bf16.mxu0 %v8242_v10  ;;  %v8274_v20 = vcombine.high %v185_v13, %v201_v15  ;;  %3429 = vmatprep.subr.bf16.mxu1 %v8244_v14  ;;  %v8276_v21 = vcombine.high %v186_v16, %v202_v17  ;;  %v217_v22 = vld [vmem:[#allocation2 + $0x300] sm:$0xff]  ;;  %v218_v24 = vld [vmem:[#allocation2 + $0x308] sm:$0xff]  ;;  %v8273_v26 = vcombine.low %v185_v13, %v201_v15 }
  0x84   :  { %v233_v23 = vld [vmem:[#allocation2 + $0x380] sm:$0xff]  ;;  %v234_v25 = vld [vmem:[#allocation2 + $0x388] sm:$0xff]  ;;  %v8275_v27 = vcombine.low %v186_v16, %v202_v17 }
  0x85   :  { %v8306_v28 = vcombine.high %v217_v22, %v233_v23  ;;  %v8308_v29 = vcombine.high %v218_v24, %v234_v25  ;;  %v249_v30 = vld [vmem:[#allocation2 + $0x400] sm:$0xff]  ;;  %v250_v32 = vld [vmem:[#allocation2 + $0x408] sm:$0xff]  ;;  %v8305_v34 = vcombine.low %v217_v22, %v233_v23  ;;  %v8307_v38 = vcombine.low %v218_v24, %v234_v25 }
  0x86   :  { %3389 = vmatpush1.bf16.msra.mxu0 %v8241_v18  ;;  %3430 = vmatpush1.bf16.msra.mxu1 %v8243_v19  ;;  %v265_v31 = vld [vmem:[#allocation2 + $0x480] sm:$0xff]  ;;  %v266_v33 = vld [vmem:[#allocation2 + $0x488] sm:$0xff] }
  0x87   :  { %3390 = vmatprep.subr.bf16.mxu0 %v8274_v20  ;;  %3431 = vmatprep.subr.bf16.mxu1 %v8276_v21  ;;  %v8338_v39 = vcombine.high %v249_v30, %v265_v31  ;;  %v8340_v40 = vcombine.high %v250_v32, %v266_v33  ;;  %v281_v41 = vld [vmem:[#allocation2 + $0x500] sm:$0xff]  ;;  %v282_v43 = vld [vmem:[#allocation2 + $0x508] sm:$0xff]  ;;  %v8337_v45 = vcombine.low %v249_v30, %v265_v31 }
  0x88   :  { %v297_v42 = vld [vmem:[#allocation2 + $0x580] sm:$0xff]  ;;  %v298_v44 = vld [vmem:[#allocation2 + $0x588] sm:$0xff]  ;;  %v8339_v48 = vcombine.low %v250_v32, %v266_v33 }
  0x89   :  { %v8370_v49 = vcombine.high %v281_v41, %v297_v42  ;;  %v8372_v50 = vcombine.high %v282_v43, %v298_v44  ;;  %v313_v51 = vld [vmem:[#allocation2 + $0x600] sm:$0xff]  ;;  %v314_v53 = vld [vmem:[#allocation2 + $0x608] sm:$0xff]  ;;  %v8369_v55 = vcombine.low %v281_v41, %v297_v42  ;;  %v8371_v57 = vcombine.low %v282_v43, %v298_v44 }
  0x8a   :  { %3391 = vmatpush1.bf16.msra.mxu0 %v8273_v26  ;;  %3432 = vmatpush1.bf16.msra.mxu1 %v8275_v27  ;;  %v329_v52 = vld [vmem:[#allocation2 + $0x680] sm:$0xff]  ;;  %v330_v54 = vld [vmem:[#allocation2 + $0x688] sm:$0xff] }
  0x8b   :  { %3392 = vmatprep.subr.bf16.mxu0 %v8306_v28  ;;  %3433 = vmatprep.subr.bf16.mxu1 %v8308_v29  ;;  %v8402_v58 = vcombine.high %v313_v51, %v329_v52  ;;  %v9692_v59 = vld.sshfl [vmem:[%s10114_s0] sm:$0x11 pattern:$0x75316420]  ;;  %v8404_v60 = vcombine.high %v314_v53, %v330_v54  ;;  %v346_v0 = vld [vmem:[#allocation2 + $0x708] sm:$0xff]  ;;  %v8401_v2 = vcombine.low %v313_v51, %v329_v52 }
  0x8c   :  { %v345_v61 = vld [vmem:[#allocation2 + $0x700] sm:$0xff]  ;;  %v809_v63 = vcombine.high %v9692_v59, %v9692_v59  ;;  %v362_v1 = vld [vmem:[#allocation2 + $0x788] sm:$0xff]  ;;  %v8403_v4 = vcombine.low %v314_v53, %v330_v54 }
  0x8d   :  { %v361_v62 = vld [vmem:[#allocation2 + $0x780] sm:$0xff]  ;;  %v8436_v6 = vcombine.high %v346_v0, %v362_v1  ;;  %v378_v9 = vld [vmem:[#allocation2 + $0x808] sm:$0xff]  ;;  %v8435_v12 = vcombine.low %v346_v0, %v362_v1 }
  0x8e   :  { %3393 = vmatpush1.bf16.msra.mxu0 %v8305_v34  ;;  %3434 = vmatpush1.bf16.msra.mxu1 %v8307_v38  ;;  %v9697_v3 = vrot.slane %v809_v63, %v9687_v56  ;;  %v8434_v5 = vcombine.high %v345_v61, %v361_v62  ;;  %v377_v7 = vld [vmem:[#allocation2 + $0x800] sm:$0xff]  ;;  %v394_v10 = vld [vmem:[#allocation2 + $0x888] sm:$0xff]  ;;  %v8433_v11 = vcombine.low %v345_v61, %v361_v62 }
  0x8f   :  { %3394 = vmatprep.subr.bf16.mxu0 %v8338_v39  ;;  %3435 = vmatprep.subr.bf16.mxu1 %v8340_v40  ;;  %v393_v8 = vld [vmem:[#allocation2 + $0x880] sm:$0xff]  ;;  %v8468_v14 = vcombine.high %v378_v9, %v394_v10  ;;  %v410_v17 = vld [vmem:[#allocation2 + $0x908] sm:$0xff]  ;;  %v8467_v20 = vcombine.low %v378_v9, %v394_v10 }
  0x90   :  { %3418 = vmatprep.mubr.bf16.mxu0 %v9697_v3  ;;  %3459 = vmatprep.mubr.bf16.mxu1 %v9697_v3  ;;  %v8466_v13 = vcombine.high %v377_v7, %v393_v8  ;;  %v409_v15 = vld [vmem:[#allocation2 + $0x900] sm:$0xff]  ;;  %v426_v18 = vld [vmem:[#allocation2 + $0x988] sm:$0xff]  ;;  %v8465_v19 = vcombine.low %v377_v7, %v393_v8 }
  0x91   :  { %v425_v16 = vld [vmem:[#allocation2 + $0x980] sm:$0xff]  ;;  %v8500_v22 = vcombine.high %v410_v17, %v426_v18  ;;  %v442_v25 = vld [vmem:[#allocation2 + $0xa08] sm:$0xff]  ;;  %v8499_v28 = vcombine.low %v410_v17, %v426_v18 }
  0x92   :  { %3395 = vmatpush1.bf16.msra.mxu0 %v8337_v45  ;;  %3436 = vmatpush1.bf16.msra.mxu1 %v8339_v48  ;;  %v8498_v21 = vcombine.high %v409_v15, %v425_v16  ;;  %v441_v23 = vld [vmem:[#allocation2 + $0xa00] sm:$0xff]  ;;  %v458_v26 = vld [vmem:[#allocation2 + $0xa88] sm:$0xff]  ;;  %v8497_v27 = vcombine.low %v409_v15, %v425_v16 }
  0x93   :  { %3396 = vmatprep.subr.bf16.mxu0 %v8370_v49  ;;  %3437 = vmatprep.subr.bf16.mxu1 %v8372_v50  ;;  %v457_v24 = vld [vmem:[#allocation2 + $0xa80] sm:$0xff]  ;;  %v8532_v30 = vcombine.high %v442_v25, %v458_v26  ;;  %v474_v33 = vld [vmem:[#allocation2 + $0xb08] sm:$0xff]  ;;  %v8531_v36 = vcombine.low %v442_v25, %v458_v26 }
  0x94   :  { %v8530_v29 = vcombine.high %v441_v23, %v457_v24  ;;  %v473_v31 = vld [vmem:[#allocation2 + $0xb00] sm:$0xff]  ;;  %v490_v34 = vld [vmem:[#allocation2 + $0xb88] sm:$0xff]  ;;  %v8529_v35 = vcombine.low %v441_v23, %v457_v24  ;;  %v172_v23 = vld [vmem:[#allocation2 + $0x198] sm:$0xff] }
  0x95   :  { %v489_v32 = vld [vmem:[#allocation2 + $0xb80] sm:$0xff]  ;;  %v8564_v38 = vcombine.high %v474_v33, %v490_v34  ;;  %v506_v41 = vld [vmem:[#allocation2 + $0xc08] sm:$0xff]  ;;  %v8563_v44 = vcombine.low %v474_v33, %v490_v34  ;;  %v219_v33 = vld [vmem:[#allocation2 + $0x310] sm:$0xff] }
  0x96   :  { %3397 = vmatpush1.bf16.msra.mxu0 %v8369_v55  ;;  %3438 = vmatpush1.bf16.msra.mxu1 %v8371_v57  ;;  %v8562_v37 = vcombine.high %v473_v31, %v489_v32  ;;  %v505_v39 = vld [vmem:[#allocation2 + $0xc00] sm:$0xff]  ;;  %v522_v42 = vld [vmem:[#allocation2 + $0xc88] sm:$0xff]  ;;  %v8561_v43 = vcombine.low %v473_v31, %v489_v32  ;;  %v204_v31 = vld [vmem:[#allocation2 + $0x298] sm:$0xff] }
  0x97   :  { %3398 = vmatprep.subr.bf16.mxu0 %v8402_v58  ;;  %3439 = vmatprep.subr.bf16.mxu1 %v8404_v60  ;;  %v521_v40 = vld [vmem:[#allocation2 + $0xc80] sm:$0xff]  ;;  %v8596_v47 = vcombine.high %v506_v41, %v522_v42  ;;  %v538_v50 = vld [vmem:[#allocation2 + $0xd08] sm:$0xff]  ;;  %v8595_v53 = vcombine.low %v506_v41, %v522_v42  ;;  %v235_v34 = vld [vmem:[#allocation2 + $0x390] sm:$0xff] }
  0x98   :  { %v8594_v45 = vcombine.high %v505_v39, %v521_v40  ;;  %v537_v48 = vld [vmem:[#allocation2 + $0xd00] sm:$0xff]  ;;  %v554_v51 = vld [vmem:[#allocation2 + $0xd88] sm:$0xff]  ;;  %v8593_v52 = vcombine.low %v505_v39, %v521_v40  ;;  %v8310_v40 = vcombine.high %v219_v33, %v235_v34  ;;  %v251_v41 = vld [vmem:[#allocation2 + $0x410] sm:$0xff] }
  0x99   :  { %v553_v49 = vld [vmem:[#allocation2 + $0xd80] sm:$0xff]  ;;  %v8628_v55 = vcombine.high %v538_v50, %v554_v51  ;;  %v570_v60 = vld [vmem:[#allocation2 + $0xe08] sm:$0xff]  ;;  %v8627_v63 = vcombine.low %v538_v50, %v554_v51  ;;  %v267_v42 = vld [vmem:[#allocation2 + $0x490] sm:$0xff] }
  0x9a   :  { %3399 = vmatpush1.bf16.msra.mxu0 %v8401_v2  ;;  %3440 = vmatpush1.bf16.msra.mxu1 %v8403_v4  ;;  %v8626_v54 = vcombine.high %v537_v48, %v553_v49  ;;  %v569_v57 = vld [vmem:[#allocation2 + $0xe00] sm:$0xff]  ;;  %v586_v61 = vld [vmem:[#allocation2 + $0xe88] sm:$0xff]  ;;  %v8625_v62 = vcombine.low %v537_v48, %v553_v49  ;;  %v8342_v49 = vcombine.high %v251_v41, %v267_v42  ;;  %v283_v50 = vld [vmem:[#allocation2 + $0x510] sm:$0xff] }
  0x9b   :  { %3400 = vmatprep.subr.bf16.mxu0 %v8434_v5  ;;  %3441 = vmatprep.subr.bf16.mxu1 %v8436_v6  ;;  %v585_v58 = vld [vmem:[#allocation2 + $0xe80] sm:$0xff]  ;;  %v8660_v1 = vcombine.high %v570_v60, %v586_v61  ;;  %v602_v5 = vld [vmem:[#allocation2 + $0xf08] sm:$0xff]  ;;  %v8659_v8 = vcombine.low %v570_v60, %v586_v61  ;;  %v299_v51 = vld [vmem:[#allocation2 + $0x590] sm:$0xff] }
  0x9c   :  { %v8658_v0 = vcombine.high %v569_v57, %v585_v58  ;;  %v601_v2 = vld [vmem:[#allocation2 + $0xf00] sm:$0xff]  ;;  %v618_v6 = vld [vmem:[#allocation2 + $0xf88] sm:$0xff]  ;;  %v8657_v7 = vcombine.low %v569_v57, %v585_v58  ;;  %v8374_v58 = vcombine.high %v283_v50, %v299_v51  ;;  %v315_v61 = vld [vmem:[#allocation2 + $0x610] sm:$0xff] }
  0x9d   :  { %v617_v4 = vld [vmem:[#allocation2 + $0xf80] sm:$0xff]  ;;  %v8692_v10 = vcombine.high %v602_v5, %v618_v6  ;;  %v8691_v16 = vcombine.low %v602_v5, %v618_v6  ;;  %v347_v6 = vld [vmem:[#allocation2 + $0x710] sm:$0xff] }
  0x9e   :  { %3401 = vmatpush1.bf16.msra.mxu0 %v8433_v11  ;;  %3442 = vmatpush1.bf16.msra.mxu1 %v8435_v12  ;;  %v8690_v9 = vcombine.high %v601_v2, %v617_v4  ;;  %v123_v11 = vld [vmem:[#allocation2 + $0x10] sm:$0xff]  ;;  %v8689_v15 = vcombine.low %v601_v2, %v617_v4 }
  0x9f   :  { %3402 = vmatprep.subr.bf16.mxu0 %v8466_v13  ;;  %3443 = vmatprep.subr.bf16.mxu1 %v8468_v14  ;;  %v139_v12 = vld [vmem:[#allocation2 + $0x90] sm:$0xff]  ;;  %v124_v13 = vld [vmem:[#allocation2 + $0x18] sm:$0xff] }
  0xa0   :  { %v140_v14 = vld [vmem:[#allocation2 + $0x98] sm:$0xff]  ;;  %v8214_v17 = vcombine.high %v123_v11, %v139_v12  ;;  %v8213_v24 = vcombine.low %v123_v11, %v139_v12 }
  0xa1   :  { %v8216_v18 = vcombine.high %v124_v13, %v140_v14  ;;  %v8215_v25 = vcombine.low %v124_v13, %v140_v14  ;;  %v379_v14 = vld [vmem:[#allocation2 + $0x810] sm:$0xff] }
  0xa2   :  { %3403 = vmatpush1.bf16.msra.mxu0 %v8465_v19  ;;  %3444 = vmatpush1.bf16.msra.mxu1 %v8467_v20  ;;  %v155_v19 = vld [vmem:[#allocation2 + $0x110] sm:$0xff] }
  0xa3   :  { %3404 = vmatprep.subr.bf16.mxu0 %v8498_v21  ;;  %3445 = vmatprep.subr.bf16.mxu1 %v8500_v22  ;;  %v171_v20 = vld [vmem:[#allocation2 + $0x190] sm:$0xff]  ;;  %v9703_v21 = vrot.slane %v9692_v59, %v9687_v56  ;;  %v156_v22 = vld [vmem:[#allocation2 + $0x118] sm:$0xff] }
  0xa4   :  { %v8246_v26 = vcombine.high %v155_v19, %v171_v20  ;;  %v8245_v56 = vcombine.low %v155_v19, %v171_v20  ;;  %v8247_v59 = vcombine.low %v156_v22, %v172_v23 }
  0xa6   :  { %3405 = vmatpush1.bf16.msra.mxu0 %v8497_v27  ;;  %3446 = vmatpush1.bf16.msra.mxu1 %v8499_v28  ;;  %v187_v27 = vld [vmem:[#allocation2 + $0x210] sm:$0xff] }
  0xa7   :  { %3406 = vmatprep.subr.bf16.mxu0 %v8530_v29  ;;  %3447 = vmatprep.subr.bf16.mxu1 %v8532_v30  ;;  %v203_v28 = vld [vmem:[#allocation2 + $0x290] sm:$0xff]  ;;  %v188_v29 = vld [vmem:[#allocation2 + $0x218] sm:$0xff]  ;;  %v8248_v30 = vcombine.high %v156_v22, %v172_v23 }
  0xa8   :  { %v8278_v32 = vcombine.high %v187_v27, %v203_v28  ;;  %v8279_v39 = vcombine.low %v188_v29, %v204_v31  ;;  %v411_v23 = vld [vmem:[#allocation2 + $0x910] sm:$0xff] }
  0xaa   :  { %3407 = vmatpush1.bf16.msra.mxu0 %v8529_v35  ;;  %3448 = vmatpush1.bf16.msra.mxu1 %v8531_v36  ;;  %v220_v35 = vld [vmem:[#allocation2 + $0x318] sm:$0xff]  ;;  %v8280_v36 = vcombine.high %v188_v29, %v204_v31  ;;  %v443_v31 = vld [vmem:[#allocation2 + $0xa10] sm:$0xff] }
  0xab   :  { %3408 = vmatprep.subr.bf16.mxu0 %v8562_v37  ;;  %3449 = vmatprep.subr.bf16.mxu1 %v8564_v38  ;;  %v236_v37 = vld [vmem:[#allocation2 + $0x398] sm:$0xff]  ;;  %v8277_v38 = vcombine.low %v187_v27, %v203_v28 }
  0xac   :  { %v8311_v48 = vcombine.low %v220_v35, %v236_v37 }
  0xae   :  { %3409 = vmatpush1.bf16.msra.mxu0 %v8561_v43  ;;  %3450 = vmatpush1.bf16.msra.mxu1 %v8563_v44  ;;  %v252_v43 = vld [vmem:[#allocation2 + $0x418] sm:$0xff]  ;;  %v8312_v44 = vcombine.high %v220_v35, %v236_v37  ;;  %v475_v37 = vld [vmem:[#allocation2 + $0xb10] sm:$0xff] }
  0xaf   :  { %3410 = vmatprep.subr.bf16.mxu0 %v8594_v45  ;;  %3451 = vmatprep.subr.bf16.mxu1 %v8596_v47  ;;  %v268_v45 = vld [vmem:[#allocation2 + $0x498] sm:$0xff]  ;;  %v8309_v47 = vcombine.low %v219_v33, %v235_v34 }
  0xb0   :  { %v8343_v57 = vcombine.low %v252_v43, %v268_v45 }
  0xb2   :  { %3411 = vmatpush1.bf16.msra.mxu0 %v8593_v52  ;;  %3452 = vmatpush1.bf16.msra.mxu1 %v8595_v53  ;;  %v284_v52 = vld [vmem:[#allocation2 + $0x518] sm:$0xff]  ;;  %v8344_v53 = vcombine.high %v252_v43, %v268_v45  ;;  %v507_v45 = vld [vmem:[#allocation2 + $0xc10] sm:$0xff] }
  0xb3   :  { %3412 = vmatprep.subr.bf16.mxu0 %v8626_v54  ;;  %3453 = vmatprep.subr.bf16.mxu1 %v8628_v55  ;;  %v300_v54 = vld [vmem:[#allocation2 + $0x598] sm:$0xff]  ;;  %v8341_v55 = vcombine.low %v251_v41, %v267_v42 }
  0xb4   :  { %v8376_v60 = vcombine.high %v284_v52, %v300_v54  ;;  %v8375_v2 = vcombine.low %v284_v52, %v300_v54  ;;  %v539_v54 = vld [vmem:[#allocation2 + $0xd10] sm:$0xff] }
  0xb6   :  { %3413 = vmatpush1.bf16.msra.mxu0 %v8625_v62  ;;  %3454 = vmatpush1.bf16.msra.mxu1 %v8627_v63  ;;  %v331_v62 = vld [vmem:[#allocation2 + $0x690] sm:$0xff]  ;;  %v316_v63 = vld [vmem:[#allocation2 + $0x618] sm:$0xff] }
  0xb7   :  { %3414 = vmatprep.subr.bf16.mxu0 %v8658_v0  ;;  %3455 = vmatprep.subr.bf16.mxu1 %v8660_v1  ;;  %v332_v0 = vld [vmem:[#allocation2 + $0x698] sm:$0xff]  ;;  %v8373_v1 = vcombine.low %v283_v50, %v299_v51  ;;  %v8406_v4 = vcombine.high %v315_v61, %v331_v62 }
  0xb8   :  { %v8408_v5 = vcombine.high %v316_v63, %v332_v0  ;;  %v8407_v11 = vcombine.low %v316_v63, %v332_v0  ;;  %v571_v0 = vld [vmem:[#allocation2 + $0xe10] sm:$0xff] }
  0xba   :  { %3415 = vmatpush1.bf16.msra.mxu0 %v8657_v7  ;;  %3456 = vmatpush1.bf16.msra.mxu1 %v8659_v8  ;;  %v363_v7 = vld [vmem:[#allocation2 + $0x790] sm:$0xff]  ;;  %v348_v8 = vld [vmem:[#allocation2 + $0x718] sm:$0xff] }
  0xbb   :  { %3416 = vmatprep.subr.bf16.mxu0 %v8690_v9  ;;  %3457 = vmatprep.subr.bf16.mxu1 %v8692_v10  ;;  %v364_v9 = vld [vmem:[#allocation2 + $0x798] sm:$0xff]  ;;  %v8405_v10 = vcombine.low %v315_v61, %v331_v62  ;;  %v8438_v12 = vcombine.high %v347_v6, %v363_v7 }
  0xbc   :  { %v8440_v13 = vcombine.high %v348_v8, %v364_v9  ;;  %v8439_v19 = vcombine.low %v348_v8, %v364_v9  ;;  %v603_v9 = vld [vmem:[#allocation2 + $0xf10] sm:$0xff] }
  0xbe   :  { %3417 = vmatpush1.bf16.msra.mxu0 %v8689_v15  ;;  %3458 = vmatpush1.bf16.msra.mxu1 %v8691_v16  ;;  %v395_v15 = vld [vmem:[#allocation2 + $0x890] sm:$0xff]  ;;  %v380_v16 = vld [vmem:[#allocation2 + $0x818] sm:$0xff] }
  0xbf   :  { %3468 = vmatprep.subr.bf16.mxu0 %v8214_v17  ;;  %3509 = vmatprep.subr.bf16.mxu1 %v8216_v18  ;;  %v396_v17 = vld [vmem:[#allocation2 + $0x898] sm:$0xff]  ;;  %v8437_v18 = vcombine.low %v347_v6, %v363_v7  ;;  %v8470_v20 = vcombine.high %v379_v14, %v395_v15  ;;  %v8469_v27 = vcombine.low %v379_v14, %v395_v15 }
  0xc0   :  { %v8472_v22 = vcombine.high %v380_v16, %v396_v17  ;;  %v8471_v28 = vcombine.low %v380_v16, %v396_v17  ;;  %v125_v17 = vld [vmem:[#allocation2 + $0x20] sm:$0xff] }
  0xc1   :  { %3419 = vmatmul.mubr.bf16.vlgmr.msra.gmra.mrb[0].mxu0 %v9703_v21  ;;  %3460 = vmatmul.mubr.bf16.vlgmr.msra.gmra.mrb[0].mxu1 %v9703_v21 }
  0xc2   :  { %3469 = vmatpush1.bf16.msra.mxu0 %v8213_v24  ;;  %3510 = vmatpush1.bf16.msra.mxu1 %v8215_v25  ;;  %v427_v24 = vld [vmem:[#allocation2 + $0x990] sm:$0xff]  ;;  %v412_v25 = vld [vmem:[#allocation2 + $0x918] sm:$0xff] }
  0xc3   :  { %3470 = vmatprep.subr.bf16.mxu0 %v8246_v26  ;;  %3511 = vmatprep.subr.bf16.mxu1 %v8248_v30  ;;  %v428_v26 = vld [vmem:[#allocation2 + $0x998] sm:$0xff]  ;;  %v8502_v29 = vcombine.high %v411_v23, %v427_v24  ;;  %v8501_v33 = vcombine.low %v411_v23, %v427_v24 }
  0xc4   :  { %3500 = vmatprep.mubr.bf16.mxu0 %v9697_v3  ;;  %3541 = vmatprep.mubr.bf16.mxu1 %v9697_v3  ;;  %v8504_v30 = vcombine.high %v412_v25, %v428_v26  ;;  %v8503_v34 = vcombine.low %v412_v25, %v428_v26  ;;  %v157_v26 = vld [vmem:[#allocation2 + $0x120] sm:$0xff] }
  0xc6   :  { %3471 = vmatpush1.bf16.msra.mxu0 %v8245_v56  ;;  %3512 = vmatpush1.bf16.msra.mxu1 %v8247_v59  ;;  %v459_v56 = vld [vmem:[#allocation2 + $0xa90] sm:$0xff]  ;;  %v444_v59 = vld [vmem:[#allocation2 + $0xa18] sm:$0xff] }
  0xc7   :  { %3472 = vmatprep.subr.bf16.mxu0 %v8278_v32  ;;  %3513 = vmatprep.subr.bf16.mxu1 %v8280_v36  ;;  %v460_v32 = vld [vmem:[#allocation2 + $0xa98] sm:$0xff]  ;;  %v8534_v35 = vcombine.high %v443_v31, %v459_v56  ;;  %v8533_v41 = vcombine.low %v443_v31, %v459_v56 }
  0xc8   :  { %v8536_v36 = vcombine.high %v444_v59, %v460_v32  ;;  %v8535_v42 = vcombine.low %v444_v59, %v460_v32  ;;  %v189_v32 = vld [vmem:[#allocation2 + $0x220] sm:$0xff] }
  0xca   :  { %3473 = vmatpush1.bf16.msra.mxu0 %v8277_v38  ;;  %3514 = vmatpush1.bf16.msra.mxu1 %v8279_v39  ;;  %v491_v38 = vld [vmem:[#allocation2 + $0xb90] sm:$0xff]  ;;  %v476_v39 = vld [vmem:[#allocation2 + $0xb18] sm:$0xff] }
  0xcb   :  { %3474 = vmatprep.subr.bf16.mxu0 %v8310_v40  ;;  %3515 = vmatprep.subr.bf16.mxu1 %v8312_v44  ;;  %v492_v40 = vld [vmem:[#allocation2 + $0xb98] sm:$0xff]  ;;  %v8566_v43 = vcombine.high %v475_v37, %v491_v38  ;;  %v8565_v50 = vcombine.low %v475_v37, %v491_v38 }
  0xcc   :  { %v8568_v44 = vcombine.high %v476_v39, %v492_v40  ;;  %v8567_v51 = vcombine.low %v476_v39, %v492_v40  ;;  %v221_v40 = vld [vmem:[#allocation2 + $0x320] sm:$0xff] }
  0xce   :  { %3475 = vmatpush1.bf16.msra.mxu0 %v8309_v47  ;;  %3516 = vmatpush1.bf16.msra.mxu1 %v8311_v48  ;;  %v523_v47 = vld [vmem:[#allocation2 + $0xc90] sm:$0xff]  ;;  %v508_v48 = vld [vmem:[#allocation2 + $0xc18] sm:$0xff] }
  0xcf   :  { %3476 = vmatprep.subr.bf16.mxu0 %v8342_v49  ;;  %3517 = vmatprep.subr.bf16.mxu1 %v8344_v53  ;;  %v524_v49 = vld [vmem:[#allocation2 + $0xc98] sm:$0xff]  ;;  %v8598_v52 = vcombine.high %v507_v45, %v523_v47 }
  0xd0   :  { %v8600_v53 = vcombine.high %v508_v48, %v524_v49  ;;  %v8599_v61 = vcombine.low %v508_v48, %v524_v49  ;;  %v253_v49 = vld [vmem:[#allocation2 + $0x420] sm:$0xff] }
  0xd2   :  { %3477 = vmatpush1.bf16.msra.mxu0 %v8341_v55  ;;  %3518 = vmatpush1.bf16.msra.mxu1 %v8343_v57  ;;  %v555_v55 = vld [vmem:[#allocation2 + $0xd90] sm:$0xff]  ;;  %v540_v57 = vld [vmem:[#allocation2 + $0xd18] sm:$0xff] }
  0xd3   :  { %3478 = vmatprep.subr.bf16.mxu0 %v8374_v58  ;;  %3519 = vmatprep.subr.bf16.mxu1 %v8376_v60  ;;  %v556_v58 = vld [vmem:[#allocation2 + $0xd98] sm:$0xff]  ;;  %v8597_v60 = vcombine.low %v507_v45, %v523_v47  ;;  %v8630_v62 = vcombine.high %v539_v54, %v555_v55 }
  0xd4   :  { %v8632_v63 = vcombine.high %v540_v57, %v556_v58  ;;  %v8631_v6 = vcombine.low %v540_v57, %v556_v58  ;;  %v285_v58 = vld [vmem:[#allocation2 + $0x520] sm:$0xff] }
  0xd6   :  { %3479 = vmatpush1.bf16.msra.mxu0 %v8373_v1  ;;  %3520 = vmatpush1.bf16.msra.mxu1 %v8375_v2  ;;  %v587_v1 = vld [vmem:[#allocation2 + $0xe90] sm:$0xff]  ;;  %v572_v2 = vld [vmem:[#allocation2 + $0xe18] sm:$0xff] }
  0xd7   :  { %3480 = vmatprep.subr.bf16.mxu0 %v8406_v4  ;;  %3521 = vmatprep.subr.bf16.mxu1 %v8408_v5  ;;  %v588_v4 = vld [vmem:[#allocation2 + $0xe98] sm:$0xff]  ;;  %v8629_v5 = vcombine.low %v539_v54, %v555_v55  ;;  %v8662_v7 = vcombine.high %v571_v0, %v587_v1 }
  0xd8   :  { %v8664_v8 = vcombine.high %v572_v2, %v588_v4  ;;  %v8663_v14 = vcombine.low %v572_v2, %v588_v4  ;;  %v317_v4 = vld [vmem:[#allocation2 + $0x620] sm:$0xff] }
  0xda   :  { %3481 = vmatpush1.bf16.msra.mxu0 %v8405_v10  ;;  %3522 = vmatpush1.bf16.msra.mxu1 %v8407_v11  ;;  %v619_v10 = vld [vmem:[#allocation2 + $0xf90] sm:$0xff]  ;;  %v604_v11 = vld [vmem:[#allocation2 + $0xf18] sm:$0xff] }
  0xdb   :  { %3482 = vmatprep.subr.bf16.mxu0 %v8438_v12  ;;  %3523 = vmatprep.subr.bf16.mxu1 %v8440_v13  ;;  %v620_v12 = vld [vmem:[#allocation2 + $0xf98] sm:$0xff]  ;;  %v8661_v13 = vcombine.low %v571_v0, %v587_v1  ;;  %v8694_v15 = vcombine.high %v603_v9, %v619_v10 }
  0xdc   :  { %v8696_v16 = vcombine.high %v604_v11, %v620_v12  ;;  %v8695_v23 = vcombine.low %v604_v11, %v620_v12  ;;  %v349_v12 = vld [vmem:[#allocation2 + $0x720] sm:$0xff] }
  0xde   :  { %3483 = vmatpush1.bf16.msra.mxu0 %v8437_v18  ;;  %3524 = vmatpush1.bf16.msra.mxu1 %v8439_v19  ;;  %v141_v18 = vld [vmem:[#allocation2 + $0xa0] sm:$0xff]  ;;  %v126_v19 = vld [vmem:[#allocation2 + $0x28] sm:$0xff] }
  0xdf   :  { %3484 = vmatprep.subr.bf16.mxu0 %v8470_v20  ;;  %3525 = vmatprep.subr.bf16.mxu1 %v8472_v22  ;;  %v142_v20 = vld [vmem:[#allocation2 + $0xa8] sm:$0xff]  ;;  %v8693_v22 = vcombine.low %v603_v9, %v619_v10  ;;  %v8218_v24 = vcombine.high %v125_v17, %v141_v18 }
  0xe0   :  { %v8220_v25 = vcombine.high %v126_v19, %v142_v20  ;;  %v8219_v31 = vcombine.low %v126_v19, %v142_v20  ;;  %v381_v20 = vld [vmem:[#allocation2 + $0x820] sm:$0xff] }
  0xe2   :  { %3485 = vmatpush1.bf16.msra.mxu0 %v8469_v27  ;;  %3526 = vmatpush1.bf16.msra.mxu1 %v8471_v28  ;;  %v173_v27 = vld [vmem:[#allocation2 + $0x1a0] sm:$0xff]  ;;  %v158_v28 = vld [vmem:[#allocation2 + $0x128] sm:$0xff] }
  0xe3   :  { %3486 = vmatprep.subr.bf16.mxu0 %v8502_v29  ;;  %3527 = vmatprep.subr.bf16.mxu1 %v8504_v30  ;;  %v174_v29 = vld [vmem:[#allocation2 + $0x1a8] sm:$0xff]  ;;  %v8217_v30 = vcombine.low %v125_v17, %v141_v18  ;;  %v8250_v56 = vcombine.high %v157_v26, %v173_v27 }
  0xe4   :  { %v8252_v59 = vcombine.high %v158_v28, %v174_v29  ;;  %v8251_v37 = vcombine.low %v158_v28, %v174_v29  ;;  %v413_v29 = vld [vmem:[#allocation2 + $0x920] sm:$0xff] }
  0xe6   :  { %3487 = vmatpush1.bf16.msra.mxu0 %v8501_v33  ;;  %3528 = vmatpush1.bf16.msra.mxu1 %v8503_v34  ;;  %v205_v33 = vld [vmem:[#allocation2 + $0x2a0] sm:$0xff]  ;;  %v190_v34 = vld [vmem:[#allocation2 + $0x228] sm:$0xff] }
  0xe7   :  { %3488 = vmatprep.subr.bf16.mxu0 %v8534_v35  ;;  %3529 = vmatprep.subr.bf16.mxu1 %v8536_v36  ;;  %v206_v35 = vld [vmem:[#allocation2 + $0x2a8] sm:$0xff]  ;;  %v8249_v36 = vcombine.low %v157_v26, %v173_v27  ;;  %v8282_v38 = vcombine.high %v189_v32, %v205_v33 }
  0xe8   :  { %v8284_v39 = vcombine.high %v190_v34, %v206_v35  ;;  %v8283_v45 = vcombine.low %v190_v34, %v206_v35  ;;  %v445_v35 = vld [vmem:[#allocation2 + $0xa20] sm:$0xff] }
  0xea   :  { %3489 = vmatpush1.bf16.msra.mxu0 %v8533_v41  ;;  %3530 = vmatpush1.bf16.msra.mxu1 %v8535_v42  ;;  %v237_v41 = vld [vmem:[#allocation2 + $0x3a0] sm:$0xff]  ;;  %v222_v42 = vld [vmem:[#allocation2 + $0x328] sm:$0xff] }
  0xeb   :  { %3490 = vmatprep.subr.bf16.mxu0 %v8566_v43  ;;  %3531 = vmatprep.subr.bf16.mxu1 %v8568_v44  ;;  %v238_v43 = vld [vmem:[#allocation2 + $0x3a8] sm:$0xff]  ;;  %v8281_v44 = vcombine.low %v189_v32, %v205_v33  ;;  %v8314_v47 = vcombine.high %v221_v40, %v237_v41 }
  0xec   :  { %v8316_v48 = vcombine.high %v222_v42, %v238_v43  ;;  %v8315_v54 = vcombine.low %v222_v42, %v238_v43  ;;  %v477_v43 = vld [vmem:[#allocation2 + $0xb20] sm:$0xff] }
  0xee   :  { %3491 = vmatpush1.bf16.msra.mxu0 %v8565_v50  ;;  %3532 = vmatpush1.bf16.msra.mxu1 %v8567_v51  ;;  %v269_v50 = vld [vmem:[#allocation2 + $0x4a0] sm:$0xff]  ;;  %v254_v51 = vld [vmem:[#allocation2 + $0x428] sm:$0xff] }
  0xef   :  { %3492 = vmatprep.subr.bf16.mxu0 %v8598_v52  ;;  %3533 = vmatprep.subr.bf16.mxu1 %v8600_v53  ;;  %v270_v52 = vld [vmem:[#allocation2 + $0x4a8] sm:$0xff]  ;;  %v8313_v53 = vcombine.low %v221_v40, %v237_v41  ;;  %v8346_v55 = vcombine.high %v253_v49, %v269_v50 }
  0xf0   :  { %v8348_v57 = vcombine.high %v254_v51, %v270_v52  ;;  %v8347_v0 = vcombine.low %v254_v51, %v270_v52  ;;  %v509_v52 = vld [vmem:[#allocation2 + $0xc20] sm:$0xff] }
  0xf2   :  { %3493 = vmatpush1.bf16.msra.mxu0 %v8597_v60  ;;  %3534 = vmatpush1.bf16.msra.mxu1 %v8599_v61  ;;  %v301_v60 = vld [vmem:[#allocation2 + $0x5a0] sm:$0xff]  ;;  %v286_v61 = vld [vmem:[#allocation2 + $0x528] sm:$0xff] }
  0xf3   :  { %3494 = vmatprep.subr.bf16.mxu0 %v8630_v62  ;;  %3535 = vmatprep.subr.bf16.mxu1 %v8632_v63  ;;  %v302_v62 = vld [vmem:[#allocation2 + $0x5a8] sm:$0xff]  ;;  %v8345_v63 = vcombine.low %v253_v49, %v269_v50  ;;  %v8378_v1 = vcombine.high %v285_v58, %v301_v60 }
  0xf4   :  { %v8380_v2 = vcombine.high %v286_v61, %v302_v62  ;;  %v8379_v9 = vcombine.low %v286_v61, %v302_v62  ;;  %v541_v62 = vld [vmem:[#allocation2 + $0xd20] sm:$0xff] }
  0xf6   :  { %3495 = vmatpush1.bf16.msra.mxu0 %v8629_v5  ;;  %3536 = vmatpush1.bf16.msra.mxu1 %v8631_v6  ;;  %v333_v5 = vld [vmem:[#allocation2 + $0x6a0] sm:$0xff]  ;;  %v318_v6 = vld [vmem:[#allocation2 + $0x628] sm:$0xff] }
  0xf7   :  { %3496 = vmatprep.subr.bf16.mxu0 %v8662_v7  ;;  %3537 = vmatprep.subr.bf16.mxu1 %v8664_v8  ;;  %v334_v7 = vld [vmem:[#allocation2 + $0x6a8] sm:$0xff]  ;;  %v8377_v8 = vcombine.low %v285_v58, %v301_v60  ;;  %v8410_v10 = vcombine.high %v317_v4, %v333_v5 }
  0xf8   :  { %v8412_v11 = vcombine.high %v318_v6, %v334_v7  ;;  %v8411_v17 = vcombine.low %v318_v6, %v334_v7  ;;  %v573_v7 = vld [vmem:[#allocation2 + $0xe20] sm:$0xff] }
  0xfa   :  { %3497 = vmatpush1.bf16.msra.mxu0 %v8661_v13  ;;  %3538 = vmatpush1.bf16.msra.mxu1 %v8663_v14  ;;  %v365_v13 = vld [vmem:[#allocation2 + $0x7a0] sm:$0xff]  ;;  %v350_v14 = vld [vmem:[#allocation2 + $0x728] sm:$0xff] }
  0xfb   :  { %3498 = vmatprep.subr.bf16.mxu0 %v8694_v15  ;;  %3539 = vmatprep.subr.bf16.mxu1 %v8696_v16  ;;  %v366_v15 = vld [vmem:[#allocation2 + $0x7a8] sm:$0xff]  ;;  %v8409_v16 = vcombine.low %v317_v4, %v333_v5  ;;  %v8442_v18 = vcombine.high %v349_v12, %v365_v13 }
  0xfc   :  { %v8444_v19 = vcombine.high %v350_v14, %v366_v15  ;;  %v8443_v26 = vcombine.low %v350_v14, %v366_v15  ;;  %v605_v15 = vld [vmem:[#allocation2 + $0xf20] sm:$0xff] }
  0xfe   :  { %3499 = vmatpush1.bf16.msra.mxu0 %v8693_v22  ;;  %3540 = vmatpush1.bf16.msra.mxu1 %v8695_v23  ;;  %v397_v22 = vld [vmem:[#allocation2 + $0x8a0] sm:$0xff]  ;;  %v382_v23 = vld [vmem:[#allocation2 + $0x828] sm:$0xff] }
  0xff   :  { %3550 = vmatprep.subr.bf16.mxu0 %v8218_v24  ;;  %3591 = vmatprep.subr.bf16.mxu1 %v8220_v25  ;;  %v398_v24 = vld [vmem:[#allocation2 + $0x8a8] sm:$0xff]  ;;  %v8441_v25 = vcombine.low %v349_v12, %v365_v13  ;;  %v8474_v27 = vcombine.high %v381_v20, %v397_v22 }
 0x100   :  { %v8476_v28 = vcombine.high %v382_v23, %v398_v24  ;;  %v8475_v32 = vcombine.low %v382_v23, %v398_v24  ;;  %v127_v24 = vld [vmem:[#allocation2 + $0x30] sm:$0xff] }
 0x101   :  { %3501 = vmatmul.mubr.bf16.vlgmr.msra.gmra.mrb[4].mxu0 %v9703_v21  ;;  %3542 = vmatmul.mubr.bf16.vlgmr.msra.gmra.mrb[4].mxu1 %v9703_v21 }
 0x102   :  { %3551 = vmatpush1.bf16.msra.mxu0 %v8217_v30  ;;  %3592 = vmatpush1.bf16.msra.mxu1 %v8219_v31  ;;  %v429_v30 = vld [vmem:[#allocation2 + $0x9a0] sm:$0xff]  ;;  %v414_v31 = vld [vmem:[#allocation2 + $0x928] sm:$0xff] }
 0x103   :  { %3552 = vmatprep.subr.bf16.mxu0 %v8250_v56  ;;  %3593 = vmatprep.subr.bf16.mxu1 %v8252_v59  ;;  %v430_v56 = vld [vmem:[#allocation2 + $0x9a8] sm:$0xff]  ;;  %v8473_v59 = vcombine.low %v381_v20, %v397_v22  ;;  %v8506_v33 = vcombine.high %v413_v29, %v429_v30 }
 0x104   :  { %3582 = vmatprep.mubr.bf16.mxu0 %v9697_v3  ;;  %3623 = vmatprep.mubr.bf16.mxu1 %v9697_v3  ;;  %v8508_v34 = vcombine.high %v414_v31, %v430_v56  ;;  %v8507_v40 = vcombine.low %v414_v31, %v430_v56  ;;  %v159_v56 = vld [vmem:[#allocation2 + $0x130] sm:$0xff] }
 0x106   :  { %3553 = vmatpush1.bf16.msra.mxu0 %v8249_v36  ;;  %3594 = vmatpush1.bf16.msra.mxu1 %v8251_v37  ;;  %v461_v36 = vld [vmem:[#allocation2 + $0xaa0] sm:$0xff]  ;;  %v446_v37 = vld [vmem:[#allocation2 + $0xa28] sm:$0xff] }
 0x107   :  { %3554 = vmatprep.subr.bf16.mxu0 %v8282_v38  ;;  %3595 = vmatprep.subr.bf16.mxu1 %v8284_v39  ;;  %v462_v38 = vld [vmem:[#allocation2 + $0xaa8] sm:$0xff]  ;;  %v8505_v39 = vcombine.low %v413_v29, %v429_v30  ;;  %v8538_v41 = vcombine.high %v445_v35, %v461_v36 }
 0x108   :  { %v8540_v42 = vcombine.high %v446_v37, %v462_v38  ;;  %v8539_v49 = vcombine.low %v446_v37, %v462_v38  ;;  %v191_v38 = vld [vmem:[#allocation2 + $0x230] sm:$0xff] }
 0x10a   :  { %3555 = vmatpush1.bf16.msra.mxu0 %v8281_v44  ;;  %3596 = vmatpush1.bf16.msra.mxu1 %v8283_v45  ;;  %v493_v44 = vld [vmem:[#allocation2 + $0xba0] sm:$0xff]  ;;  %v478_v45 = vld [vmem:[#allocation2 + $0xb28] sm:$0xff] }
 0x10b   :  { %3556 = vmatprep.subr.bf16.mxu0 %v8314_v47  ;;  %3597 = vmatprep.subr.bf16.mxu1 %v8316_v48  ;;  %v494_v47 = vld [vmem:[#allocation2 + $0xba8] sm:$0xff]  ;;  %v8537_v48 = vcombine.low %v445_v35, %v461_v36  ;;  %v8570_v50 = vcombine.high %v477_v43, %v493_v44 }
 0x10c   :  { %v8572_v51 = vcombine.high %v478_v45, %v494_v47  ;;  %v8571_v58 = vcombine.low %v478_v45, %v494_v47  ;;  %v223_v47 = vld [vmem:[#allocation2 + $0x330] sm:$0xff] }
 0x10e   :  { %3557 = vmatpush1.bf16.msra.mxu0 %v8313_v53  ;;  %3598 = vmatpush1.bf16.msra.mxu1 %v8315_v54  ;;  %v525_v53 = vld [vmem:[#allocation2 + $0xca0] sm:$0xff]  ;;  %v510_v54 = vld [vmem:[#allocation2 + $0xc28] sm:$0xff] }
 0x10f   :  { %3558 = vmatprep.subr.bf16.mxu0 %v8346_v55  ;;  %3599 = vmatprep.subr.bf16.mxu1 %v8348_v57  ;;  %v526_v55 = vld [vmem:[#allocation2 + $0xca8] sm:$0xff]  ;;  %v8569_v57 = vcombine.low %v477_v43, %v493_v44  ;;  %v8602_v60 = vcombine.high %v509_v52, %v525_v53 }
 0x110   :  { %v8604_v61 = vcombine.high %v510_v54, %v526_v55  ;;  %v8603_v4 = vcombine.low %v510_v54, %v526_v55  ;;  %v255_v55 = vld [vmem:[#allocation2 + $0x430] sm:$0xff] }
 0x112   :  { %3559 = vmatpush1.bf16.msra.mxu0 %v8345_v63  ;;  %3600 = vmatpush1.bf16.msra.mxu1 %v8347_v0  ;;  %v557_v63 = vld [vmem:[#allocation2 + $0xda0] sm:$0xff]  ;;  %v542_v0 = vld [vmem:[#allocation2 + $0xd28] sm:$0xff] }
 0x113   :  { %3560 = vmatprep.subr.bf16.mxu0 %v8378_v1  ;;  %3601 = vmatprep.subr.bf16.mxu1 %v8380_v2  ;;  %v558_v1 = vld [vmem:[#allocation2 + $0xda8] sm:$0xff]  ;;  %v8601_v2 = vcombine.low %v509_v52, %v525_v53  ;;  %v8634_v5 = vcombine.high %v541_v62, %v557_v63 }
 0x114   :  { %v8636_v6 = vcombine.high %v542_v0, %v558_v1  ;;  %v8635_v12 = vcombine.low %v542_v0, %v558_v1  ;;  %v287_v1 = vld [vmem:[#allocation2 + $0x530] sm:$0xff] }
 0x116   :  { %3561 = vmatpush1.bf16.msra.mxu0 %v8377_v8  ;;  %3602 = vmatpush1.bf16.msra.mxu1 %v8379_v9  ;;  %v589_v8 = vld [vmem:[#allocation2 + $0xea0] sm:$0xff]  ;;  %v574_v9 = vld [vmem:[#allocation2 + $0xe28] sm:$0xff] }
 0x117   :  { %3562 = vmatprep.subr.bf16.mxu0 %v8410_v10  ;;  %3603 = vmatprep.subr.bf16.mxu1 %v8412_v11  ;;  %v590_v10 = vld [vmem:[#allocation2 + $0xea8] sm:$0xff]  ;;  %v8633_v11 = vcombine.low %v541_v62, %v557_v63  ;;  %v8666_v13 = vcombine.high %v573_v7, %v589_v8 }
 0x118   :  { %v8668_v14 = vcombine.high %v574_v9, %v590_v10  ;;  %v8667_v20 = vcombine.low %v574_v9, %v590_v10  ;;  %v319_v10 = vld [vmem:[#allocation2 + $0x630] sm:$0xff] }
 0x11a   :  { %3563 = vmatpush1.bf16.msra.mxu0 %v8409_v16  ;;  %3604 = vmatpush1.bf16.msra.mxu1 %v8411_v17  ;;  %v621_v16 = vld [vmem:[#allocation2 + $0xfa0] sm:$0xff]  ;;  %v606_v17 = vld [vmem:[#allocation2 + $0xf28] sm:$0xff] }
 0x11b   :  { %3564 = vmatprep.subr.bf16.mxu0 %v8442_v18  ;;  %3605 = vmatprep.subr.bf16.mxu1 %v8444_v19  ;;  %v622_v18 = vld [vmem:[#allocation2 + $0xfa8] sm:$0xff]  ;;  %v8665_v19 = vcombine.low %v573_v7, %v589_v8  ;;  %v8698_v22 = vcombine.high %v605_v15, %v621_v16 }
 0x11c   :  { %v8700_v23 = vcombine.high %v606_v17, %v622_v18  ;;  %v8699_v29 = vcombine.low %v606_v17, %v622_v18  ;;  %v351_v18 = vld [vmem:[#allocation2 + $0x730] sm:$0xff] }
 0x11e   :  { %3565 = vmatpush1.bf16.msra.mxu0 %v8441_v25  ;;  %3606 = vmatpush1.bf16.msra.mxu1 %v8443_v26  ;;  %v143_v25 = vld [vmem:[#allocation2 + $0xb0] sm:$0xff]  ;;  %v128_v26 = vld [vmem:[#allocation2 + $0x38] sm:$0xff] }
 0x11f   :  { %3566 = vmatprep.subr.bf16.mxu0 %v8474_v27  ;;  %3607 = vmatprep.subr.bf16.mxu1 %v8476_v28  ;;  %v144_v27 = vld [vmem:[#allocation2 + $0xb8] sm:$0xff]  ;;  %v8697_v28 = vcombine.low %v605_v15, %v621_v16  ;;  %v8222_v30 = vcombine.high %v127_v24, %v143_v25 }
 0x120   :  { %v8224_v31 = vcombine.high %v128_v26, %v144_v27  ;;  %v8223_v35 = vcombine.low %v128_v26, %v144_v27  ;;  %v383_v27 = vld [vmem:[#allocation2 + $0x830] sm:$0xff] }
 0x122   :  { %3567 = vmatpush1.bf16.msra.mxu0 %v8473_v59  ;;  %3608 = vmatpush1.bf16.msra.mxu1 %v8475_v32  ;;  %v175_v59 = vld [vmem:[#allocation2 + $0x1b0] sm:$0xff]  ;;  %v160_v32 = vld [vmem:[#allocation2 + $0x138] sm:$0xff] }
 0x123   :  { %3568 = vmatprep.subr.bf16.mxu0 %v8506_v33  ;;  %3609 = vmatprep.subr.bf16.mxu1 %v8508_v34  ;;  %v176_v33 = vld [vmem:[#allocation2 + $0x1b8] sm:$0xff]  ;;  %v8221_v34 = vcombine.low %v127_v24, %v143_v25  ;;  %v8254_v36 = vcombine.high %v159_v56, %v175_v59 }
 0x124   :  { %v8256_v37 = vcombine.high %v160_v32, %v176_v33  ;;  %v8255_v43 = vcombine.low %v160_v32, %v176_v33  ;;  %v415_v33 = vld [vmem:[#allocation2 + $0x930] sm:$0xff] }
 0x126   :  { %3569 = vmatpush1.bf16.msra.mxu0 %v8505_v39  ;;  %3610 = vmatpush1.bf16.msra.mxu1 %v8507_v40  ;;  %v207_v39 = vld [vmem:[#allocation2 + $0x2b0] sm:$0xff]  ;;  %v192_v40 = vld [vmem:[#allocation2 + $0x238] sm:$0xff] }
 0x127   :  { %3570 = vmatprep.subr.bf16.mxu0 %v8538_v41  ;;  %3611 = vmatprep.subr.bf16.mxu1 %v8540_v42  ;;  %v208_v41 = vld [vmem:[#allocation2 + $0x2b8] sm:$0xff]  ;;  %v8253_v42 = vcombine.low %v159_v56, %v175_v59  ;;  %v8286_v44 = vcombine.high %v191_v38, %v207_v39 }
 0x128   :  { %v8288_v45 = vcombine.high %v192_v40, %v208_v41  ;;  %v8287_v52 = vcombine.low %v192_v40, %v208_v41  ;;  %v447_v41 = vld [vmem:[#allocation2 + $0xa30] sm:$0xff] }
 0x12a   :  { %3571 = vmatpush1.bf16.msra.mxu0 %v8537_v48  ;;  %3612 = vmatpush1.bf16.msra.mxu1 %v8539_v49  ;;  %v239_v48 = vld [vmem:[#allocation2 + $0x3b0] sm:$0xff]  ;;  %v224_v49 = vld [vmem:[#allocation2 + $0x338] sm:$0xff] }
 0x12b   :  { %3572 = vmatprep.subr.bf16.mxu0 %v8570_v50  ;;  %3613 = vmatprep.subr.bf16.mxu1 %v8572_v51  ;;  %v240_v50 = vld [vmem:[#allocation2 + $0x3b8] sm:$0xff]  ;;  %v8285_v51 = vcombine.low %v191_v38, %v207_v39  ;;  %v8318_v53 = vcombine.high %v223_v47, %v239_v48 }
 0x12c   :  { %v8320_v54 = vcombine.high %v224_v49, %v240_v50  ;;  %v8319_v62 = vcombine.low %v224_v49, %v240_v50  ;;  %v479_v50 = vld [vmem:[#allocation2 + $0xb30] sm:$0xff] }
 0x12e   :  { %3573 = vmatpush1.bf16.msra.mxu0 %v8569_v57  ;;  %3614 = vmatpush1.bf16.msra.mxu1 %v8571_v58  ;;  %v271_v57 = vld [vmem:[#allocation2 + $0x4b0] sm:$0xff]  ;;  %v256_v58 = vld [vmem:[#allocation2 + $0x438] sm:$0xff] }
 0x12f   :  { %3574 = vmatprep.subr.bf16.mxu0 %v8602_v60  ;;  %3615 = vmatprep.subr.bf16.mxu1 %v8604_v61  ;;  %v272_v60 = vld [vmem:[#allocation2 + $0x4b8] sm:$0xff]  ;;  %v8317_v61 = vcombine.low %v223_v47, %v239_v48  ;;  %v8350_v63 = vcombine.high %v255_v55, %v271_v57 }
 0x130   :  { %v8352_v0 = vcombine.high %v256_v58, %v272_v60  ;;  %v8351_v7 = vcombine.low %v256_v58, %v272_v60  ;;  %v511_v60 = vld [vmem:[#allocation2 + $0xc30] sm:$0xff] }
 0x132   :  { %3575 = vmatpush1.bf16.msra.mxu0 %v8601_v2  ;;  %3616 = vmatpush1.bf16.msra.mxu1 %v8603_v4  ;;  %v303_v2 = vld [vmem:[#allocation2 + $0x5b0] sm:$0xff]  ;;  %v288_v4 = vld [vmem:[#allocation2 + $0x538] sm:$0xff] }
 0x133   :  { %3576 = vmatprep.subr.bf16.mxu0 %v8634_v5  ;;  %3617 = vmatprep.subr.bf16.mxu1 %v8636_v6  ;;  %v304_v5 = vld [vmem:[#allocation2 + $0x5b8] sm:$0xff]  ;;  %v8349_v6 = vcombine.low %v255_v55, %v271_v57  ;;  %v8382_v8 = vcombine.high %v287_v1, %v303_v2 }
 0x134   :  { %v8384_v9 = vcombine.high %v288_v4, %v304_v5  ;;  %v8383_v15 = vcombine.low %v288_v4, %v304_v5  ;;  %v543_v5 = vld [vmem:[#allocation2 + $0xd30] sm:$0xff] }
 0x136   :  { %3577 = vmatpush1.bf16.msra.mxu0 %v8633_v11  ;;  %3618 = vmatpush1.bf16.msra.mxu1 %v8635_v12  ;;  %v335_v11 = vld [vmem:[#allocation2 + $0x6b0] sm:$0xff]  ;;  %v320_v12 = vld [vmem:[#allocation2 + $0x638] sm:$0xff] }
 0x137   :  { %3578 = vmatprep.subr.bf16.mxu0 %v8666_v13  ;;  %3619 = vmatprep.subr.bf16.mxu1 %v8668_v14  ;;  %v336_v13 = vld [vmem:[#allocation2 + $0x6b8] sm:$0xff]  ;;  %v8381_v14 = vcombine.low %v287_v1, %v303_v2  ;;  %v8414_v16 = vcombine.high %v319_v10, %v335_v11 }
 0x138   :  { %v8416_v17 = vcombine.high %v320_v12, %v336_v13  ;;  %v8415_v24 = vcombine.low %v320_v12, %v336_v13  ;;  %v575_v13 = vld [vmem:[#allocation2 + $0xe30] sm:$0xff] }
 0x13a   :  { %3579 = vmatpush1.bf16.msra.mxu0 %v8665_v19  ;;  %3620 = vmatpush1.bf16.msra.mxu1 %v8667_v20  ;;  %v367_v19 = vld [vmem:[#allocation2 + $0x7b0] sm:$0xff]  ;;  %v352_v20 = vld [vmem:[#allocation2 + $0x738] sm:$0xff] }
 0x13b   :  { %3580 = vmatprep.subr.bf16.mxu0 %v8698_v22  ;;  %3621 = vmatprep.subr.bf16.mxu1 %v8700_v23  ;;  %v368_v22 = vld [vmem:[#allocation2 + $0x7b8] sm:$0xff]  ;;  %v8413_v23 = vcombine.low %v319_v10, %v335_v11  ;;  %v8446_v25 = vcombine.high %v351_v18, %v367_v19 }
 0x13c   :  { %v8448_v26 = vcombine.high %v352_v20, %v368_v22  ;;  %v8447_v56 = vcombine.low %v352_v20, %v368_v22  ;;  %v607_v22 = vld [vmem:[#allocation2 + $0xf30] sm:$0xff] }
 0x13e   :  { %3581 = vmatpush1.bf16.msra.mxu0 %v8697_v28  ;;  %3622 = vmatpush1.bf16.msra.mxu1 %v8699_v29  ;;  %v399_v28 = vld [vmem:[#allocation2 + $0x8b0] sm:$0xff]  ;;  %v384_v29 = vld [vmem:[#allocation2 + $0x838] sm:$0xff] }
 0x13f   :  { %3632 = vmatprep.subr.bf16.mxu0 %v8222_v30  ;;  %3673 = vmatprep.subr.bf16.mxu1 %v8224_v31  ;;  %v400_v30 = vld [vmem:[#allocation2 + $0x8b8] sm:$0xff]  ;;  %v8445_v31 = vcombine.low %v351_v18, %v367_v19  ;;  %v8478_v59 = vcombine.high %v383_v27, %v399_v28 }
 0x140   :  { %v8480_v32 = vcombine.high %v384_v29, %v400_v30  ;;  %v8479_v38 = vcombine.low %v384_v29, %v400_v30  ;;  %v129_v30 = vld [vmem:[#allocation2 + $0x40] sm:$0xff] }
 0x141   :  { %3583 = vmatmul.mubr.bf16.vlgmr.msra.gmra.mrb[8].mxu0 %v9703_v21  ;;  %3624 = vmatmul.mubr.bf16.vlgmr.msra.gmra.mrb[8].mxu1 %v9703_v21 }
 0x142   :  { %3633 = vmatpush1.bf16.msra.mxu0 %v8221_v34  ;;  %3674 = vmatpush1.bf16.msra.mxu1 %v8223_v35  ;;  %v431_v34 = vld [vmem:[#allocation2 + $0x9b0] sm:$0xff]  ;;  %v416_v35 = vld [vmem:[#allocation2 + $0x938] sm:$0xff] }
 0x143   :  { %3634 = vmatprep.subr.bf16.mxu0 %v8254_v36  ;;  %3675 = vmatprep.subr.bf16.mxu1 %v8256_v37  ;;  %v432_v36 = vld [vmem:[#allocation2 + $0x9b8] sm:$0xff]  ;;  %v8477_v37 = vcombine.low %v383_v27, %v399_v28  ;;  %v8510_v39 = vcombine.high %v415_v33, %v431_v34 }
 0x144   :  { %3664 = vmatprep.mubr.bf16.mxu0 %v9697_v3  ;;  %3705 = vmatprep.mubr.bf16.mxu1 %v9697_v3  ;;  %v8512_v40 = vcombine.high %v416_v35, %v432_v36  ;;  %v8511_v47 = vcombine.low %v416_v35, %v432_v36  ;;  %v161_v36 = vld [vmem:[#allocation2 + $0x140] sm:$0xff] }
 0x146   :  { %3635 = vmatpush1.bf16.msra.mxu0 %v8253_v42  ;;  %3676 = vmatpush1.bf16.msra.mxu1 %v8255_v43  ;;  %v463_v42 = vld [vmem:[#allocation2 + $0xab0] sm:$0xff]  ;;  %v448_v43 = vld [vmem:[#allocation2 + $0xa38] sm:$0xff] }
 0x147   :  { %3636 = vmatprep.subr.bf16.mxu0 %v8286_v44  ;;  %3677 = vmatprep.subr.bf16.mxu1 %v8288_v45  ;;  %v464_v44 = vld [vmem:[#allocation2 + $0xab8] sm:$0xff]  ;;  %v8509_v45 = vcombine.low %v415_v33, %v431_v34  ;;  %v8542_v48 = vcombine.high %v447_v41, %v463_v42 }
 0x148   :  { %v8544_v49 = vcombine.high %v448_v43, %v464_v44  ;;  %v8543_v55 = vcombine.low %v448_v43, %v464_v44  ;;  %v193_v44 = vld [vmem:[#allocation2 + $0x240] sm:$0xff] }
 0x14a   :  { %3637 = vmatpush1.bf16.msra.mxu0 %v8285_v51  ;;  %3678 = vmatpush1.bf16.msra.mxu1 %v8287_v52  ;;  %v495_v51 = vld [vmem:[#allocation2 + $0xbb0] sm:$0xff]  ;;  %v480_v52 = vld [vmem:[#allocation2 + $0xb38] sm:$0xff] }
 0x14b   :  { %3638 = vmatprep.subr.bf16.mxu0 %v8318_v53  ;;  %3679 = vmatprep.subr.bf16.mxu1 %v8320_v54  ;;  %v496_v53 = vld [vmem:[#allocation2 + $0xbb8] sm:$0xff]  ;;  %v8541_v54 = vcombine.low %v447_v41, %v463_v42  ;;  %v8574_v57 = vcombine.high %v479_v50, %v495_v51 }
 0x14c   :  { %v8576_v58 = vcombine.high %v480_v52, %v496_v53  ;;  %v8575_v1 = vcombine.low %v480_v52, %v496_v53  ;;  %v225_v53 = vld [vmem:[#allocation2 + $0x340] sm:$0xff] }
 0x14e   :  { %3639 = vmatpush1.bf16.msra.mxu0 %v8317_v61  ;;  %3680 = vmatpush1.bf16.msra.mxu1 %v8319_v62  ;;  %v527_v61 = vld [vmem:[#allocation2 + $0xcb0] sm:$0xff]  ;;  %v512_v62 = vld [vmem:[#allocation2 + $0xc38] sm:$0xff] }
 0x14f   :  { %3640 = vmatprep.subr.bf16.mxu0 %v8350_v63  ;;  %3681 = vmatprep.subr.bf16.mxu1 %v8352_v0  ;;  %v528_v63 = vld [vmem:[#allocation2 + $0xcb8] sm:$0xff]  ;;  %v8573_v0 = vcombine.low %v479_v50, %v495_v51  ;;  %v8606_v2 = vcombine.high %v511_v60, %v527_v61 }
 0x150   :  { %v8608_v4 = vcombine.high %v512_v62, %v528_v63  ;;  %v8607_v10 = vcombine.low %v512_v62, %v528_v63  ;;  %v257_v63 = vld [vmem:[#allocation2 + $0x440] sm:$0xff] }
 0x152   :  { %3641 = vmatpush1.bf16.msra.mxu0 %v8349_v6  ;;  %3682 = vmatpush1.bf16.msra.mxu1 %v8351_v7  ;;  %v559_v6 = vld [vmem:[#allocation2 + $0xdb0] sm:$0xff]  ;;  %v544_v7 = vld [vmem:[#allocation2 + $0xd38] sm:$0xff] }
 0x153   :  { %3642 = vmatprep.subr.bf16.mxu0 %v8382_v8  ;;  %3683 = vmatprep.subr.bf16.mxu1 %v8384_v9  ;;  %v560_v8 = vld [vmem:[#allocation2 + $0xdb8] sm:$0xff]  ;;  %v8605_v9 = vcombine.low %v511_v60, %v527_v61  ;;  %v8638_v11 = vcombine.high %v543_v5, %v559_v6 }
 0x154   :  { %v8640_v12 = vcombine.high %v544_v7, %v560_v8  ;;  %v8639_v18 = vcombine.low %v544_v7, %v560_v8  ;;  %v289_v8 = vld [vmem:[#allocation2 + $0x540] sm:$0xff] }
 0x156   :  { %3643 = vmatpush1.bf16.msra.mxu0 %v8381_v14  ;;  %3684 = vmatpush1.bf16.msra.mxu1 %v8383_v15  ;;  %v591_v14 = vld [vmem:[#allocation2 + $0xeb0] sm:$0xff]  ;;  %v576_v15 = vld [vmem:[#allocation2 + $0xe38] sm:$0xff] }
 0x157   :  { %3644 = vmatprep.subr.bf16.mxu0 %v8414_v16  ;;  %3685 = vmatprep.subr.bf16.mxu1 %v8416_v17  ;;  %v592_v16 = vld [vmem:[#allocation2 + $0xeb8] sm:$0xff]  ;;  %v8637_v17 = vcombine.low %v543_v5, %v559_v6  ;;  %v8670_v19 = vcombine.high %v575_v13, %v591_v14 }
 0x158   :  { %v8672_v20 = vcombine.high %v576_v15, %v592_v16  ;;  %v8671_v27 = vcombine.low %v576_v15, %v592_v16  ;;  %v321_v16 = vld [vmem:[#allocation2 + $0x640] sm:$0xff] }
 0x15a   :  { %3645 = vmatpush1.bf16.msra.mxu0 %v8413_v23  ;;  %3686 = vmatpush1.bf16.msra.mxu1 %v8415_v24  ;;  %v623_v23 = vld [vmem:[#allocation2 + $0xfb0] sm:$0xff]  ;;  %v608_v24 = vld [vmem:[#allocation2 + $0xf38] sm:$0xff] }
 0x15b   :  { %3646 = vmatprep.subr.bf16.mxu0 %v8446_v25  ;;  %3687 = vmatprep.subr.bf16.mxu1 %v8448_v26  ;;  %v624_v25 = vld [vmem:[#allocation2 + $0xfb8] sm:$0xff]  ;;  %v8669_v26 = vcombine.low %v575_v13, %v591_v14  ;;  %v8702_v28 = vcombine.high %v607_v22, %v623_v23 }
 0x15c   :  { %v8704_v29 = vcombine.high %v608_v24, %v624_v25  ;;  %v8703_v33 = vcombine.low %v608_v24, %v624_v25 }
 0x15e   :  { %3647 = vmatpush1.bf16.msra.mxu0 %v8445_v31  ;;  %3688 = vmatpush1.bf16.msra.mxu1 %v8447_v56  ;;  %v145_v31 = vld [vmem:[#allocation2 + $0xc0] sm:$0xff]  ;;  %v130_v56 = vld [vmem:[#allocation2 + $0x48] sm:$0xff] }
 0x15f   :  { %3648 = vmatprep.subr.bf16.mxu0 %v8478_v59  ;;  %3689 = vmatprep.subr.bf16.mxu1 %v8480_v32  ;;  %v146_v59 = vld [vmem:[#allocation2 + $0xc8] sm:$0xff]  ;;  %v8701_v32 = vcombine.low %v607_v22, %v623_v23  ;;  %v8226_v34 = vcombine.high %v129_v30, %v145_v31 }
 0x160   :  { %v8228_v35 = vcombine.high %v130_v56, %v146_v59  ;;  %v8227_v41 = vcombine.low %v130_v56, %v146_v59 }
 0x162   :  { %3649 = vmatpush1.bf16.msra.mxu0 %v8477_v37  ;;  %3690 = vmatpush1.bf16.msra.mxu1 %v8479_v38  ;;  %v177_v37 = vld [vmem:[#allocation2 + $0x1c0] sm:$0xff]  ;;  %v162_v38 = vld [vmem:[#allocation2 + $0x148] sm:$0xff] }
 0x163   :  { %3650 = vmatprep.subr.bf16.mxu0 %v8510_v39  ;;  %3691 = vmatprep.subr.bf16.mxu1 %v8512_v40  ;;  %v178_v39 = vld [vmem:[#allocation2 + $0x1c8] sm:$0xff]  ;;  %v8225_v40 = vcombine.low %v129_v30, %v145_v31  ;;  %v8258_v42 = vcombine.high %v161_v36, %v177_v37 }
 0x164   :  { %v8260_v43 = vcombine.high %v162_v38, %v178_v39  ;;  %v8259_v50 = vcombine.low %v162_v38, %v178_v39  ;;  %v370_v30 = vld [vmem:[#allocation2 + $0x7c8] sm:$0xff]  ;;  %v385_v38 = vld [vmem:[#allocation2 + $0x840] sm:$0xff] }
 0x165   :  { %v401_v39 = vld [vmem:[#allocation2 + $0x8c0] sm:$0xff] }
 0x166   :  { %3651 = vmatpush1.bf16.msra.mxu0 %v8509_v45  ;;  %3692 = vmatpush1.bf16.msra.mxu1 %v8511_v47  ;;  %v209_v45 = vld [vmem:[#allocation2 + $0x2c0] sm:$0xff]  ;;  %v194_v47 = vld [vmem:[#allocation2 + $0x248] sm:$0xff] }
 0x167   :  { %3652 = vmatprep.subr.bf16.mxu0 %v8542_v48  ;;  %3693 = vmatprep.subr.bf16.mxu1 %v8544_v49  ;;  %v210_v48 = vld [vmem:[#allocation2 + $0x2c8] sm:$0xff]  ;;  %v8257_v49 = vcombine.low %v161_v36, %v177_v37  ;;  %v8290_v51 = vcombine.high %v193_v44, %v209_v45 }
 0x168   :  { %v8292_v52 = vcombine.high %v194_v47, %v210_v48  ;;  %v8291_v60 = vcombine.low %v194_v47, %v210_v48  ;;  %v417_v48 = vld [vmem:[#allocation2 + $0x940] sm:$0xff] }
 0x16a   :  { %3653 = vmatpush1.bf16.msra.mxu0 %v8541_v54  ;;  %3694 = vmatpush1.bf16.msra.mxu1 %v8543_v55  ;;  %v241_v54 = vld [vmem:[#allocation2 + $0x3c0] sm:$0xff]  ;;  %v226_v55 = vld [vmem:[#allocation2 + $0x348] sm:$0xff] }
 0x16b   :  { %3654 = vmatprep.subr.bf16.mxu0 %v8574_v57  ;;  %3695 = vmatprep.subr.bf16.mxu1 %v8576_v58  ;;  %v242_v57 = vld [vmem:[#allocation2 + $0x3c8] sm:$0xff]  ;;  %v8289_v58 = vcombine.low %v193_v44, %v209_v45  ;;  %v8322_v61 = vcombine.high %v225_v53, %v241_v54  ;;  %v8482_v45 = vcombine.high %v385_v38, %v401_v39 }
 0x16c   :  { %v8324_v62 = vcombine.high %v226_v55, %v242_v57  ;;  %v8323_v5 = vcombine.low %v226_v55, %v242_v57  ;;  %v449_v57 = vld [vmem:[#allocation2 + $0xa40] sm:$0xff] }
 0x16e   :  { %3655 = vmatpush1.bf16.msra.mxu0 %v8573_v0  ;;  %3696 = vmatpush1.bf16.msra.mxu1 %v8575_v1  ;;  %v273_v0 = vld [vmem:[#allocation2 + $0x4c0] sm:$0xff]  ;;  %v258_v1 = vld [vmem:[#allocation2 + $0x448] sm:$0xff] }
 0x16f   :  { %3656 = vmatprep.subr.bf16.mxu0 %v8606_v2  ;;  %3697 = vmatprep.subr.bf16.mxu1 %v8608_v4  ;;  %v274_v2 = vld [vmem:[#allocation2 + $0x4c8] sm:$0xff]  ;;  %v8321_v4 = vcombine.low %v225_v53, %v241_v54  ;;  %v8354_v6 = vcombine.high %v257_v63, %v273_v0 }
 0x170   :  { %v8356_v7 = vcombine.high %v258_v1, %v274_v2  ;;  %v8355_v13 = vcombine.low %v258_v1, %v274_v2  ;;  %v481_v2 = vld [vmem:[#allocation2 + $0xb40] sm:$0xff] }
 0x172   :  { %3657 = vmatpush1.bf16.msra.mxu0 %v8605_v9  ;;  %3698 = vmatpush1.bf16.msra.mxu1 %v8607_v10  ;;  %v305_v9 = vld [vmem:[#allocation2 + $0x5c0] sm:$0xff]  ;;  %v290_v10 = vld [vmem:[#allocation2 + $0x548] sm:$0xff] }
 0x173   :  { %3658 = vmatprep.subr.bf16.mxu0 %v8638_v11  ;;  %3699 = vmatprep.subr.bf16.mxu1 %v8640_v12  ;;  %v306_v11 = vld [vmem:[#allocation2 + $0x5c8] sm:$0xff]  ;;  %v8353_v12 = vcombine.low %v257_v63, %v273_v0  ;;  %v8386_v14 = vcombine.high %v289_v8, %v305_v9 }
 0x174   :  { %v8388_v15 = vcombine.high %v290_v10, %v306_v11  ;;  %v8387_v22 = vcombine.low %v290_v10, %v306_v11  ;;  %v513_v11 = vld [vmem:[#allocation2 + $0xc40] sm:$0xff] }
 0x176   :  { %3659 = vmatpush1.bf16.msra.mxu0 %v8637_v17  ;;  %3700 = vmatpush1.bf16.msra.mxu1 %v8639_v18  ;;  %v337_v17 = vld [vmem:[#allocation2 + $0x6c0] sm:$0xff]  ;;  %v322_v18 = vld [vmem:[#allocation2 + $0x648] sm:$0xff] }
 0x177   :  { %3660 = vmatprep.subr.bf16.mxu0 %v8670_v19  ;;  %3701 = vmatprep.subr.bf16.mxu1 %v8672_v20  ;;  %v338_v19 = vld [vmem:[#allocation2 + $0x6c8] sm:$0xff]  ;;  %v8385_v20 = vcombine.low %v289_v8, %v305_v9  ;;  %v8418_v23 = vcombine.high %v321_v16, %v337_v17  ;;  %v8417_v59 = vcombine.low %v321_v16, %v337_v17 }
 0x178   :  { %v8420_v25 = vcombine.high %v322_v18, %v338_v19 }
 0x17a   :  { %3661 = vmatpush1.bf16.msra.mxu0 %v8669_v26  ;;  %3702 = vmatpush1.bf16.msra.mxu1 %v8671_v27  ;;  %v353_v26 = vld [vmem:[#allocation2 + $0x740] sm:$0xff] }
 0x17b   :  { %3662 = vmatprep.subr.bf16.mxu0 %v8702_v28  ;;  %3703 = vmatprep.subr.bf16.mxu1 %v8704_v29  ;;  %v369_v27 = vld [vmem:[#allocation2 + $0x7c0] sm:$0xff]  ;;  %v354_v29 = vld [vmem:[#allocation2 + $0x748] sm:$0xff] }
 0x17c   :  { %v8452_v37 = vcombine.high %v354_v29, %v370_v30  ;;  %v8451_v44 = vcombine.low %v354_v29, %v370_v30  ;;  %v577_v30 = vld [vmem:[#allocation2 + $0xe40] sm:$0xff] }
 0x17e   :  { %3663 = vmatpush1.bf16.msra.mxu0 %v8701_v32  ;;  %3704 = vmatpush1.bf16.msra.mxu1 %v8703_v33 }
 0x17f   :  { %3714 = vmatprep.subr.bf16.mxu0 %v8226_v34  ;;  %3755 = vmatprep.subr.bf16.mxu1 %v8228_v35  ;;  %v8419_v34 = vcombine.low %v322_v18, %v338_v19  ;;  %v8450_v35 = vcombine.high %v353_v26, %v369_v27  ;;  %v545_v19 = vld [vmem:[#allocation2 + $0xd40] sm:$0xff] }
 0x181   :  { %3665 = vmatmul.mubr.bf16.vlgmr.msra.gmra.mrb[12].mxu0 %v9703_v21  ;;  %3706 = vmatmul.mubr.bf16.vlgmr.msra.gmra.mrb[12].mxu1 %v9703_v21 }
 0x182   :  { %3715 = vmatpush1.bf16.msra.mxu0 %v8225_v40  ;;  %3756 = vmatpush1.bf16.msra.mxu1 %v8227_v41  ;;  %v386_v41 = vld [vmem:[#allocation2 + $0x848] sm:$0xff] }
 0x183   :  { %3716 = vmatprep.subr.bf16.mxu0 %v8258_v42  ;;  %3757 = vmatprep.subr.bf16.mxu1 %v8260_v43  ;;  %v402_v42 = vld [vmem:[#allocation2 + $0x8c8] sm:$0xff]  ;;  %v8449_v43 = vcombine.low %v353_v26, %v369_v27 }
 0x184   :  { %3746 = vmatprep.mubr.bf16.mxu0 %v9697_v3  ;;  %3787 = vmatprep.mubr.bf16.mxu1 %v9697_v3  ;;  %v8484_v47 = vcombine.high %v386_v41, %v402_v42  ;;  %v8483_v53 = vcombine.low %v386_v41, %v402_v42  ;;  %v626_v41 = vld [vmem:[#allocation2 + $0xfc8] sm:$0xff] }
 0x186   :  { %3717 = vmatpush1.bf16.msra.mxu0 %v8257_v49  ;;  %3758 = vmatpush1.bf16.msra.mxu1 %v8259_v50  ;;  %v433_v49 = vld [vmem:[#allocation2 + $0x9c0] sm:$0xff]  ;;  %v418_v50 = vld [vmem:[#allocation2 + $0x948] sm:$0xff] }
 0x187   :  { %3718 = vmatprep.subr.bf16.mxu0 %v8290_v51  ;;  %3759 = vmatprep.subr.bf16.mxu1 %v8292_v52  ;;  %v434_v51 = vld [vmem:[#allocation2 + $0x9c8] sm:$0xff]  ;;  %v8481_v52 = vcombine.low %v385_v38, %v401_v39  ;;  %v8514_v54 = vcombine.high %v417_v48, %v433_v49  ;;  %v609_v38 = vld [vmem:[#allocation2 + $0xf40] sm:$0xff] }
 0x188   :  { %v8516_v55 = vcombine.high %v418_v50, %v434_v51  ;;  %v8515_v63 = vcombine.low %v418_v50, %v434_v51  ;;  %v625_v39 = vld [vmem:[#allocation2 + $0xfc0] sm:$0xff]  ;;  %v148_v50 = vld [vmem:[#allocation2 + $0xd8] sm:$0xff] }
 0x189   :  { %v8705_v51 = vcombine.low %v609_v38, %v625_v39 }
 0x18a   :  { %3719 = vmatpush1.bf16.msra.mxu0 %v8289_v58  ;;  %3760 = vmatpush1.bf16.msra.mxu1 %v8291_v60  ;;  %v465_v58 = vld [vmem:[#allocation2 + $0xac0] sm:$0xff]  ;;  %v450_v60 = vld [vmem:[#allocation2 + $0xa48] sm:$0xff] }
 0x18b   :  { %3720 = vmatprep.subr.bf16.mxu0 %v8322_v61  ;;  %3761 = vmatprep.subr.bf16.mxu1 %v8324_v62  ;;  %v466_v61 = vld [vmem:[#allocation2 + $0xac8] sm:$0xff]  ;;  %v8513_v62 = vcombine.low %v417_v48, %v433_v49  ;;  %v8546_v0 = vcombine.high %v449_v57, %v465_v58  ;;  %v147_v48 = vld [vmem:[#allocation2 + $0xd0] sm:$0xff]  ;;  %v132_v49 = vld [vmem:[#allocation2 + $0x58] sm:$0xff] }
 0x18c   :  { %v8548_v1 = vcombine.high %v450_v60, %v466_v61  ;;  %v8547_v8 = vcombine.low %v450_v60, %v466_v61  ;;  %v180_v60 = vld [vmem:[#allocation2 + $0x1d8] sm:$0xff] }
 0x18e   :  { %3721 = vmatpush1.bf16.msra.mxu0 %v8321_v4  ;;  %3762 = vmatpush1.bf16.msra.mxu1 %v8323_v5  ;;  %v497_v4 = vld [vmem:[#allocation2 + $0xbc0] sm:$0xff]  ;;  %v482_v5 = vld [vmem:[#allocation2 + $0xb48] sm:$0xff] }
 0x18f   :  { %3722 = vmatprep.subr.bf16.mxu0 %v8354_v6  ;;  %3763 = vmatprep.subr.bf16.mxu1 %v8356_v7  ;;  %v498_v6 = vld [vmem:[#allocation2 + $0xbc8] sm:$0xff]  ;;  %v8545_v7 = vcombine.low %v449_v57, %v465_v58  ;;  %v8578_v9 = vcombine.high %v481_v2, %v497_v4  ;;  %v179_v57 = vld [vmem:[#allocation2 + $0x1d0] sm:$0xff]  ;;  %v164_v58 = vld [vmem:[#allocation2 + $0x158] sm:$0xff] }
 0x190   :  { %v8580_v10 = vcombine.high %v482_v5, %v498_v6  ;;  %v8579_v16 = vcombine.low %v482_v5, %v498_v6  ;;  %v212_v5 = vld [vmem:[#allocation2 + $0x2d8] sm:$0xff] }
 0x192   :  { %3723 = vmatpush1.bf16.msra.mxu0 %v8353_v12  ;;  %3764 = vmatpush1.bf16.msra.mxu1 %v8355_v13  ;;  %v529_v12 = vld [vmem:[#allocation2 + $0xcc0] sm:$0xff]  ;;  %v514_v13 = vld [vmem:[#allocation2 + $0xc48] sm:$0xff] }
 0x193   :  { %3724 = vmatprep.subr.bf16.mxu0 %v8386_v14  ;;  %3765 = vmatprep.subr.bf16.mxu1 %v8388_v15  ;;  %v530_v14 = vld [vmem:[#allocation2 + $0xcc8] sm:$0xff]  ;;  %v8577_v15 = vcombine.low %v481_v2, %v497_v4  ;;  %v8610_v17 = vcombine.high %v513_v11, %v529_v12  ;;  %v211_v2 = vld [vmem:[#allocation2 + $0x2d0] sm:$0xff]  ;;  %v196_v4 = vld [vmem:[#allocation2 + $0x258] sm:$0xff] }
 0x194   :  { %v9721_v24 = vpop.f32.mrb[0].mxu0  ;;  %v9725_v31 = vpop.f32.mrb[0].mxu1  ;;  %v8612_v18 = vcombine.high %v514_v13, %v530_v14  ;;  %v8611_v26 = vcombine.low %v514_v13, %v530_v14  ;;  %v244_v13 = vld [vmem:[#allocation2 + $0x3d8] sm:$0xff] }
 0x195   :  { %v9723_v28 = vpop.f32.mrb[1].mxu0  ;;  %v9727_v32 = vpop.f32.mrb[1].mxu1 }
 0x196   :  { %v3424_v56 = vpop.f32.mrb[2].mxu0  ;;  %3725 = vmatpush1.bf16.msra.mxu0 %v8385_v20  ;;  %3766 = vmatpush1.bf16.msra.mxu1 %v8387_v22  ;;  %v3465_v36 = vpop.f32.mrb[2].mxu1  ;;  %v561_v20 = vld [vmem:[#allocation2 + $0xdc0] sm:$0xff]  ;;  %v546_v22 = vld [vmem:[#allocation2 + $0xd48] sm:$0xff] }
 0x197   :  { %v3425_v33 = vpop.f32.mrb[3].mxu0  ;;  %3726 = vmatprep.subr.bf16.mxu0 %v8418_v23  ;;  %3767 = vmatprep.subr.bf16.mxu1 %v8420_v25  ;;  %v3466_v40 = vpop.f32.mrb[3].mxu1  ;;  %v562_v23 = vld [vmem:[#allocation2 + $0xdc8] sm:$0xff]  ;;  %v8609_v25 = vcombine.low %v513_v11, %v529_v12  ;;  %v8642_v27 = vcombine.high %v545_v19, %v561_v20  ;;  %v593_v56 = vld [vmem:[#allocation2 + $0xec0] sm:$0xff]  ;;  %v243_v11 = vld [vmem:[#allocation2 + $0x3d0] sm:$0xff] }
 0x198   :  { %v8644_v29 = vcombine.high %v546_v22, %v562_v23  ;;  %v594_v33 = vld [vmem:[#allocation2 + $0xec8] sm:$0xff]  ;;  %v8674_v36 = vcombine.high %v577_v30, %v593_v56  ;;  %v8673_v42 = vcombine.low %v577_v30, %v593_v56  ;;  %v228_v12 = vld [vmem:[#allocation2 + $0x358] sm:$0xff]  ;;  %v307_v30 = vld [vmem:[#allocation2 + $0x5d0] sm:$0xff] }
 0x199   :  { %v610_v40 = vld [vmem:[#allocation2 + $0xf48] sm:$0xff]  ;;  %v292_v56 = vld [vmem:[#allocation2 + $0x558] sm:$0xff] }
 0x19a   :  { %3727 = vmatpush1.bf16.msra.mxu0 %v8417_v59  ;;  %3768 = vmatpush1.bf16.msra.mxu1 %v8419_v34  ;;  %v578_v59 = vld [vmem:[#allocation2 + $0xe48] sm:$0xff]  ;;  %v8641_v34 = vcombine.low %v545_v19, %v561_v20  ;;  %v275_v19 = vld [vmem:[#allocation2 + $0x4d0] sm:$0xff]  ;;  %v260_v20 = vld [vmem:[#allocation2 + $0x458] sm:$0xff] }
 0x19b   :  { %3728 = vmatprep.subr.bf16.mxu0 %v8450_v35  ;;  %3769 = vmatprep.subr.bf16.mxu1 %v8452_v37  ;;  %v8643_v35 = vcombine.low %v546_v22, %v562_v23  ;;  %v8676_v37 = vcombine.high %v578_v59, %v594_v33  ;;  %v276_v22 = vld [vmem:[#allocation2 + $0x4d8] sm:$0xff] }
 0x19e   :  { %3729 = vmatpush1.bf16.msra.mxu0 %v8449_v43  ;;  %3770 = vmatpush1.bf16.msra.mxu1 %v8451_v44  ;;  %v8675_v43 = vcombine.low %v578_v59, %v594_v33  ;;  %v8706_v44 = vcombine.high %v609_v38, %v625_v39  ;;  %v308_v59 = vld [vmem:[#allocation2 + $0x5d8] sm:$0xff]  ;;  %v339_v38 = vld [vmem:[#allocation2 + $0x6d0] sm:$0xff] }
 0x19f   :  { %3730 = vmatprep.subr.bf16.mxu0 %v8482_v45  ;;  %3771 = vmatprep.subr.bf16.mxu1 %v8484_v47  ;;  %v8708_v45 = vcombine.high %v610_v40, %v626_v41  ;;  %v131_v47 = vld [vmem:[#allocation2 + $0x50] sm:$0xff]  ;;  %v324_v39 = vld [vmem:[#allocation2 + $0x658] sm:$0xff] }
 0x1a0   :  { %v8229_v61 = vcombine.low %v131_v47, %v147_v48 }
 0x1a2   :  { %3731 = vmatpush1.bf16.msra.mxu0 %v8481_v52  ;;  %3772 = vmatpush1.bf16.msra.mxu1 %v8483_v53  ;;  %v8707_v52 = vcombine.low %v610_v40, %v626_v41  ;;  %v8230_v53 = vcombine.high %v131_v47, %v147_v48  ;;  %v340_v40 = vld [vmem:[#allocation2 + $0x6d8] sm:$0xff]  ;;  %v355_v47 = vld [vmem:[#allocation2 + $0x750] sm:$0xff] }
 0x1a3   :  { %3732 = vmatprep.subr.bf16.mxu0 %v8514_v54  ;;  %3773 = vmatprep.subr.bf16.mxu1 %v8516_v55  ;;  %v8232_v54 = vcombine.high %v132_v49, %v148_v50  ;;  %v163_v55 = vld [vmem:[#allocation2 + $0x150] sm:$0xff] }
 0x1a4   :  { %v8261_v6 = vcombine.low %v163_v55, %v179_v57  ;;  %v371_v48 = vld [vmem:[#allocation2 + $0x7d0] sm:$0xff] }
 0x1a6   :  { %3733 = vmatpush1.bf16.msra.mxu0 %v8513_v62  ;;  %3774 = vmatpush1.bf16.msra.mxu1 %v8515_v63  ;;  %v8231_v62 = vcombine.low %v132_v49, %v148_v50  ;;  %v8262_v63 = vcombine.high %v163_v55, %v179_v57  ;;  %v356_v50 = vld [vmem:[#allocation2 + $0x758] sm:$0xff] }
 0x1a7   :  { %3734 = vmatprep.subr.bf16.mxu0 %v8546_v0  ;;  %3775 = vmatprep.subr.bf16.mxu1 %v8548_v1  ;;  %v8264_v0 = vcombine.high %v164_v58, %v180_v60  ;;  %v195_v1 = vld [vmem:[#allocation2 + $0x250] sm:$0xff] }
 0x1a8   :  { %v8293_v14 = vcombine.low %v195_v1, %v211_v2 }
 0x1aa   :  { %3735 = vmatpush1.bf16.msra.mxu0 %v8545_v7  ;;  %3776 = vmatpush1.bf16.msra.mxu1 %v8547_v8  ;;  %v8263_v7 = vcombine.low %v164_v58, %v180_v60  ;;  %v8294_v8 = vcombine.high %v195_v1, %v211_v2  ;;  %v8423_v58 = vcombine.low %v324_v39, %v340_v40  ;;  %v388_v2 = vld [vmem:[#allocation2 + $0x858] sm:$0xff] }
 0x1ab   :  { %3736 = vmatprep.subr.bf16.mxu0 %v8578_v9  ;;  %3777 = vmatprep.subr.bf16.mxu1 %v8580_v10  ;;  %v8296_v9 = vcombine.high %v196_v4, %v212_v5  ;;  %v227_v10 = vld [vmem:[#allocation2 + $0x350] sm:$0xff]  ;;  %v8454_v60 = vcombine.high %v355_v47, %v371_v48 }
 0x1ac   :  { %v8325_v23 = vcombine.low %v227_v10, %v243_v11 }
 0x1ae   :  { %3737 = vmatpush1.bf16.msra.mxu0 %v8577_v15  ;;  %3778 = vmatpush1.bf16.msra.mxu1 %v8579_v16  ;;  %v8295_v15 = vcombine.low %v196_v4, %v212_v5  ;;  %v8326_v16 = vcombine.high %v227_v10, %v243_v11  ;;  %v404_v4 = vld [vmem:[#allocation2 + $0x8d8] sm:$0xff]  ;;  %v8453_v5 = vcombine.low %v355_v47, %v371_v48  ;;  %v435_v10 = vld [vmem:[#allocation2 + $0x9d0] sm:$0xff] }
 0x1af   :  { %3738 = vmatprep.subr.bf16.mxu0 %v8610_v17  ;;  %3779 = vmatprep.subr.bf16.mxu1 %v8612_v18  ;;  %v8328_v17 = vcombine.high %v228_v12, %v244_v13  ;;  %v259_v18 = vld [vmem:[#allocation2 + $0x450] sm:$0xff]  ;;  %v420_v11 = vld [vmem:[#allocation2 + $0x958] sm:$0xff] }
 0x1b0   :  { %v8357_v33 = vcombine.low %v259_v18, %v275_v19  ;;  %v563_v47 = vld [vmem:[#allocation2 + $0xdd0] sm:$0xff]  ;;  %v548_v48 = vld [vmem:[#allocation2 + $0xd58] sm:$0xff] }
 0x1b2   :  { %3739 = vmatpush1.bf16.msra.mxu0 %v8609_v25  ;;  %3780 = vmatpush1.bf16.msra.mxu1 %v8611_v26  ;;  %v8327_v25 = vcombine.low %v228_v12, %v244_v13  ;;  %v8358_v26 = vcombine.high %v259_v18, %v275_v19  ;;  %v436_v12 = vld [vmem:[#allocation2 + $0x9d8] sm:$0xff]  ;;  %v467_v18 = vld [vmem:[#allocation2 + $0xad0] sm:$0xff] }
 0x1b3   :  { %3740 = vmatprep.subr.bf16.mxu0 %v8642_v27  ;;  %3781 = vmatprep.subr.bf16.mxu1 %v8644_v29  ;;  %v8360_v27 = vcombine.high %v260_v20, %v276_v22  ;;  %v291_v29 = vld [vmem:[#allocation2 + $0x550] sm:$0xff]  ;;  %v452_v19 = vld [vmem:[#allocation2 + $0xa58] sm:$0xff] }
 0x1b4   :  { %v8389_v41 = vcombine.low %v291_v29, %v307_v30 }
 0x1b6   :  { %3741 = vmatpush1.bf16.msra.mxu0 %v8641_v34  ;;  %3782 = vmatpush1.bf16.msra.mxu1 %v8643_v35  ;;  %v8359_v34 = vcombine.low %v260_v20, %v276_v22  ;;  %v8390_v35 = vcombine.high %v291_v29, %v307_v30  ;;  %v468_v20 = vld [vmem:[#allocation2 + $0xad8] sm:$0xff]  ;;  %v499_v29 = vld [vmem:[#allocation2 + $0xbd0] sm:$0xff] }
 0x1b7   :  { %3742 = vmatprep.subr.bf16.mxu0 %v8674_v36  ;;  %3783 = vmatprep.subr.bf16.mxu1 %v8676_v37  ;;  %v8392_v36 = vcombine.high %v292_v56, %v308_v59  ;;  %v323_v37 = vld [vmem:[#allocation2 + $0x650] sm:$0xff]  ;;  %v484_v30 = vld [vmem:[#allocation2 + $0xb58] sm:$0xff] }
 0x1ba   :  { %3743 = vmatpush1.bf16.msra.mxu0 %v8673_v42  ;;  %3784 = vmatpush1.bf16.msra.mxu1 %v8675_v43  ;;  %v8391_v42 = vcombine.low %v292_v56, %v308_v59  ;;  %v8422_v43 = vcombine.high %v323_v37, %v339_v38  ;;  %v500_v56 = vld [vmem:[#allocation2 + $0xbd8] sm:$0xff] }
 0x1bb   :  { %3744 = vmatprep.subr.bf16.mxu0 %v8706_v44  ;;  %3785 = vmatprep.subr.bf16.mxu1 %v8708_v45  ;;  %v8424_v45 = vcombine.high %v324_v39, %v340_v40  ;;  %v532_v39 = vld [vmem:[#allocation2 + $0xcd8] sm:$0xff] }
 0x1be   :  { %3745 = vmatpush1.bf16.msra.mxu0 %v8705_v51  ;;  %3786 = vmatpush1.bf16.msra.mxu1 %v8707_v52  ;;  %v372_v51 = vld [vmem:[#allocation2 + $0x7d8] sm:$0xff] }
 0x1bf   :  { %3796 = vmatprep.subr.bf16.mxu0 %v8230_v53  ;;  %3837 = vmatprep.subr.bf16.mxu1 %v8232_v54  ;;  %v8421_v54 = vcombine.low %v323_v37, %v339_v38  ;;  %v531_v37 = vld [vmem:[#allocation2 + $0xcd0] sm:$0xff]  ;;  %v516_v38 = vld [vmem:[#allocation2 + $0xc58] sm:$0xff] }
 0x1c1   :  { %3747 = vmatmul.mubr.bf16.vlgmr.msra.gmra.mrb[16].mxu0 %v9703_v21  ;;  %3788 = vmatmul.mubr.bf16.vlgmr.msra.gmra.mrb[16].mxu1 %v9703_v21 }
 0x1c2   :  { %3797 = vmatpush1.bf16.msra.mxu0 %v8229_v61  ;;  %3838 = vmatpush1.bf16.msra.mxu1 %v8231_v62  ;;  %v8456_v62 = vcombine.high %v356_v50, %v372_v51 }
 0x1c3   :  { %3798 = vmatprep.subr.bf16.mxu0 %v8262_v63  ;;  %3839 = vmatprep.subr.bf16.mxu1 %v8264_v0  ;;  %v387_v63 = vld [vmem:[#allocation2 + $0x850] sm:$0xff] }
 0x1c4   :  { %3828 = vmatprep.mubr.bf16.mxu0 %v9697_v3  ;;  %3869 = vmatprep.mubr.bf16.mxu1 %v9697_v3  ;;  %v403_v0 = vld [vmem:[#allocation2 + $0x8d0] sm:$0xff] }
 0x1c5   :  { %v8485_v13 = vcombine.low %v387_v63, %v403_v0 }
 0x1c6   :  { %3799 = vmatpush1.bf16.msra.mxu0 %v8261_v6  ;;  %3840 = vmatpush1.bf16.msra.mxu1 %v8263_v7  ;;  %v8455_v6 = vcombine.low %v356_v50, %v372_v51  ;;  %v8486_v7 = vcombine.high %v387_v63, %v403_v0  ;;  %v564_v50 = vld [vmem:[#allocation2 + $0xdd8] sm:$0xff] }
 0x1c7   :  { %3800 = vmatprep.subr.bf16.mxu0 %v8294_v8  ;;  %3841 = vmatprep.subr.bf16.mxu1 %v8296_v9  ;;  %v8488_v8 = vcombine.high %v388_v2, %v404_v4  ;;  %v419_v9 = vld [vmem:[#allocation2 + $0x950] sm:$0xff]  ;;  %v8647_v0 = vcombine.low %v548_v48, %v564_v50 }
 0x1c8   :  { %v8517_v22 = vcombine.low %v419_v9, %v435_v10 }
 0x1ca   :  { %3801 = vmatpush1.bf16.msra.mxu0 %v8293_v14  ;;  %3842 = vmatpush1.bf16.msra.mxu1 %v8295_v15  ;;  %v8487_v14 = vcombine.low %v388_v2, %v404_v4  ;;  %v8518_v15 = vcombine.high %v419_v9, %v435_v10  ;;  %v611_v4 = vld [vmem:[#allocation2 + $0xf50] sm:$0xff] }
 0x1cb   :  { %3802 = vmatprep.subr.bf16.mxu0 %v8326_v16  ;;  %3843 = vmatprep.subr.bf16.mxu1 %v8328_v17  ;;  %v8520_v16 = vcombine.high %v420_v11, %v436_v12  ;;  %v451_v17 = vld [vmem:[#allocation2 + $0xa50] sm:$0xff] }
 0x1cc   :  { %v8549_v59 = vcombine.low %v451_v17, %v467_v18 }
 0x1ce   :  { %3803 = vmatpush1.bf16.msra.mxu0 %v8325_v23  ;;  %3844 = vmatpush1.bf16.msra.mxu1 %v8327_v25  ;;  %v8519_v23 = vcombine.low %v420_v11, %v436_v12  ;;  %v8550_v25 = vcombine.high %v451_v17, %v467_v18  ;;  %v133_v12 = vld [vmem:[#allocation2 + $0x60] sm:$0xff] }
 0x1cf   :  { %3804 = vmatprep.subr.bf16.mxu0 %v8358_v26  ;;  %3845 = vmatprep.subr.bf16.mxu1 %v8360_v27  ;;  %v8552_v26 = vcombine.high %v452_v19, %v468_v20  ;;  %v483_v27 = vld [vmem:[#allocation2 + $0xb50] sm:$0xff] }
 0x1d0   :  { %v8581_v40 = vcombine.low %v483_v27, %v499_v29 }
 0x1d2   :  { %3805 = vmatpush1.bf16.msra.mxu0 %v8357_v33  ;;  %3846 = vmatpush1.bf16.msra.mxu1 %v8359_v34  ;;  %v8551_v33 = vcombine.low %v452_v19, %v468_v20  ;;  %v8582_v34 = vcombine.high %v483_v27, %v499_v29  ;;  %v165_v20 = vld [vmem:[#allocation2 + $0x160] sm:$0xff] }
 0x1d3   :  { %3806 = vmatprep.subr.bf16.mxu0 %v8390_v35  ;;  %3847 = vmatprep.subr.bf16.mxu1 %v8392_v36  ;;  %v8584_v35 = vcombine.high %v484_v30, %v500_v56  ;;  %v515_v36 = vld [vmem:[#allocation2 + $0xc50] sm:$0xff] }
 0x1d4   :  { %v9733_v44 = vpop.f32.mrb[4].mxu0  ;;  %v9737_v52 = vpop.f32.mrb[4].mxu1  ;;  %v8613_v51 = vcombine.low %v515_v36, %v531_v37 }
 0x1d5   :  { %v9735_v49 = vpop.f32.mrb[5].mxu0  ;;  %v9739_v55 = vpop.f32.mrb[5].mxu1 }
 0x1d6   :  { %v3506_v53 = vpop.f32.mrb[6].mxu0  ;;  %3807 = vmatpush1.bf16.msra.mxu0 %v8389_v41  ;;  %3848 = vmatpush1.bf16.msra.mxu1 %v8391_v42  ;;  %v3547_v61 = vpop.f32.mrb[6].mxu1  ;;  %v8583_v41 = vcombine.low %v484_v30, %v500_v56  ;;  %v8614_v42 = vcombine.high %v515_v36, %v531_v37  ;;  %v197_v56 = vld [vmem:[#allocation2 + $0x260] sm:$0xff] }
 0x1d7   :  { %v3507_v57 = vpop.f32.mrb[7].mxu0  ;;  %3808 = vmatprep.subr.bf16.mxu0 %v8422_v43  ;;  %3849 = vmatprep.subr.bf16.mxu1 %v8424_v45  ;;  %v3548_v1 = vpop.f32.mrb[7].mxu1  ;;  %v8616_v43 = vcombine.high %v516_v38, %v532_v39  ;;  %v547_v45 = vld [vmem:[#allocation2 + $0xd50] sm:$0xff]  ;;  %v8615_v53 = vcombine.low %v516_v38, %v532_v39  ;;  %v580_v61 = vld [vmem:[#allocation2 + $0xe58] sm:$0xff]  ;;  %v229_v39 = vld [vmem:[#allocation2 + $0x360] sm:$0xff] }
 0x1d8   :  { %v8648_v57 = vcombine.high %v548_v48, %v564_v50  ;;  %v8645_v63 = vcombine.low %v547_v45, %v563_v47 }
 0x1da   :  { %3809 = vmatpush1.bf16.msra.mxu0 %v8421_v54  ;;  %3850 = vmatpush1.bf16.msra.mxu1 %v8423_v58  ;;  %v8646_v54 = vcombine.high %v547_v45, %v563_v47  ;;  %v579_v58 = vld [vmem:[#allocation2 + $0xe50] sm:$0xff]  ;;  %v9748_v47 = vld [vmem:[#allocation4] sm:$0xff] }
 0x1db   :  { %3810 = vmatprep.subr.bf16.mxu0 %v8454_v60  ;;  %3851 = vmatprep.subr.bf16.mxu1 %v8456_v62  ;;  %v595_v60 = vld [vmem:[#allocation2 + $0xed0] sm:$0xff]  ;;  %v596_v62 = vld [vmem:[#allocation2 + $0xed8] sm:$0xff] }
 0x1dc   :  { %v8678_v1 = vcombine.high %v579_v58, %v595_v60  ;;  %v8680_v2 = vcombine.high %v580_v61, %v596_v62  ;;  %v8679_v9 = vcombine.low %v580_v61, %v596_v62  ;;  %v262_v61 = vld [vmem:[#allocation2 + $0x468] sm:$0xff] }
 0x1dd   :  { %v278_v62 = vld [vmem:[#allocation2 + $0x4e8] sm:$0xff] }
 0x1de   :  { %3811 = vmatpush1.bf16.msra.mxu0 %v8453_v5  ;;  %3852 = vmatpush1.bf16.msra.mxu1 %v8455_v6  ;;  %v627_v5 = vld [vmem:[#allocation2 + $0xfd0] sm:$0xff]  ;;  %v612_v6 = vld [vmem:[#allocation2 + $0xf58] sm:$0xff] }
 0x1df   :  { %3812 = vmatprep.subr.bf16.mxu0 %v8486_v7  ;;  %3853 = vmatprep.subr.bf16.mxu1 %v8488_v8  ;;  %v628_v7 = vld [vmem:[#allocation2 + $0xfd8] sm:$0xff]  ;;  %v8677_v8 = vcombine.low %v579_v58, %v595_v60  ;;  %v8710_v10 = vcombine.high %v611_v4, %v627_v5  ;;  %v9754_v58 = vsub.s32 2, %v9684_v46  ;;  %v9757_v60 = vsub.s32 3, %v9684_v46 }
 0x1e0   :  { %v8712_v11 = vcombine.high %v612_v6, %v628_v7  ;;  %v8711_v17 = vcombine.low %v612_v6, %v628_v7  ;;  %v293_v6 = vld [vmem:[#allocation2 + $0x560] sm:$0xff] }
 0x1e1   :  { %v309_v7 = vld [vmem:[#allocation2 + $0x5e0] sm:$0xff] }
 0x1e2   :  { %3813 = vmatpush1.bf16.msra.mxu0 %v8485_v13  ;;  %3854 = vmatpush1.bf16.msra.mxu1 %v8487_v14  ;;  %v149_v13 = vld [vmem:[#allocation2 + $0xe0] sm:$0xff]  ;;  %v134_v14 = vld [vmem:[#allocation2 + $0x68] sm:$0xff] }
 0x1e3   :  { %3814 = vmatprep.subr.bf16.mxu0 %v8518_v15  ;;  %3855 = vmatprep.subr.bf16.mxu1 %v8520_v16  ;;  %v150_v15 = vld [vmem:[#allocation2 + $0xe8] sm:$0xff]  ;;  %v8709_v16 = vcombine.low %v611_v4, %v627_v5  ;;  %v8234_v18 = vcombine.high %v133_v12, %v149_v13  ;;  %v8364_v5 = vcombine.high %v262_v61, %v278_v62 }
 0x1e4   :  { %v8236_v19 = vcombine.high %v134_v14, %v150_v15  ;;  %v8235_v27 = vcombine.low %v134_v14, %v150_v15  ;;  %v9768_v14 = vld [vmem:[#allocation4 + $0x8] sm:$0xff]  ;;  %v8363_v15 = vcombine.low %v262_v61, %v278_v62 }
 0x1e6   :  { %3815 = vmatpush1.bf16.msra.mxu0 %v8517_v22  ;;  %3856 = vmatpush1.bf16.msra.mxu1 %v8519_v23  ;;  %v181_v22 = vld [vmem:[#allocation2 + $0x1e0] sm:$0xff]  ;;  %v166_v23 = vld [vmem:[#allocation2 + $0x168] sm:$0xff] }
 0x1e7   :  { %3816 = vmatprep.subr.bf16.mxu0 %v8550_v25  ;;  %3857 = vmatprep.subr.bf16.mxu1 %v8552_v26  ;;  %v182_v25 = vld [vmem:[#allocation2 + $0x1e8] sm:$0xff]  ;;  %v8233_v26 = vcombine.low %v133_v12, %v149_v13  ;;  %v8266_v29 = vcombine.high %v165_v20, %v181_v22 }
 0x1e8   :  { %v8268_v30 = vcombine.high %v166_v23, %v182_v25  ;;  %v8267_v36 = vcombine.low %v166_v23, %v182_v25  ;;  %v326_v25 = vld [vmem:[#allocation2 + $0x668] sm:$0xff] }
 0x1ea   :  { %3817 = vmatpush1.bf16.msra.mxu0 %v8549_v59  ;;  %3858 = vmatpush1.bf16.msra.mxu1 %v8551_v33  ;;  %v213_v59 = vld [vmem:[#allocation2 + $0x2e0] sm:$0xff]  ;;  %v198_v33 = vld [vmem:[#allocation2 + $0x268] sm:$0xff] }
 0x1eb   :  { %3818 = vmatprep.subr.bf16.mxu0 %v8582_v34  ;;  %3859 = vmatprep.subr.bf16.mxu1 %v8584_v35  ;;  %v214_v34 = vld [vmem:[#allocation2 + $0x2e8] sm:$0xff]  ;;  %v8265_v35 = vcombine.low %v165_v20, %v181_v22  ;;  %v8298_v37 = vcombine.high %v197_v56, %v213_v59  ;;  %v8297_v45 = vcombine.low %v197_v56, %v213_v59  ;;  %v341_v20 = vld [vmem:[#allocation2 + $0x6e0] sm:$0xff] }
 0x1ec   :  { %v8300_v38 = vcombine.high %v198_v33, %v214_v34  ;;  %v8299_v48 = vcombine.low %v198_v33, %v214_v34 }
 0x1ee   :  { %3819 = vmatpush1.bf16.msra.mxu0 %v8581_v40  ;;  %3860 = vmatpush1.bf16.msra.mxu1 %v8583_v41  ;;  %v245_v40 = vld [vmem:[#allocation2 + $0x3e0] sm:$0xff]  ;;  %v230_v41 = vld [vmem:[#allocation2 + $0x368] sm:$0xff] }
 0x1ef   :  { %3820 = vmatprep.subr.bf16.mxu0 %v8614_v42  ;;  %3861 = vmatprep.subr.bf16.mxu1 %v8616_v43  ;;  %v246_v42 = vld [vmem:[#allocation2 + $0x3e8] sm:$0xff]  ;;  %v9746_v43 = vsub.s32 0, %v9684_v46  ;;  %v8330_v50 = vcombine.high %v229_v39, %v245_v40 }
 0x1f2   :  { %3821 = vmatpush1.bf16.msra.mxu0 %v8613_v51  ;;  %3862 = vmatpush1.bf16.msra.mxu1 %v8615_v53  ;;  %v9751_v51 = vsub.s32 1, %v9684_v46  ;;  %v8332_v53 = vcombine.high %v230_v41, %v246_v42 }
 0x1f3   :  { %3822 = vmatprep.subr.bf16.mxu0 %v8646_v54  ;;  %3863 = vmatprep.subr.bf16.mxu1 %v8648_v57  ;;  %v261_v54 = vld [vmem:[#allocation2 + $0x460] sm:$0xff] }
 0x1f4   :  { %v277_v57 = vld [vmem:[#allocation2 + $0x4e0] sm:$0xff]  ;;  %v648_v4 = vrot.slane %v9748_v47, %v9751_v51 }
 0x1f5   :  { %v8361_v13 = vcombine.low %v261_v54, %v277_v57 }
 0x1f6   :  { %3823 = vmatpush1.bf16.msra.mxu0 %v8645_v63  ;;  %3864 = vmatpush1.bf16.msra.mxu1 %v8647_v0  ;;  %v644_v63 = vrot.slane %v9748_v47, %v9746_v43  ;;  %v8329_v0 = vcombine.low %v229_v39, %v245_v40 }
 0x1f7   :  { %3824 = vmatprep.subr.bf16.mxu0 %v8678_v1  ;;  %3865 = vmatprep.subr.bf16.mxu1 %v8680_v2  ;;  %v8331_v1 = vcombine.low %v230_v41, %v246_v42  ;;  %v8362_v2 = vcombine.high %v261_v54, %v277_v57  ;;  %v358_v42 = vld [vmem:[#allocation2 + $0x768] sm:$0xff] }
 0x1f8   :  { %v3421_v12 = vadd.f32 %v9721_v24, %v644_v63  ;;  %v676_v24 = vrot.slane %v9768_v14, %v9746_v43 }
 0x1fa   :  { %3825 = vmatpush1.bf16.msra.mxu0 %v8677_v8  ;;  %3866 = vmatpush1.bf16.msra.mxu1 %v8679_v9  ;;  %v652_v8 = vrot.slane %v9748_v47, %v9754_v58  ;;  %v656_v9 = vrot.slane %v9748_v47, %v9757_v60 }
 0x1fb   :  { %3826 = vmatprep.subr.bf16.mxu0 %v8710_v10  ;;  %3867 = vmatprep.subr.bf16.mxu1 %v8712_v11  ;;  %v294_v10 = vld [vmem:[#allocation2 + $0x568] sm:$0xff] }
 0x1fc   :  { %v310_v11 = vld [vmem:[#allocation2 + $0x5e8] sm:$0xff]  ;;  %v3462_v22 = vadd.f32 %v9725_v31, %v652_v8  ;;  %v3464_v23 = vadd.f32 %v9727_v32, %v656_v9  ;;  %v688_v31 = vrot.slane %v9768_v14, %v9757_v60  ;;  %v389_v9 = vld [vmem:[#allocation2 + $0x860] sm:$0xff] }
 0x1fd   :  { %v8395_v32 = vcombine.low %v294_v10, %v310_v11 }
 0x1fe   :  { %3827 = vmatpush1.bf16.msra.mxu0 %v8709_v16  ;;  %3868 = vmatpush1.bf16.msra.mxu1 %v8711_v17  ;;  %v8394_v16 = vcombine.high %v293_v6, %v309_v7  ;;  %v3423_v17 = vadd.f32 %v9723_v28, %v648_v4  ;;  %v680_v28 = vrot.slane %v9768_v14, %v9751_v51 }
 0x1ff   :  { %3878 = vmatprep.subr.bf16.mxu0 %v8234_v18  ;;  %3919 = vmatprep.subr.bf16.mxu1 %v8236_v19  ;;  %v8396_v18 = vcombine.high %v294_v10, %v310_v11  ;;  %v325_v19 = vld [vmem:[#allocation2 + $0x660] sm:$0xff] }
 0x200   :  { %v8426_v56 = vcombine.high %v325_v19, %v341_v20  ;;  %v4043_v59 = vmax.f32 %v3423_v17, 0.0  ;;  %v8425_v61 = vcombine.low %v325_v19, %v341_v20  ;;  %v405_v10 = vld [vmem:[#allocation2 + $0x8e0] sm:$0xff]  ;;  %v390_v17 = vld [vmem:[#allocation2 + $0x868] sm:$0xff] }
 0x201   :  { %3829 = vmatmul.mubr.bf16.vlgmr.msra.gmra.mrb[20].mxu0 %v9703_v21  ;;  %3870 = vmatmul.mubr.bf16.vlgmr.msra.gmra.mrb[20].mxu1 %v9703_v21 }
 0x202   :  { %3879 = vmatpush1.bf16.msra.mxu0 %v8233_v26  ;;  %3920 = vmatpush1.bf16.msra.mxu1 %v8235_v27  ;;  %v342_v26 = vld [vmem:[#allocation2 + $0x6e8] sm:$0xff]  ;;  %v4042_v27 = vmax.f32 %v3421_v12, 0.0 }
 0x203   :  { %3880 = vmatprep.subr.bf16.mxu0 %v8266_v29  ;;  %3921 = vmatprep.subr.bf16.mxu1 %v8268_v30  ;;  %v684_v29 = vrot.slane %v9768_v14, %v9754_v58  ;;  %v8393_v30 = vcombine.low %v293_v6, %v309_v7  ;;  %v8428_v34 = vcombine.high %v326_v25, %v342_v26 }
 0x204   :  { %3910 = vmatprep.mubr.bf16.mxu0 %v9697_v3  ;;  %3951 = vmatprep.mubr.bf16.mxu1 %v9697_v3 }
 0x206   :  { %3881 = vmatpush1.bf16.msra.mxu0 %v8265_v35  ;;  %3922 = vmatpush1.bf16.msra.mxu1 %v8267_v36  ;;  %v357_v35 = vld [vmem:[#allocation2 + $0x760] sm:$0xff] }
 0x207   :  { %3882 = vmatprep.subr.bf16.mxu0 %v8298_v37  ;;  %3923 = vmatprep.subr.bf16.mxu1 %v8300_v38  ;;  %v373_v36 = vld [vmem:[#allocation2 + $0x7e0] sm:$0xff]  ;;  %v4044_v37 = vmax.f32 %v3462_v22, 0.0  ;;  %v4045_v38 = vmax.f32 %v3464_v23, 0.0 }
 0x208   :  { %v8457_v22 = vcombine.low %v357_v35, %v373_v36 }
 0x209   :  { %v9785_v12 = vpack.c.bf16 %v4044_v37, %v4044_v37  ;;  %v453_v37 = vld [vmem:[#allocation2 + $0xa60] sm:$0xff] }
 0x20a   :  { %3883 = vmatpush1.bf16.msra.mxu0 %v8297_v45  ;;  %3924 = vmatpush1.bf16.msra.mxu1 %v8299_v48  ;;  %v374_v45 = vld [vmem:[#allocation2 + $0x7e8] sm:$0xff]  ;;  %v9781_v48 = vpack.c.bf16 %v4042_v27, %v4042_v27 }
 0x20b   :  { %3884 = vmatprep.subr.bf16.mxu0 %v8330_v50  ;;  %3925 = vmatprep.subr.bf16.mxu1 %v8332_v53  ;;  %v8460_v8 = vcombine.high %v358_v42, %v374_v45  ;;  %v8459_v23 = vcombine.low %v358_v42, %v374_v45 }
 0x20e   :  { %3885 = vmatpush1.bf16.msra.mxu0 %v8329_v0  ;;  %3926 = vmatpush1.bf16.msra.mxu1 %v8331_v1  ;;  %v8427_v1 = vcombine.low %v326_v25, %v342_v26  ;;  %v8490_v26 = vcombine.high %v389_v9, %v405_v10 }
 0x20f   :  { %3886 = vmatprep.subr.bf16.mxu0 %v8362_v2  ;;  %3927 = vmatprep.subr.bf16.mxu1 %v8364_v5  ;;  %v8458_v2 = vcombine.high %v357_v35, %v373_v36  ;;  %v9783_v5 = vpack.c.bf16 %v4043_v59, %v4043_v59  ;;  %v438_v59 = vld [vmem:[#allocation2 + $0x9e8] sm:$0xff] }
 0x212   :  { %3887 = vmatpush1.bf16.msra.mxu0 %v8361_v13  ;;  %3928 = vmatpush1.bf16.msra.mxu1 %v8363_v15  ;;  %v9787_v13 = vpack.c.bf16 %v4045_v38, %v4045_v38  ;;  %v469_v38 = vld [vmem:[#allocation2 + $0xae0] sm:$0xff] }
 0x213   :  { %3888 = vmatprep.subr.bf16.mxu0 %v8394_v16  ;;  %3929 = vmatprep.subr.bf16.mxu1 %v8396_v18  ;;  %v406_v18 = vld [vmem:[#allocation2 + $0x8e8] sm:$0xff]  ;;  %v8554_v45 = vcombine.high %v453_v37, %v469_v38 }
 0x214   :  { %v3584_v33 = vpop.f32.mrb[8].mxu0  ;;  %v3625_v40 = vpop.f32.mrb[8].mxu1 }
 0x215   :  { %v3585_v39 = vadd.f32 %v3584_v33, %v676_v24  ;;  %v3586_v41 = vpop.f32.mrb[9].mxu0  ;;  %v3626_v50 = vadd.f32 %v3625_v40, %v684_v29  ;;  %v3627_v54 = vpop.f32.mrb[9].mxu1  ;;  %v8489_v33 = vcombine.low %v389_v9, %v405_v10  ;;  %v470_v40 = vld [vmem:[#allocation2 + $0xae8] sm:$0xff] }
 0x216   :  { %v3587_v53 = vadd.f32 %v3586_v41, %v680_v28  ;;  %v3588_v57 = vpop.f32.mrb[10].mxu0  ;;  %3889 = vmatpush1.bf16.msra.mxu0 %v8393_v30  ;;  %v3628_v63 = vadd.f32 %v3627_v54, %v688_v31  ;;  %3930 = vmatpush1.bf16.msra.mxu1 %v8395_v32  ;;  %v3629_v4 = vpop.f32.mrb[10].mxu1  ;;  %v8492_v28 = vcombine.high %v390_v17, %v406_v18  ;;  %v421_v30 = vld [vmem:[#allocation2 + $0x960] sm:$0xff] }
 0x217   :  { %v4050_v62 = vmax.f32 %v3585_v39, 0.0  ;;  %v3589_v0 = vpop.f32.mrb[11].mxu0  ;;  %3890 = vmatprep.subr.bf16.mxu0 %v8426_v56  ;;  %v4052_v6 = vmax.f32 %v3626_v50, 0.0  ;;  %3931 = vmatprep.subr.bf16.mxu1 %v8428_v34  ;;  %v3630_v11 = vpop.f32.mrb[11].mxu1  ;;  %v437_v31 = vld [vmem:[#allocation2 + $0x9e0] sm:$0xff]  ;;  %v422_v56 = vld [vmem:[#allocation2 + $0x968] sm:$0xff]  ;;  %v8491_v34 = vcombine.low %v390_v17, %v406_v18 }
 0x218   :  { %v4051_v7 = vmax.f32 %v3587_v53, 0.0  ;;  %v4053_v16 = vmax.f32 %v3628_v63, 0.0  ;;  %v8522_v35 = vcombine.high %v421_v30, %v437_v31  ;;  %v8524_v36 = vcombine.high %v422_v56, %v438_v59  ;;  %v454_v39 = vld [vmem:[#allocation2 + $0xa68] sm:$0xff]  ;;  %v485_v53 = vld [vmem:[#allocation2 + $0xb60] sm:$0xff] }
 0x219   :  { %v9789_v15 = vpack.c.bf16 %v4050_v62, %v4050_v62  ;;  %v9791_v19 = vpack.c.bf16 %v4052_v6, %v4052_v6  ;;  %v8521_v41 = vcombine.low %v421_v30, %v437_v31  ;;  %v8523_v42 = vcombine.low %v422_v56, %v438_v59  ;;  %v501_v54 = vld [vmem:[#allocation2 + $0xbe0] sm:$0xff]  ;;  %v486_v57 = vld [vmem:[#allocation2 + $0xb68] sm:$0xff] }
 0x21a   :  { %v9793_v20 = vpack.c.bf16 %v4051_v7, %v4051_v7  ;;  %3891 = vmatpush1.bf16.msra.mxu0 %v8425_v61  ;;  %v9797_v25 = vpack.c.bf16 %v4053_v16, %v4053_v16  ;;  %3932 = vmatpush1.bf16.msra.mxu1 %v8427_v1  ;;  %v8556_v50 = vcombine.high %v454_v39, %v470_v40  ;;  %v502_v61 = vld [vmem:[#allocation2 + $0xbe8] sm:$0xff]  ;;  %v533_v4 = vld [vmem:[#allocation2 + $0xce0] sm:$0xff] }
 0x21b   :  { %3892 = vmatprep.subr.bf16.mxu0 %v8458_v2  ;;  %3933 = vmatprep.subr.bf16.mxu1 %v8460_v8  ;;  %v8553_v62 = vcombine.low %v453_v37, %v469_v38  ;;  %v8555_v63 = vcombine.low %v454_v39, %v470_v40  ;;  %v8586_v0 = vcombine.high %v485_v53, %v501_v54  ;;  %v517_v2 = vld [vmem:[#allocation2 + $0xc60] sm:$0xff]  ;;  %v518_v6 = vld [vmem:[#allocation2 + $0xc68] sm:$0xff] }
 0x21c   :  { %v8588_v1 = vcombine.high %v486_v57, %v502_v61  ;;  %v534_v7 = vld [vmem:[#allocation2 + $0xce8] sm:$0xff]  ;;  %v8585_v8 = vcombine.low %v485_v53, %v501_v54  ;;  %v8587_v9 = vcombine.low %v486_v57, %v502_v61  ;;  %v8618_v10 = vcombine.high %v517_v2, %v533_v4  ;;  %v549_v16 = vld [vmem:[#allocation2 + $0xd60] sm:$0xff]  ;;  %v135_v54 = vld [vmem:[#allocation2 + $0x70] sm:$0xff] }
 0x21d   :  { %v8620_v11 = vcombine.high %v518_v6, %v534_v7  ;;  %v565_v17 = vld [vmem:[#allocation2 + $0xde0] sm:$0xff]  ;;  %v550_v18 = vld [vmem:[#allocation2 + $0xd68] sm:$0xff]  ;;  %v151_v57 = vld [vmem:[#allocation2 + $0xf0] sm:$0xff] }
 0x21e   :  { %3893 = vmatpush1.bf16.msra.mxu0 %v8457_v22  ;;  %3934 = vmatpush1.bf16.msra.mxu1 %v8459_v23  ;;  %v566_v22 = vld [vmem:[#allocation2 + $0xde8] sm:$0xff]  ;;  %v8617_v23 = vcombine.low %v517_v2, %v533_v4  ;;  %v581_v31 = vld [vmem:[#allocation2 + $0xe60] sm:$0xff]  ;;  %v136_v61 = vld [vmem:[#allocation2 + $0x78] sm:$0xff] }
 0x21f   :  { %3894 = vmatprep.subr.bf16.mxu0 %v8490_v26  ;;  %3935 = vmatprep.subr.bf16.mxu1 %v8492_v28  ;;  %v8619_v26 = vcombine.low %v518_v6, %v534_v7  ;;  %v8650_v28 = vcombine.high %v549_v16, %v565_v17  ;;  %v8652_v30 = vcombine.high %v550_v18, %v566_v22  ;;  %v597_v56 = vld [vmem:[#allocation2 + $0xee0] sm:$0xff]  ;;  %v582_v59 = vld [vmem:[#allocation2 + $0xe68] sm:$0xff]  ;;  %v167_v4 = vld [vmem:[#allocation2 + $0x170] sm:$0xff] }
 0x220   :  { %v613_v38 = vld [vmem:[#allocation2 + $0xf60] sm:$0xff]  ;;  %v614_v40 = vld [vmem:[#allocation2 + $0xf68] sm:$0xff]  ;;  %v183_v6 = vld [vmem:[#allocation2 + $0x1f0] sm:$0xff] }
 0x221   :  { %v629_v39 = vld [vmem:[#allocation2 + $0xfe0] sm:$0xff]  ;;  %v168_v7 = vld [vmem:[#allocation2 + $0x178] sm:$0xff] }
 0x222   :  { %3895 = vmatpush1.bf16.msra.mxu0 %v8489_v33  ;;  %3936 = vmatpush1.bf16.msra.mxu1 %v8491_v34  ;;  %v598_v33 = vld [vmem:[#allocation2 + $0xee8] sm:$0xff]  ;;  %v8649_v34 = vcombine.low %v549_v16, %v565_v17  ;;  %v199_v17 = vld [vmem:[#allocation2 + $0x270] sm:$0xff] }
 0x223   :  { %3896 = vmatprep.subr.bf16.mxu0 %v8522_v35  ;;  %3937 = vmatprep.subr.bf16.mxu1 %v8524_v36  ;;  %v8651_v35 = vcombine.low %v550_v18, %v566_v22  ;;  %v8682_v36 = vcombine.high %v581_v31, %v597_v56  ;;  %v8684_v37 = vcombine.high %v582_v59, %v598_v33  ;;  %v215_v18 = vld [vmem:[#allocation2 + $0x2f0] sm:$0xff]  ;;  %v200_v22 = vld [vmem:[#allocation2 + $0x278] sm:$0xff] }
 0x226   :  { %3897 = vmatpush1.bf16.msra.mxu0 %v8521_v41  ;;  %3938 = vmatpush1.bf16.msra.mxu1 %v8523_v42  ;;  %v630_v41 = vld [vmem:[#allocation2 + $0xfe8] sm:$0xff]  ;;  %v8681_v42 = vcombine.low %v581_v31, %v597_v56  ;;  %v231_v56 = vld [vmem:[#allocation2 + $0x370] sm:$0xff] }
 0x227   :  { %3898 = vmatprep.subr.bf16.mxu0 %v8554_v45  ;;  %3939 = vmatprep.subr.bf16.mxu1 %v8556_v50  ;;  %v8683_v45 = vcombine.low %v582_v59, %v598_v33  ;;  %v8714_v50 = vcombine.high %v613_v38, %v629_v39  ;;  %v8716_v53 = vcombine.high %v614_v40, %v630_v41  ;;  %v247_v59 = vld [vmem:[#allocation2 + $0x3f0] sm:$0xff]  ;;  %v232_v33 = vld [vmem:[#allocation2 + $0x378] sm:$0xff] }
 0x22a   :  { %3899 = vmatpush1.bf16.msra.mxu0 %v8553_v62  ;;  %3940 = vmatpush1.bf16.msra.mxu1 %v8555_v63  ;;  %v152_v62 = vld [vmem:[#allocation2 + $0xf8] sm:$0xff]  ;;  %v8713_v63 = vcombine.low %v613_v38, %v629_v39  ;;  %v8334_v38 = vcombine.high %v231_v56, %v247_v59  ;;  %v9813_v39 = vsub.s32 5, %v9684_v46 }
 0x22b   :  { %3900 = vmatprep.subr.bf16.mxu0 %v8586_v0  ;;  %3941 = vmatprep.subr.bf16.mxu1 %v8588_v1  ;;  %v8715_v0 = vcombine.low %v614_v40, %v630_v41  ;;  %v8238_v1 = vcombine.high %v135_v54, %v151_v57  ;;  %v8240_v2 = vcombine.high %v136_v61, %v152_v62  ;;  %v263_v41 = vld [vmem:[#allocation2 + $0x470] sm:$0xff] }
 0x22e   :  { %3901 = vmatpush1.bf16.msra.mxu0 %v8585_v8  ;;  %3942 = vmatpush1.bf16.msra.mxu1 %v8587_v9  ;;  %v184_v8 = vld [vmem:[#allocation2 + $0x1f8] sm:$0xff]  ;;  %v8237_v9 = vcombine.low %v135_v54, %v151_v57  ;;  %v8333_v57 = vcombine.low %v231_v56, %v247_v59 }
 0x22f   :  { %3902 = vmatprep.subr.bf16.mxu0 %v8618_v10  ;;  %3943 = vmatprep.subr.bf16.mxu1 %v8620_v11  ;;  %v8239_v10 = vcombine.low %v136_v61, %v152_v62  ;;  %v8270_v11 = vcombine.high %v167_v4, %v183_v6  ;;  %v8272_v16 = vcombine.high %v168_v7, %v184_v8 }
 0x232   :  { %3903 = vmatpush1.bf16.msra.mxu0 %v8617_v23  ;;  %3944 = vmatpush1.bf16.msra.mxu1 %v8619_v26  ;;  %v216_v23 = vld [vmem:[#allocation2 + $0x2f8] sm:$0xff]  ;;  %v8269_v26 = vcombine.low %v167_v4, %v183_v6 }
 0x233   :  { %3904 = vmatprep.subr.bf16.mxu0 %v8650_v28  ;;  %3945 = vmatprep.subr.bf16.mxu1 %v8652_v30  ;;  %v8271_v28 = vcombine.low %v168_v7, %v184_v8  ;;  %v8302_v30 = vcombine.high %v199_v17, %v215_v18  ;;  %v8304_v31 = vcombine.high %v200_v22, %v216_v23  ;;  %v296_v6 = vld [vmem:[#allocation2 + $0x578] sm:$0xff] }
 0x234   :  { %v312_v7 = vld [vmem:[#allocation2 + $0x5f8] sm:$0xff] }
 0x236   :  { %3905 = vmatpush1.bf16.msra.mxu0 %v8649_v34  ;;  %3946 = vmatpush1.bf16.msra.mxu1 %v8651_v35  ;;  %v248_v34 = vld [vmem:[#allocation2 + $0x3f8] sm:$0xff]  ;;  %v9810_v35 = vsub.s32 4, %v9684_v46 }
 0x237   :  { %3906 = vmatprep.subr.bf16.mxu0 %v8682_v36  ;;  %3947 = vmatprep.subr.bf16.mxu1 %v8684_v37  ;;  %v8301_v36 = vcombine.low %v199_v17, %v215_v18  ;;  %v8303_v37 = vcombine.low %v200_v22, %v216_v23  ;;  %v8336_v40 = vcombine.high %v232_v33, %v248_v34  ;;  %v327_v18 = vld [vmem:[#allocation2 + $0x670] sm:$0xff] }
 0x238   :  { %v660_v54 = vrot.slane %v9748_v47, %v9810_v35  ;;  %v8335_v61 = vcombine.low %v232_v33, %v248_v34  ;;  %v8400_v17 = vcombine.high %v296_v6, %v312_v7  ;;  %v343_v22 = vld [vmem:[#allocation2 + $0x6f0] sm:$0xff] }
 0x239   :  { %v8430_v59 = vcombine.high %v327_v18, %v343_v22 }
 0x23a   :  { %3907 = vmatpush1.bf16.msra.mxu0 %v8681_v42  ;;  %3948 = vmatpush1.bf16.msra.mxu1 %v8683_v45  ;;  %v279_v42 = vld [vmem:[#allocation2 + $0x4f0] sm:$0xff]  ;;  %v9816_v45 = vsub.s32 6, %v9684_v46  ;;  %v3503_v8 = vadd.f32 %v9733_v44, %v660_v54  ;;  %v328_v44 = vld [vmem:[#allocation2 + $0x678] sm:$0xff] }
 0x23b   :  { %3908 = vmatprep.subr.bf16.mxu0 %v8714_v50  ;;  %3949 = vmatprep.subr.bf16.mxu1 %v8716_v53  ;;  %v264_v50 = vld [vmem:[#allocation2 + $0x478] sm:$0xff]  ;;  %v8366_v62 = vcombine.high %v263_v41, %v279_v42 }
 0x23c   :  { %v280_v53 = vld [vmem:[#allocation2 + $0x4f8] sm:$0xff] }
 0x23d   :  { %v360_v54 = vld [vmem:[#allocation2 + $0x778] sm:$0xff] }
 0x23e   :  { %3909 = vmatpush1.bf16.msra.mxu0 %v8713_v63  ;;  %3950 = vmatpush1.bf16.msra.mxu1 %v8715_v0  ;;  %v664_v63 = vrot.slane %v9748_v47, %v9813_v39  ;;  %v8368_v0 = vcombine.high %v264_v50, %v280_v53 }
 0x23f   :  { %3960 = vmatprep.subr.bf16.mxu0 %v8238_v1  ;;  %4001 = vmatprep.subr.bf16.mxu1 %v8240_v2  ;;  %v295_v1 = vld [vmem:[#allocation2 + $0x570] sm:$0xff] }
 0x240   :  { %v311_v2 = vld [vmem:[#allocation2 + $0x5f0] sm:$0xff] }
 0x241   :  { %3911 = vmatmul.mubr.bf16.vlgmr.msra.gmra.mrb[24].mxu0 %v9703_v21  ;;  %3952 = vmatmul.mubr.bf16.vlgmr.msra.gmra.mrb[24].mxu1 %v9703_v21  ;;  %v8397_v56 = vcombine.low %v295_v1, %v311_v2 }
 0x242   :  { %3961 = vmatpush1.bf16.msra.mxu0 %v8237_v9  ;;  %4002 = vmatpush1.bf16.msra.mxu1 %v8239_v10  ;;  %v8365_v9 = vcombine.low %v263_v41, %v279_v42  ;;  %v8367_v10 = vcombine.low %v264_v50, %v280_v53 }
 0x243   :  { %3962 = vmatprep.subr.bf16.mxu0 %v8270_v11  ;;  %4003 = vmatprep.subr.bf16.mxu1 %v8272_v16  ;;  %v8398_v11 = vcombine.high %v295_v1, %v311_v2  ;;  %v3505_v16 = vadd.f32 %v9735_v49, %v664_v63  ;;  %v696_v49 = vrot.slane %v9768_v14, %v9813_v39 }
 0x244   :  { %3992 = vmatprep.mubr.bf16.mxu0 %v9697_v3  ;;  %4033 = vmatprep.mubr.bf16.mxu1 %v9697_v3  ;;  %v9819_v3 = vsub.s32 7, %v9684_v46  ;;  %v668_v46 = vrot.slane %v9748_v47, %v9816_v45  ;;  %v8429_v1 = vcombine.low %v327_v18, %v343_v22 }
 0x245   :  { %v4047_v33 = vmax.f32 %v3505_v16, 0.0 }
 0x246   :  { %3963 = vmatpush1.bf16.msra.mxu0 %v8269_v26  ;;  %4004 = vmatpush1.bf16.msra.mxu1 %v8271_v28  ;;  %v672_v4 = vrot.slane %v9748_v47, %v9819_v3  ;;  %v3544_v23 = vadd.f32 %v9737_v52, %v668_v46  ;;  %v692_v26 = vrot.slane %v9768_v14, %v9810_v35  ;;  %v344_v28 = vld [vmem:[#allocation2 + $0x6f8] sm:$0xff] }
 0x247   :  { %3964 = vmatprep.subr.bf16.mxu0 %v8302_v30  ;;  %4005 = vmatprep.subr.bf16.mxu1 %v8304_v31  ;;  %v4046_v30 = vmax.f32 %v3503_v8, 0.0  ;;  %v700_v31 = vrot.slane %v9768_v14, %v9816_v45  ;;  %v704_v52 = vrot.slane %v9768_v14, %v9819_v3 }
 0x248   :  { %v3546_v47 = vadd.f32 %v9739_v55, %v672_v4  ;;  %v8399_v55 = vcombine.low %v296_v6, %v312_v7  ;;  %v8431_v6 = vcombine.low %v328_v44, %v344_v28 }
 0x24a   :  { %3965 = vmatpush1.bf16.msra.mxu0 %v8301_v36  ;;  %4006 = vmatpush1.bf16.msra.mxu1 %v8303_v37  ;;  %v8432_v36 = vcombine.high %v328_v44, %v344_v28  ;;  %v359_v37 = vld [vmem:[#allocation2 + $0x770] sm:$0xff]  ;;  %v4049_v41 = vmax.f32 %v3546_v47, 0.0  ;;  %v408_v44 = vld [vmem:[#allocation2 + $0x8f8] sm:$0xff] }
 0x24b   :  { %3966 = vmatprep.subr.bf16.mxu0 %v8334_v38  ;;  %4007 = vmatprep.subr.bf16.mxu1 %v8336_v40  ;;  %v375_v38 = vld [vmem:[#allocation2 + $0x7f0] sm:$0xff]  ;;  %v4048_v40 = vmax.f32 %v3544_v23, 0.0 }
 0x24c   :  { %v8462_v7 = vcombine.high %v359_v37, %v375_v38  ;;  %v407_v23 = vld [vmem:[#allocation2 + $0x8f0] sm:$0xff]  ;;  %v9847_v18 = vpack.c.bf16 %v4049_v41, %v4049_v41 }
 0x24d   :  { %v423_v41 = vld [vmem:[#allocation2 + $0x970] sm:$0xff] }
 0x24e   :  { %3967 = vmatpush1.bf16.msra.mxu0 %v8333_v57  ;;  %4008 = vmatpush1.bf16.msra.mxu1 %v8335_v61  ;;  %v376_v57 = vld [vmem:[#allocation2 + $0x7f8] sm:$0xff]  ;;  %v9841_v61 = vpack.c.bf16 %v4046_v30, %v4046_v30 }
 0x24f   :  { %3968 = vmatprep.subr.bf16.mxu0 %v8366_v62  ;;  %4009 = vmatprep.subr.bf16.mxu1 %v8368_v0  ;;  %v8464_v16 = vcombine.high %v360_v54, %v376_v57 }
 0x252   :  { %3969 = vmatpush1.bf16.msra.mxu0 %v8365_v9  ;;  %4010 = vmatpush1.bf16.msra.mxu1 %v8367_v10  ;;  %v9843_v9 = vpack.c.bf16 %v4047_v33, %v4047_v33 }
 0x253   :  { %3970 = vmatprep.subr.bf16.mxu0 %v8398_v11  ;;  %4011 = vmatprep.subr.bf16.mxu1 %v8400_v17  ;;  %v391_v17 = vld [vmem:[#allocation2 + $0x870] sm:$0xff] }
 0x254   :  { %v3666_v34 = vpop.f32.mrb[12].mxu0  ;;  %v3707_v50 = vpop.f32.mrb[12].mxu1  ;;  %v8494_v33 = vcombine.high %v391_v17, %v407_v23 }
 0x255   :  { %v3667_v42 = vadd.f32 %v3666_v34, %v692_v26  ;;  %v3668_v53 = vpop.f32.mrb[13].mxu0  ;;  %v3708_v62 = vadd.f32 %v3707_v50, %v700_v31  ;;  %v3709_v63 = vpop.f32.mrb[13].mxu1  ;;  %v9845_v26 = vpack.c.bf16 %v4048_v40, %v4048_v40  ;;  %v392_v31 = vld [vmem:[#allocation2 + $0x878] sm:$0xff] }
 0x256   :  { %v3669_v14 = vadd.f32 %v3668_v53, %v696_v49  ;;  %v3670_v0 = vpop.f32.mrb[14].mxu0  ;;  %3971 = vmatpush1.bf16.msra.mxu0 %v8397_v56  ;;  %v3710_v46 = vadd.f32 %v3709_v63, %v704_v52  ;;  %4012 = vmatpush1.bf16.msra.mxu1 %v8399_v55  ;;  %v3711_v8 = vpop.f32.mrb[14].mxu1  ;;  %v8461_v56 = vcombine.low %v359_v37, %v375_v38  ;;  %v424_v38 = vld [vmem:[#allocation2 + $0x978] sm:$0xff]  ;;  %v471_v63 = vld [vmem:[#allocation2 + $0xaf0] sm:$0xff] }
 0x257   :  { %v4054_v2 = vmax.f32 %v3667_v42, 0.0  ;;  %v3671_v4 = vpop.f32.mrb[15].mxu0  ;;  %3972 = vmatprep.subr.bf16.mxu0 %v8430_v59  ;;  %v4056_v10 = vmax.f32 %v3708_v62, 0.0  ;;  %4013 = vmatprep.subr.bf16.mxu1 %v8432_v36  ;;  %v3712_v47 = vpop.f32.mrb[15].mxu1  ;;  %v8463_v52 = vcombine.low %v360_v54, %v376_v57  ;;  %v8496_v40 = vcombine.high %v392_v31, %v408_v44  ;;  %v439_v42 = vld [vmem:[#allocation2 + $0x9f0] sm:$0xff]  ;;  %v440_v50 = vld [vmem:[#allocation2 + $0x9f8] sm:$0xff] }
 0x258   :  { %v4055_v11 = vmax.f32 %v3669_v14, 0.0  ;;  %v4057_v30 = vmax.f32 %v3710_v46, 0.0  ;;  %v8493_v53 = vcombine.low %v391_v17, %v407_v23  ;;  %v8495_v54 = vcombine.low %v392_v31, %v408_v44  ;;  %v455_v14 = vld [vmem:[#allocation2 + $0xa70] sm:$0xff]  ;;  %v456_v0 = vld [vmem:[#allocation2 + $0xa78] sm:$0xff] }
 0x259   :  { %v9849_v22 = vpack.c.bf16 %v4054_v2, %v4054_v2  ;;  %v9851_v28 = vpack.c.bf16 %v4056_v10, %v4056_v10  ;;  %v8526_v57 = vcombine.high %v423_v41, %v439_v42  ;;  %v8528_v62 = vcombine.high %v424_v38, %v440_v50  ;;  %v503_v8 = vld [vmem:[#allocation2 + $0xbf0] sm:$0xff]  ;;  %v488_v10 = vld [vmem:[#allocation2 + $0xb78] sm:$0xff] }
 0x25a   :  { %v9853_v49 = vpack.c.bf16 %v4055_v11, %v4055_v11  ;;  %3973 = vmatpush1.bf16.msra.mxu0 %v8429_v1  ;;  %v9857_v59 = vpack.c.bf16 %v4057_v30, %v4057_v30  ;;  %4014 = vmatpush1.bf16.msra.mxu1 %v8431_v6  ;;  %v472_v1 = vld [vmem:[#allocation2 + $0xaf8] sm:$0xff]  ;;  %v8525_v2 = vcombine.low %v423_v41, %v439_v42  ;;  %v519_v30 = vld [vmem:[#allocation2 + $0xc70] sm:$0xff] }
 0x25b   :  { %3974 = vmatprep.subr.bf16.mxu0 %v8462_v7  ;;  %4015 = vmatprep.subr.bf16.mxu1 %v8464_v16  ;;  %v8527_v46 = vcombine.low %v424_v38, %v440_v50  ;;  %v8558_v4 = vcombine.high %v455_v14, %v471_v63  ;;  %v8560_v6 = vcombine.high %v456_v0, %v472_v1  ;;  %v487_v7 = vld [vmem:[#allocation2 + $0xb70] sm:$0xff]  ;;  %v504_v11 = vld [vmem:[#allocation2 + $0xbf8] sm:$0xff] }
 0x25c   :  { %v8557_v16 = vcombine.low %v455_v14, %v471_v63  ;;  %v8559_v17 = vcombine.low %v456_v0, %v472_v1  ;;  %v8590_v23 = vcombine.high %v487_v7, %v503_v8  ;;  %v8592_v47 = vcombine.high %v488_v10, %v504_v11  ;;  %v535_v31 = vld [vmem:[#allocation2 + $0xcf0] sm:$0xff]  ;;  %v520_v44 = vld [vmem:[#allocation2 + $0xc78] sm:$0xff] }
 0x25d   :  { %v551_v42 = vld [vmem:[#allocation2 + $0xd70] sm:$0xff]  ;;  %v552_v50 = vld [vmem:[#allocation2 + $0xd78] sm:$0xff] }
 0x25e   :  { %3975 = vmatpush1.bf16.msra.mxu0 %v8461_v56  ;;  %4016 = vmatpush1.bf16.msra.mxu1 %v8463_v52  ;;  %v536_v56 = vld [vmem:[#allocation2 + $0xcf8] sm:$0xff]  ;;  %v8589_v52 = vcombine.low %v487_v7, %v503_v8  ;;  %v567_v38 = vld [vmem:[#allocation2 + $0xdf0] sm:$0xff] }
 0x25f   :  { %3976 = vmatprep.subr.bf16.mxu0 %v8494_v33  ;;  %4017 = vmatprep.subr.bf16.mxu1 %v8496_v40  ;;  %v8591_v33 = vcombine.low %v488_v10, %v504_v11  ;;  %v8622_v40 = vcombine.high %v519_v30, %v535_v31  ;;  %v8624_v41 = vcombine.high %v520_v44, %v536_v56  ;;  %v583_v63 = vld [vmem:[#allocation2 + $0xe70] sm:$0xff]  ;;  %v584_v1 = vld [vmem:[#allocation2 + $0xe78] sm:$0xff] }
 0x260   :  { %v599_v0 = vld [vmem:[#allocation2 + $0xef0] sm:$0xff]  ;;  %v616_v11 = vld [vmem:[#allocation2 + $0xf78] sm:$0xff] }
 0x261   :  { %v615_v8 = vld [vmem:[#allocation2 + $0xf70] sm:$0xff] }
 0x262   :  { %3977 = vmatpush1.bf16.msra.mxu0 %v8493_v53  ;;  %4018 = vmatpush1.bf16.msra.mxu1 %v8495_v54  ;;  %v568_v53 = vld [vmem:[#allocation2 + $0xdf8] sm:$0xff]  ;;  %v8621_v54 = vcombine.low %v519_v30, %v535_v31  ;;  %v631_v10 = vld [vmem:[#allocation2 + $0xff0] sm:$0xff]  ;;  %v4130_v31 = vld [vmem:[#allocation6] sm:$0xff] }
 0x263   :  { %3978 = vmatprep.subr.bf16.mxu0 %v8526_v57  ;;  %4019 = vmatprep.subr.bf16.mxu1 %v8528_v62  ;;  %v8623_v57 = vcombine.low %v520_v44, %v536_v56  ;;  %v8654_v62 = vcombine.high %v551_v42, %v567_v38  ;;  %v8656_v14 = vcombine.high %v552_v50, %v568_v53  ;;  %v4134_v44 = vld [vmem:[#allocation6 + $0x20] sm:$0xff]  ;;  %v4131_v56 = vld [vmem:[#allocation6 + $0x8] sm:$0xff] }
 0x266   :  { %3979 = vmatpush1.bf16.msra.mxu0 %v8525_v2  ;;  %4020 = vmatpush1.bf16.msra.mxu1 %v8527_v46  ;;  %v600_v2 = vld [vmem:[#allocation2 + $0xef8] sm:$0xff]  ;;  %v8653_v46 = vcombine.low %v551_v42, %v567_v38  ;;  %v4138_v38 = vld [vmem:[#allocation6 + $0x40] sm:$0xff] }
 0x267   :  { %3980 = vmatprep.subr.bf16.mxu0 %v8558_v4  ;;  %4021 = vmatprep.subr.bf16.mxu1 %v8560_v6  ;;  %v8655_v4 = vcombine.low %v552_v50, %v568_v53  ;;  %v8686_v6 = vcombine.high %v583_v63, %v599_v0  ;;  %v8688_v7 = vcombine.high %v584_v1, %v600_v2  ;;  %v4142_v50 = vld [vmem:[#allocation6 + $0x60] sm:$0xff]  ;;  %v4139_v53 = vld [vmem:[#allocation6 + $0x48] sm:$0xff] }
 0x26a   :  { %3981 = vmatpush1.bf16.msra.mxu0 %v8557_v16  ;;  %4022 = vmatpush1.bf16.msra.mxu1 %v8559_v17  ;;  %v632_v16 = vld [vmem:[#allocation2 + $0xff8] sm:$0xff]  ;;  %v8685_v17 = vcombine.low %v583_v63, %v599_v0  ;;  %v4146_v0 = vld [vmem:[#allocation6 + $0x80] sm:$0xff] }
 0x26b   :  { %3982 = vmatprep.subr.bf16.mxu0 %v8590_v23  ;;  %4023 = vmatprep.subr.bf16.mxu1 %v8592_v47  ;;  %v8687_v23 = vcombine.low %v584_v1, %v600_v2  ;;  %v8718_v47 = vcombine.high %v615_v8, %v631_v10  ;;  %v8720_v30 = vcombine.high %v616_v11, %v632_v16  ;;  %v4150_v1 = vld [vmem:[#allocation6 + $0xa0] sm:$0xff]  ;;  %v4147_v2 = vld [vmem:[#allocation6 + $0x88] sm:$0xff] }
 0x26e   :  { %3983 = vmatpush1.bf16.msra.mxu0 %v8589_v52  ;;  %4024 = vmatpush1.bf16.msra.mxu1 %v8591_v33  ;;  %v4135_v52 = vld [vmem:[#allocation6 + $0x28] sm:$0xff]  ;;  %v8717_v33 = vcombine.low %v615_v8, %v631_v10  ;;  %v4154_v10 = vld [vmem:[#allocation6 + $0xc0] sm:$0xff] }
 0x26f   :  { %3984 = vmatprep.subr.bf16.mxu0 %v8622_v40  ;;  %4025 = vmatprep.subr.bf16.mxu1 %v8624_v41  ;;  %v8719_v40 = vcombine.low %v616_v11, %v632_v16  ;;  %v8722_v41 = vcombine.high %v4130_v31, %v4134_v44  ;;  %v8724_v42 = vcombine.high %v4131_v56, %v4135_v52  ;;  %v4158_v11 = vld [vmem:[#allocation6 + $0xe0] sm:$0xff]  ;;  %v4155_v16 = vld [vmem:[#allocation6 + $0xc8] sm:$0xff] }
 0x272   :  { %3985 = vmatpush1.bf16.msra.mxu0 %v8621_v54  ;;  %4026 = vmatpush1.bf16.msra.mxu1 %v8623_v57  ;;  %v4143_v54 = vld [vmem:[#allocation6 + $0x68] sm:$0xff]  ;;  %v8721_v57 = vcombine.low %v4130_v31, %v4134_v44  ;;  %v4162_v31 = vld [vmem:[#allocation6 + $0x100] sm:$0xff] }
 0x273   :  { %3986 = vmatprep.subr.bf16.mxu0 %v8654_v62  ;;  %4027 = vmatprep.subr.bf16.mxu1 %v8656_v14  ;;  %v8723_v62 = vcombine.low %v4131_v56, %v4135_v52  ;;  %v8730_v14 = vcombine.high %v4138_v38, %v4142_v50  ;;  %v8732_v63 = vcombine.high %v4139_v53, %v4143_v54  ;;  %v4166_v44 = vld [vmem:[#allocation6 + $0x120] sm:$0xff]  ;;  %v4163_v56 = vld [vmem:[#allocation6 + $0x108] sm:$0xff] }
 0x274   :  { %v4167_v52 = vld [vmem:[#allocation6 + $0x128] sm:$0xff] }
 0x276   :  { %3987 = vmatpush1.bf16.msra.mxu0 %v8653_v46  ;;  %4028 = vmatpush1.bf16.msra.mxu1 %v8655_v4  ;;  %v4151_v46 = vld [vmem:[#allocation6 + $0xa8] sm:$0xff]  ;;  %v8729_v4 = vcombine.low %v4138_v38, %v4142_v50  ;;  %v4170_v38 = vld [vmem:[#allocation6 + $0x140] sm:$0xff] }
 0x277   :  { %3988 = vmatprep.subr.bf16.mxu0 %v8686_v6  ;;  %4029 = vmatprep.subr.bf16.mxu1 %v8688_v7  ;;  %v8731_v6 = vcombine.low %v4139_v53, %v4143_v54  ;;  %v8738_v7 = vcombine.high %v4146_v0, %v4150_v1  ;;  %v8740_v8 = vcombine.high %v4147_v2, %v4151_v46  ;;  %v4174_v50 = vld [vmem:[#allocation6 + $0x160] sm:$0xff]  ;;  %v4171_v53 = vld [vmem:[#allocation6 + $0x148] sm:$0xff] }
 0x278   :  { %v4175_v54 = vld [vmem:[#allocation6 + $0x168] sm:$0xff] }
 0x27a   :  { %3989 = vmatpush1.bf16.msra.mxu0 %v8685_v17  ;;  %4030 = vmatpush1.bf16.msra.mxu1 %v8687_v23  ;;  %v4159_v17 = vld [vmem:[#allocation6 + $0xe8] sm:$0xff]  ;;  %v8737_v23 = vcombine.low %v4146_v0, %v4150_v1  ;;  %v4178_v0 = vld [vmem:[#allocation6 + $0x180] sm:$0xff] }
 0x27b   :  { %3990 = vmatprep.subr.bf16.mxu0 %v8718_v47  ;;  %4031 = vmatprep.subr.bf16.mxu1 %v8720_v30  ;;  %v8739_v47 = vcombine.low %v4147_v2, %v4151_v46  ;;  %v8746_v30 = vcombine.high %v4154_v10, %v4158_v11  ;;  %v4182_v1 = vld [vmem:[#allocation6 + $0x1a0] sm:$0xff]  ;;  %v4179_v2 = vld [vmem:[#allocation6 + $0x188] sm:$0xff] }
 0x27c   :  { %v4183_v46 = vld [vmem:[#allocation6 + $0x1a8] sm:$0xff] }
 0x27e   :  { %3991 = vmatpush1.bf16.msra.mxu0 %v8717_v33  ;;  %4032 = vmatpush1.bf16.msra.mxu1 %v8719_v40  ;;  %v8745_v33 = vcombine.low %v4154_v10, %v4158_v11  ;;  %v8747_v40 = vcombine.low %v4155_v16, %v4159_v17  ;;  %v8772_v10 = vcombine.high %v4179_v2, %v4183_v46  ;;  %v4186_v11 = vld [vmem:[#allocation6 + $0x1c0] sm:$0xff] }
 0x27f   :  { %7244 = vmatprep.subr.bf16.mxu0 %v8722_v41  ;;  %7408 = vmatprep.subr.bf16.mxu1 %v8724_v42  ;;  %v8754_v41 = vcombine.high %v4162_v31, %v4166_v44  ;;  %v8756_v42 = vcombine.high %v4163_v56, %v4167_v52 }
 0x281   :  { %3993 = vmatmul.mubr.bf16.vlgmr.msra.gmra.mrb[28].mxu0 %v9703_v21  ;;  %4034 = vmatmul.mubr.bf16.vlgmr.msra.gmra.mrb[28].mxu1 %v9703_v21  ;;  %v8748_v21 = vcombine.high %v4155_v16, %v4159_v17  ;;  %v4190_v16 = vld [vmem:[#allocation6 + $0x1e0] sm:$0xff] }
 0x282   :  { %7245 = vmatpush1.bf16.msra.mxu0 %v8721_v57  ;;  %7409 = vmatpush1.bf16.msra.mxu1 %v8723_v62  ;;  %v8753_v57 = vcombine.low %v4162_v31, %v4166_v44  ;;  %v8755_v62 = vcombine.low %v4163_v56, %v4167_v52  ;;  %v8769_v44 = vcombine.low %v4178_v0, %v4182_v1 }
 0x283   :  { %7246 = vmatprep.subr.bf16.mxu0 %v8730_v14  ;;  %7410 = vmatprep.subr.bf16.mxu1 %v8732_v63  ;;  %v8762_v14 = vcombine.high %v4170_v38, %v4174_v50  ;;  %v8764_v63 = vcombine.high %v4171_v53, %v4175_v54 }
 0x286   :  { %7247 = vmatpush1.bf16.msra.mxu0 %v8729_v4  ;;  %7411 = vmatpush1.bf16.msra.mxu1 %v8731_v6  ;;  %v8761_v4 = vcombine.low %v4170_v38, %v4174_v50  ;;  %v8763_v6 = vcombine.low %v4171_v53, %v4175_v54  ;;  %v4194_v38 = vld [vmem:[#allocation6 + $0x200] sm:$0xff]  ;;  %v4195_v53 = vld [vmem:[#allocation6 + $0x208] sm:$0xff] }
 0x287   :  { %7248 = vmatprep.subr.bf16.mxu0 %v8738_v7  ;;  %7412 = vmatprep.subr.bf16.mxu1 %v8740_v8  ;;  %v8770_v7 = vcombine.high %v4178_v0, %v4182_v1  ;;  %v4198_v50 = vld [vmem:[#allocation6 + $0x220] sm:$0xff]  ;;  %v4199_v54 = vld [vmem:[#allocation6 + $0x228] sm:$0xff] }
 0x288   :  { %v4202_v0 = vld [vmem:[#allocation6 + $0x240] sm:$0xff] }
 0x289   :  { %v4206_v1 = vld [vmem:[#allocation6 + $0x260] sm:$0xff] }
 0x28a   :  { %7249 = vmatpush1.bf16.msra.mxu0 %v8737_v23  ;;  %7413 = vmatpush1.bf16.msra.mxu1 %v8739_v47  ;;  %v4187_v47 = vld [vmem:[#allocation6 + $0x1c8] sm:$0xff] }
 0x28b   :  { %7250 = vmatprep.subr.bf16.mxu0 %v8746_v30  ;;  %7414 = vmatprep.subr.bf16.mxu1 %v8748_v21  ;;  %v4191_v30 = vld [vmem:[#allocation6 + $0x1e8] sm:$0xff] }
 0x28e   :  { %7251 = vmatpush1.bf16.msra.mxu0 %v8745_v33  ;;  %7415 = vmatpush1.bf16.msra.mxu1 %v8747_v40  ;;  %v8771_v33 = vcombine.low %v4179_v2, %v4183_v46  ;;  %v8778_v40 = vcombine.high %v4186_v11, %v4190_v16  ;;  %v4207_v2 = vld [vmem:[#allocation6 + $0x268] sm:$0xff]  ;;  %v8785_v46 = vcombine.low %v4194_v38, %v4198_v50 }
 0x28f   :  { %7252 = vmatprep.subr.bf16.mxu0 %v8754_v41  ;;  %7416 = vmatprep.subr.bf16.mxu1 %v8756_v42  ;;  %v8780_v42 = vcombine.high %v4187_v47, %v4191_v30 }
 0x292   :  { %7253 = vmatpush1.bf16.msra.mxu0 %v8753_v57  ;;  %7417 = vmatpush1.bf16.msra.mxu1 %v8755_v62  ;;  %v8777_v57 = vcombine.low %v4186_v11, %v4190_v16  ;;  %v8779_v62 = vcombine.low %v4187_v47, %v4191_v30  ;;  %v8787_v11 = vcombine.low %v4195_v53, %v4199_v54  ;;  %v9881_v47 = vld [vmem:[#allocation6 + $0x428] sm:$0xff] }
 0x293   :  { %7254 = vmatprep.subr.bf16.mxu0 %v8762_v14  ;;  %7418 = vmatprep.subr.bf16.mxu1 %v8764_v63  ;;  %v8786_v14 = vcombine.high %v4194_v38, %v4198_v50  ;;  %v8788_v63 = vcombine.high %v4195_v53, %v4199_v54  ;;  %v8794_v16 = vcombine.high %v4202_v0, %v4206_v1  ;;  %v4218_v53 = vld [vmem:[#allocation6 + $0x2c0] sm:$0xff] }
 0x294   :  { %v9867_v8 = vpop.f32.mrb[16].mxu0  ;;  %v9871_v23 = vpop.f32.mrb[16].mxu1  ;;  %v4222_v54 = vld [vmem:[#allocation6 + $0x2e0] sm:$0xff] }
 0x295   :  { %v9869_v17 = vpop.f32.mrb[17].mxu0  ;;  %v9873_v31 = vpop.f32.mrb[17].mxu1  ;;  %v8810_v37 = vcombine.high %v4218_v53, %v4222_v54 }
 0x296   :  { %v3752_v21 = vpop.f32.mrb[18].mxu0  ;;  %7255 = vmatpush1.bf16.msra.mxu0 %v8761_v4  ;;  %v3793_v52 = vpop.f32.mrb[18].mxu1  ;;  %7419 = vmatpush1.bf16.msra.mxu1 %v8763_v6  ;;  %v4203_v4 = vld [vmem:[#allocation6 + $0x248] sm:$0xff]  ;;  %v9875_v6 = vld [vmem:[#allocation6 + $0x400] sm:$0xff] }
 0x297   :  { %v3753_v56 = vpop.f32.mrb[19].mxu0  ;;  %7256 = vmatprep.subr.bf16.mxu0 %v8770_v7  ;;  %v3794_v41 = vpop.f32.mrb[19].mxu1  ;;  %7420 = vmatprep.subr.bf16.mxu1 %v8772_v10  ;;  %v9877_v7 = vld [vmem:[#allocation6 + $0x420] sm:$0xff]  ;;  %v9879_v10 = vld [vmem:[#allocation6 + $0x408] sm:$0xff]  ;;  %v8796_v30 = vcombine.high %v4203_v4, %v4207_v2 }
 0x298   :  { %v4210_v21 = vld [vmem:[#allocation6 + $0x280] sm:$0xff]  ;;  %v8793_v41 = vcombine.low %v4202_v0, %v4206_v1  ;;  %v4227_v1 = vld [vmem:[#allocation6 + $0x308] sm:$0xff] }
 0x299   :  { %v4230_v0 = vld [vmem:[#allocation6 + $0x320] sm:$0xff] }
 0x29a   :  { %7257 = vmatpush1.bf16.msra.mxu0 %v8769_v44  ;;  %7421 = vmatpush1.bf16.msra.mxu1 %v8771_v33  ;;  %v4214_v44 = vld [vmem:[#allocation6 + $0x2a0] sm:$0xff]  ;;  %v4211_v33 = vld [vmem:[#allocation6 + $0x288] sm:$0xff] }
 0x29b   :  { %7258 = vmatprep.subr.bf16.mxu0 %v8778_v40  ;;  %7422 = vmatprep.subr.bf16.mxu1 %v8780_v42  ;;  %v4215_v40 = vld [vmem:[#allocation6 + $0x2a8] sm:$0xff]  ;;  %v8795_v42 = vcombine.low %v4203_v4, %v4207_v2  ;;  %v8802_v38 = vcombine.high %v4210_v21, %v4214_v44  ;;  %v8809_v4 = vcombine.low %v4218_v53, %v4222_v54  ;;  %v4246_v53 = vld [vmem:[#allocation6 + $0x3a0] sm:$0xff] }
 0x29c   :  { %v8804_v50 = vcombine.high %v4211_v33, %v4215_v40  ;;  %v4243_v54 = vld [vmem:[#allocation6 + $0x388] sm:$0xff] }
 0x29e   :  { %7259 = vmatpush1.bf16.msra.mxu0 %v8777_v57  ;;  %7423 = vmatpush1.bf16.msra.mxu1 %v8779_v62  ;;  %v4219_v57 = vld [vmem:[#allocation6 + $0x2c8] sm:$0xff] }
 0x29f   :  { %7260 = vmatprep.subr.bf16.mxu0 %v8786_v14  ;;  %7424 = vmatprep.subr.bf16.mxu1 %v8788_v63  ;;  %v4223_v62 = vld [vmem:[#allocation6 + $0x2e8] sm:$0xff]  ;;  %v8801_v14 = vcombine.low %v4210_v21, %v4214_v44  ;;  %v8803_v63 = vcombine.low %v4211_v33, %v4215_v40  ;;  %v4238_v21 = vld [vmem:[#allocation6 + $0x360] sm:$0xff] }
 0x2a0   :  { %v8812_v36 = vcombine.high %v4219_v57, %v4223_v62  ;;  %v8811_v2 = vcombine.low %v4219_v57, %v4223_v62  ;;  %v4235_v44 = vld [vmem:[#allocation6 + $0x348] sm:$0xff] }
 0x2a2   :  { %7261 = vmatpush1.bf16.msra.mxu0 %v8785_v46  ;;  %7425 = vmatpush1.bf16.msra.mxu1 %v8787_v11  ;;  %v4226_v46 = vld [vmem:[#allocation6 + $0x300] sm:$0xff]  ;;  %v4231_v11 = vld [vmem:[#allocation6 + $0x328] sm:$0xff] }
 0x2a3   :  { %7262 = vmatprep.subr.bf16.mxu0 %v8794_v16  ;;  %7426 = vmatprep.subr.bf16.mxu1 %v8796_v30  ;;  %v8818_v16 = vcombine.high %v4226_v46, %v4230_v0  ;;  %v8820_v30 = vcombine.high %v4227_v1, %v4231_v11  ;;  %v8817_v33 = vcombine.low %v4226_v46, %v4230_v0  ;;  %v4254_v46 = vld [vmem:[#allocation6 + $0x3e0] sm:$0xff]  ;;  %v4251_v0 = vld [vmem:[#allocation6 + $0x3c8] sm:$0xff] }
 0x2a4   :  { %v8819_v40 = vcombine.low %v4227_v1, %v4231_v11 }
 0x2a6   :  { %7263 = vmatpush1.bf16.msra.mxu0 %v8793_v41  ;;  %7427 = vmatpush1.bf16.msra.mxu1 %v8795_v42  ;;  %v4234_v41 = vld [vmem:[#allocation6 + $0x340] sm:$0xff]  ;;  %v4239_v42 = vld [vmem:[#allocation6 + $0x368] sm:$0xff] }
 0x2a7   :  { %7264 = vmatprep.subr.bf16.mxu0 %v8802_v38  ;;  %7428 = vmatprep.subr.bf16.mxu1 %v8804_v50  ;;  %v8826_v38 = vcombine.high %v4234_v41, %v4238_v21  ;;  %v8828_v50 = vcombine.high %v4235_v44, %v4239_v42  ;;  %v8825_v57 = vcombine.low %v4234_v41, %v4238_v21 }
 0x2aa   :  { %7265 = vmatpush1.bf16.msra.mxu0 %v8801_v14  ;;  %7429 = vmatpush1.bf16.msra.mxu1 %v8803_v63  ;;  %v4242_v14 = vld [vmem:[#allocation6 + $0x380] sm:$0xff] }
 0x2ab   :  { %7266 = vmatprep.subr.bf16.mxu0 %v8810_v37  ;;  %7430 = vmatprep.subr.bf16.mxu1 %v8812_v36  ;;  %v4247_v37 = vld [vmem:[#allocation6 + $0x3a8] sm:$0xff]  ;;  %v8827_v36 = vcombine.low %v4235_v44, %v4239_v42  ;;  %v8834_v62 = vcombine.high %v4242_v14, %v4246_v53  ;;  %v8833_v1 = vcombine.low %v4242_v14, %v4246_v53 }
 0x2ac   :  { %v8836_v63 = vcombine.high %v4243_v54, %v4247_v37  ;;  %v8835_v11 = vcombine.low %v4243_v54, %v4247_v37  ;;  %v8850_v44 = vcombine.high %v9875_v6, %v9877_v7  ;;  %v8852_v42 = vcombine.high %v9879_v10, %v9881_v47 }
 0x2ae   :  { %7267 = vmatpush1.bf16.msra.mxu0 %v8809_v4  ;;  %7431 = vmatpush1.bf16.msra.mxu1 %v8811_v2  ;;  %v4250_v4 = vld [vmem:[#allocation6 + $0x3c0] sm:$0xff]  ;;  %v4255_v2 = vld [vmem:[#allocation6 + $0x3e8] sm:$0xff] }
 0x2af   :  { %7268 = vmatprep.subr.bf16.mxu0 %v8818_v16  ;;  %7432 = vmatprep.subr.bf16.mxu1 %v8820_v30  ;;  %v8842_v16 = vcombine.high %v4250_v4, %v4254_v46  ;;  %v8844_v30 = vcombine.high %v4251_v0, %v4255_v2  ;;  %v8841_v41 = vcombine.low %v4250_v4, %v4254_v46  ;;  %v9907_v4 = vld [vmem:[#allocation4 + $0x18] sm:$0xff] }
 0x2b0   :  { %v8843_v21 = vcombine.low %v4251_v0, %v4255_v2  ;;  %v740_v2 = vrot.slane %v9907_v4, %v9746_v43 }
 0x2b2   :  { %7269 = vmatpush1.bf16.msra.mxu0 %v8817_v33  ;;  %7433 = vmatpush1.bf16.msra.mxu1 %v8819_v40 }
 0x2b3   :  { %7270 = vmatprep.subr.bf16.mxu0 %v8826_v38  ;;  %7434 = vmatprep.subr.bf16.mxu1 %v8828_v50 }
 0x2b6   :  { %7271 = vmatpush1.bf16.msra.mxu0 %v8825_v57  ;;  %7435 = vmatpush1.bf16.msra.mxu1 %v8827_v36  ;;  %v9899_v57 = vld [vmem:[#allocation4 + $0x10] sm:$0xff] }
 0x2b7   :  { %7272 = vmatprep.subr.bf16.mxu0 %v8834_v62  ;;  %7436 = vmatprep.subr.bf16.mxu1 %v8836_v63  ;;  %v708_v36 = vrot.slane %v9899_v57, %v9746_v43  ;;  %v712_v62 = vrot.slane %v9899_v57, %v9751_v51  ;;  %v716_v63 = vrot.slane %v9899_v57, %v9754_v58 }
 0x2b8   :  { %v720_v46 = vrot.slane %v9899_v57, %v9757_v60 }
 0x2b9   :  { %v3749_v0 = vadd.f32 %v9867_v8, %v708_v36 }
 0x2ba   :  { %7273 = vmatpush1.bf16.msra.mxu0 %v8833_v1  ;;  %7437 = vmatpush1.bf16.msra.mxu1 %v8835_v11  ;;  %v3751_v1 = vadd.f32 %v9869_v17, %v712_v62  ;;  %v3790_v11 = vadd.f32 %v9871_v23, %v716_v63 }
 0x2bb   :  { %7274 = vmatprep.subr.bf16.mxu0 %v8842_v16  ;;  %7438 = vmatprep.subr.bf16.mxu1 %v8844_v30  ;;  %v748_v16 = vrot.slane %v9907_v4, %v9754_v58  ;;  %v744_v30 = vrot.slane %v9907_v4, %v9751_v51  ;;  %v4058_v8 = vmax.f32 %v3749_v0, 0.0 }
 0x2bc   :  { %v4060_v17 = vmax.f32 %v3790_v11, 0.0 }
 0x2bd   :  { %v4090_v29 = vpack.c.bf16 %v4058_v8, %v4058_v8  ;;  %v4267_v8 = vld [vmem:[#allocation6 + $0x448] sm:$0xff] }
 0x2be   :  { %7275 = vmatpush1.bf16.msra.mxu0 %v8841_v41  ;;  %7439 = vmatpush1.bf16.msra.mxu1 %v8843_v21  ;;  %v3792_v41 = vadd.f32 %v9873_v31, %v720_v46  ;;  %v752_v21 = vrot.slane %v9907_v4, %v9757_v60 }
 0x2bf   :  { %7285 = vmatprep.subr.bf16.mxu0 %v8850_v44  ;;  %7449 = vmatprep.subr.bf16.mxu1 %v8852_v42 }
 0x2c0   :  { %v4061_v63 = vmax.f32 %v3792_v41, 0.0  ;;  %v4266_v41 = vld [vmem:[#allocation6 + $0x440] sm:$0xff] }
 0x2c2   :  { %v4093_v11 = vpack.c.bf16 %v4061_v63, %v4061_v63  ;;  %v4286_v63 = vld [vmem:[#allocation6 + $0x4e0] sm:$0xff] }
 0x2d4   :  { %v9891_v33 = vpop.f32.mrb[20].mxu0  ;;  %v9895_v38 = vpop.f32.mrb[20].mxu1 }
 0x2d5   :  { %v9893_v40 = vpop.f32.mrb[21].mxu0  ;;  %v9897_v14 = vpop.f32.mrb[21].mxu1 }
 0x2d6   :  { %v3834_v50 = vpop.f32.mrb[22].mxu0  ;;  %v3875_v54 = vpop.f32.mrb[22].mxu1 }
 0x2d7   :  { %v3835_v53 = vpop.f32.mrb[23].mxu0  ;;  %v3876_v37 = vpop.f32.mrb[23].mxu1  ;;  %v4059_v54 = vmax.f32 %v3751_v1, 0.0 }
 0x314   :  { %v3912_v44 = vpop.f32.mrb[24].mxu0  ;;  %v3953_v50 = vpop.f32.mrb[24].mxu1 }
 0x315   :  { %v3913_v42 = vadd.f32 %v3912_v44, %v740_v2  ;;  %v3914_v53 = vpop.f32.mrb[25].mxu0  ;;  %v3954_v37 = vadd.f32 %v3953_v50, %v748_v16  ;;  %v3955_v36 = vpop.f32.mrb[25].mxu1  ;;  %v4091_v2 = vpack.c.bf16 %v4059_v54, %v4059_v54  ;;  %v4092_v44 = vpack.c.bf16 %v4060_v17, %v4060_v17 }
 0x316   :  { %v3915_v23 = vadd.f32 %v3914_v53, %v744_v30  ;;  %v3916_v62 = vpop.f32.mrb[26].mxu0  ;;  %v3956_v55 = vadd.f32 %v3955_v36, %v752_v21  ;;  %v3957_v56 = vpop.f32.mrb[26].mxu1 }
 0x317   :  { %v4066_v34 = vmax.f32 %v3913_v42, 0.0  ;;  %v3917_v52 = vpop.f32.mrb[27].mxu0  ;;  %v4068_v31 = vmax.f32 %v3954_v37, 0.0  ;;  %v3958_v32 = vpop.f32.mrb[27].mxu1  ;;  %v4279_v37 = vld [vmem:[#allocation6 + $0x4a8] sm:$0xff]  ;;  %v4282_v62 = vld [vmem:[#allocation6 + $0x4c0] sm:$0xff] }
 0x318   :  { %v4067_v46 = vmax.f32 %v3915_v23, 0.0  ;;  %v4069_v0 = vmax.f32 %v3956_v55, 0.0  ;;  %v10124_v52 = vmax.bf16 %v9789_v15, %v9781_v48  ;;  %v4270_v32 = vld [vmem:[#allocation6 + $0x460] sm:$0xff]  ;;  %v10125_v55 = vmax.bf16 %v9791_v19, %v9785_v12  ;;  %v4275_v19 = vld [vmem:[#allocation6 + $0x488] sm:$0xff] }
 0x319   :  { %v4098_v27 = vpack.c.bf16 %v4066_v34, %v4066_v34  ;;  %v4100_v24 = vpack.c.bf16 %v4068_v31, %v4068_v31  ;;  %v4271_v34 = vld [vmem:[#allocation6 + $0x468] sm:$0xff]  ;;  %v4274_v15 = vld [vmem:[#allocation6 + $0x480] sm:$0xff]  ;;  %v8858_v54 = vcombine.high %v4266_v41, %v4270_v32  ;;  %v8868_v36 = vcombine.high %v4275_v19, %v4279_v37 }
 0x31a   :  { %v4099_v1 = vpack.c.bf16 %v4067_v46, %v4067_v46  ;;  %v4101_v30 = vpack.c.bf16 %v4069_v0, %v4069_v0  ;;  %v8860_v17 = vcombine.high %v4267_v8, %v4271_v34  ;;  %v4278_v12 = vld [vmem:[#allocation6 + $0x4a0] sm:$0xff]  ;;  %v4283_v31 = vld [vmem:[#allocation6 + $0x4c8] sm:$0xff] }
 0x31b   :  { %v4114_v16 = vmax.bf16 %v4098_v27, %v4090_v29  ;;  %v4116_v50 = vmax.bf16 %v4100_v24, %v4092_v44  ;;  %v10126_v27 = vmax.bf16 %v9793_v20, %v9783_v5  ;;  %v10127_v29 = vmax.bf16 %v9797_v25, %v9787_v13  ;;  %v4287_v46 = vld [vmem:[#allocation6 + $0x4e8] sm:$0xff]  ;;  %v4290_v0 = vld [vmem:[#allocation6 + $0x500] sm:$0xff] }
 0x31c   :  { %v4115_v53 = vmax.bf16 %v4099_v1, %v4091_v2  ;;  %v4117_v21 = vmax.bf16 %v4101_v30, %v4093_v11  ;;  %v10128_v5 = vcombine.low %v9875_v6, %v9877_v7  ;;  %v10129_v13 = vcombine.low %v9879_v10, %v9881_v47  ;;  %v4294_v2 = vld [vmem:[#allocation6 + $0x520] sm:$0xff]  ;;  %v4291_v44 = vld [vmem:[#allocation6 + $0x508] sm:$0xff] }
 0x31d   :  { %v9926_v56 = vmax.bf16 %v4114_v16, %v10124_v52  ;;  %v9931_v42 = vmax.bf16 %v4116_v50, %v10125_v55  ;;  %v8857_v20 = vcombine.low %v4266_v41, %v4270_v32  ;;  %v8859_v25 = vcombine.low %v4267_v8, %v4271_v34  ;;  %v4295_v1 = vld [vmem:[#allocation6 + $0x528] sm:$0xff]  ;;  %v4302_v41 = vld [vmem:[#allocation6 + $0x560] sm:$0xff] }
 0x31e   :  { %v9936_v24 = vmax.bf16 %v4115_v53, %v10126_v27  ;;  %v9941_v48 = vmax.bf16 %v4117_v21, %v10127_v29  ;;  %v8866_v23 = vcombine.high %v4274_v15, %v4278_v12  ;;  %v8865_v6 = vcombine.low %v4274_v15, %v4278_v12  ;;  %v4298_v53 = vld [vmem:[#allocation6 + $0x540] sm:$0xff]  ;;  %v4299_v52 = vld [vmem:[#allocation6 + $0x548] sm:$0xff] }
 0x31f   :  { %v8867_v7 = vcombine.low %v4275_v19, %v4279_v37  ;;  %v8874_v10 = vcombine.high %v4282_v62, %v4286_v63  ;;  %v8876_v47 = vcombine.high %v4283_v31, %v4287_v46  ;;  %v8873_v11 = vcombine.low %v4282_v62, %v4286_v63  ;;  %v4303_v21 = vld [vmem:[#allocation6 + $0x568] sm:$0xff]  ;;  %v4306_v27 = vld [vmem:[#allocation6 + $0x580] sm:$0xff] }
 0x320   :  { %7276 = vmatprep.mubr.bf16.mxu0 %v9936_v24  ;;  %7440 = vmatprep.mubr.bf16.mxu1 %v9936_v24  ;;  %v8875_v16 = vcombine.low %v4283_v31, %v4287_v46  ;;  %v8882_v30 = vcombine.high %v4290_v0, %v4294_v2  ;;  %v8884_v50 = vcombine.high %v4291_v44, %v4295_v1  ;;  %v4310_v29 = vld [vmem:[#allocation6 + $0x5a0] sm:$0xff]  ;;  %v4307_v15 = vld [vmem:[#allocation6 + $0x588] sm:$0xff] }
 0x321   :  { %7277 = vmatmul.mubr.bf16.vlgmr.msra.gmra.mrb[32].mxu0 %v9926_v56  ;;  %7441 = vmatmul.mubr.bf16.vlgmr.msra.gmra.mrb[32].mxu1 %v9926_v56  ;;  %v8881_v32 = vcombine.low %v4290_v0, %v4294_v2  ;;  %v8883_v8 = vcombine.low %v4291_v44, %v4295_v1  ;;  %v8890_v34 = vcombine.high %v4298_v53, %v4302_v41  ;;  %v4322_v31 = vld [vmem:[#allocation6 + $0x600] sm:$0xff] }
 0x322   :  { %7286 = vmatpush1.bf16.msra.mxu0 %v10128_v5  ;;  %7450 = vmatpush1.bf16.msra.mxu1 %v10129_v13  ;;  %v8892_v55 = vcombine.high %v4299_v52, %v4303_v21  ;;  %v8891_v12 = vcombine.low %v4299_v52, %v4303_v21  ;;  %v8898_v19 = vcombine.high %v4306_v27, %v4310_v29  ;;  %v4314_v5 = vld [vmem:[#allocation6 + $0x5c0] sm:$0xff] }
 0x323   :  { %7317 = vmatprep.mubr.bf16.mxu0 %v9941_v48  ;;  %7481 = vmatprep.mubr.bf16.mxu1 %v9941_v48  ;;  %v4318_v13 = vld [vmem:[#allocation6 + $0x5e0] sm:$0xff] }
 0x324   :  { %7287 = vmatprep.subr.bf16.mxu0 %v8858_v54  ;;  %7451 = vmatprep.subr.bf16.mxu1 %v8860_v17  ;;  %v4311_v54 = vld [vmem:[#allocation6 + $0x5a8] sm:$0xff]  ;;  %v8889_v17 = vcombine.low %v4298_v53, %v4302_v41  ;;  %v8906_v62 = vcombine.high %v4314_v5, %v4318_v13  ;;  %v4326_v46 = vld [vmem:[#allocation6 + $0x620] sm:$0xff] }
 0x325   :  { %v8900_v37 = vcombine.high %v4307_v15, %v4311_v54  ;;  %v8914_v0 = vcombine.high %v4322_v31, %v4326_v46  ;;  %v4330_v44 = vld [vmem:[#allocation6 + $0x640] sm:$0xff] }
 0x326   :  { %7288 = vmatpush1.bf16.msra.mxu0 %v8857_v20  ;;  %7452 = vmatpush1.bf16.msra.mxu1 %v8859_v25  ;;  %v4315_v20 = vld [vmem:[#allocation6 + $0x5c8] sm:$0xff]  ;;  %v4334_v1 = vld [vmem:[#allocation6 + $0x660] sm:$0xff] }
 0x327   :  { %7289 = vmatprep.subr.bf16.mxu0 %v8866_v23  ;;  %7453 = vmatprep.subr.bf16.mxu1 %v8868_v36  ;;  %v4319_v25 = vld [vmem:[#allocation6 + $0x5e8] sm:$0xff]  ;;  %v8897_v23 = vcombine.low %v4306_v27, %v4310_v29  ;;  %v8899_v36 = vcombine.low %v4307_v15, %v4311_v54  ;;  %v8922_v53 = vcombine.high %v4330_v44, %v4334_v1  ;;  %v4338_v52 = vld [vmem:[#allocation6 + $0x680] sm:$0xff] }
 0x328   :  { %v8908_v63 = vcombine.high %v4315_v20, %v4319_v25  ;;  %v4342_v21 = vld [vmem:[#allocation6 + $0x6a0] sm:$0xff] }
 0x329   :  { %v8930_v27 = vcombine.high %v4338_v52, %v4342_v21  ;;  %v4346_v15 = vld [vmem:[#allocation6 + $0x6c0] sm:$0xff] }
 0x32a   :  { %7290 = vmatpush1.bf16.msra.mxu0 %v8865_v6  ;;  %7454 = vmatpush1.bf16.msra.mxu1 %v8867_v7  ;;  %v4323_v6 = vld [vmem:[#allocation6 + $0x608] sm:$0xff]  ;;  %v4350_v54 = vld [vmem:[#allocation6 + $0x6e0] sm:$0xff] }
 0x32b   :  { %7291 = vmatprep.subr.bf16.mxu0 %v8874_v10  ;;  %7455 = vmatprep.subr.bf16.mxu1 %v8876_v47  ;;  %v4327_v7 = vld [vmem:[#allocation6 + $0x628] sm:$0xff]  ;;  %v8905_v10 = vcombine.low %v4314_v5, %v4318_v13  ;;  %v8907_v47 = vcombine.low %v4315_v20, %v4319_v25  ;;  %v8938_v5 = vcombine.high %v4346_v15, %v4350_v54  ;;  %v4354_v20 = vld [vmem:[#allocation6 + $0x700] sm:$0xff] }
 0x32c   :  { %v8916_v2 = vcombine.high %v4323_v6, %v4327_v7  ;;  %v4358_v25 = vld [vmem:[#allocation6 + $0x720] sm:$0xff] }
 0x32e   :  { %7292 = vmatpush1.bf16.msra.mxu0 %v8873_v11  ;;  %7456 = vmatpush1.bf16.msra.mxu1 %v8875_v16  ;;  %v4331_v11 = vld [vmem:[#allocation6 + $0x648] sm:$0xff] }
 0x32f   :  { %7293 = vmatprep.subr.bf16.mxu0 %v8882_v30  ;;  %7457 = vmatprep.subr.bf16.mxu1 %v8884_v50  ;;  %v4335_v16 = vld [vmem:[#allocation6 + $0x668] sm:$0xff]  ;;  %v8913_v30 = vcombine.low %v4322_v31, %v4326_v46  ;;  %v8915_v50 = vcombine.low %v4323_v6, %v4327_v7  ;;  %v8937_v31 = vcombine.low %v4346_v15, %v4350_v54 }
 0x330   :  { %v8924_v41 = vcombine.high %v4331_v11, %v4335_v16  ;;  %v8946_v6 = vcombine.high %v4354_v20, %v4358_v25 }
 0x332   :  { %7294 = vmatpush1.bf16.msra.mxu0 %v8881_v32  ;;  %7458 = vmatpush1.bf16.msra.mxu1 %v8883_v8  ;;  %v4339_v32 = vld [vmem:[#allocation6 + $0x688] sm:$0xff] }
 0x333   :  { %7295 = vmatprep.subr.bf16.mxu0 %v8890_v34  ;;  %7459 = vmatprep.subr.bf16.mxu1 %v8892_v55  ;;  %v4343_v8 = vld [vmem:[#allocation6 + $0x6a8] sm:$0xff]  ;;  %v8921_v34 = vcombine.low %v4330_v44, %v4334_v1  ;;  %v8923_v55 = vcombine.low %v4331_v11, %v4335_v16 }
 0x334   :  { %v8932_v29 = vcombine.high %v4339_v32, %v4343_v8  ;;  %v4363_v44 = vld [vmem:[#allocation6 + $0x748] sm:$0xff] }
 0x335   :  { %v4367_v1 = vld [vmem:[#allocation6 + $0x768] sm:$0xff] }
 0x336   :  { %7296 = vmatpush1.bf16.msra.mxu0 %v8889_v17  ;;  %7460 = vmatpush1.bf16.msra.mxu1 %v8891_v12  ;;  %v4347_v17 = vld [vmem:[#allocation6 + $0x6c8] sm:$0xff]  ;;  %v8955_v15 = vcombine.low %v4363_v44, %v4367_v1 }
 0x337   :  { %7297 = vmatprep.subr.bf16.mxu0 %v8898_v19  ;;  %7461 = vmatprep.subr.bf16.mxu1 %v8900_v37  ;;  %v4351_v12 = vld [vmem:[#allocation6 + $0x6e8] sm:$0xff]  ;;  %v8929_v19 = vcombine.low %v4338_v52, %v4342_v21  ;;  %v8931_v37 = vcombine.low %v4339_v32, %v4343_v8  ;;  %v9965_v52 = vld [vmem:[#allocation6 + $0x780] sm:$0xff] }
 0x338   :  { %v8940_v13 = vcombine.high %v4347_v17, %v4351_v12  ;;  %v8939_v46 = vcombine.low %v4347_v17, %v4351_v12  ;;  %v4374_v32 = vld [vmem:[#allocation6 + $0x7a0] sm:$0xff]  ;;  %v4371_v8 = vld [vmem:[#allocation6 + $0x788] sm:$0xff] }
 0x339   :  { %v8962_v54 = vcombine.high %v9965_v52, %v4374_v32  ;;  %v4378_v12 = vld [vmem:[#allocation6 + $0x7c0] sm:$0xff] }
 0x33a   :  { %7298 = vmatpush1.bf16.msra.mxu0 %v8897_v23  ;;  %7462 = vmatpush1.bf16.msra.mxu1 %v8899_v36  ;;  %v4355_v23 = vld [vmem:[#allocation6 + $0x708] sm:$0xff] }
 0x33b   :  { %7299 = vmatprep.subr.bf16.mxu0 %v8906_v62  ;;  %7463 = vmatprep.subr.bf16.mxu1 %v8908_v63  ;;  %v4359_v36 = vld [vmem:[#allocation6 + $0x728] sm:$0xff]  ;;  %v724_v62 = vrot.slane %v9899_v57, %v9810_v35  ;;  %v728_v63 = vrot.slane %v9899_v57, %v9813_v39 }
 0x33c   :  { %v8948_v7 = vcombine.high %v4355_v23, %v4359_v36 }
 0x33d   :  { %v3831_v11 = vadd.f32 %v9891_v33, %v724_v62  ;;  %v3833_v16 = vadd.f32 %v9893_v40, %v728_v63  ;;  %v756_v40 = vrot.slane %v9907_v4, %v9810_v35 }
 0x33e   :  { %7300 = vmatpush1.bf16.msra.mxu0 %v8905_v10  ;;  %7464 = vmatpush1.bf16.msra.mxu1 %v8907_v47  ;;  %v4362_v10 = vld [vmem:[#allocation6 + $0x740] sm:$0xff]  ;;  %v732_v47 = vrot.slane %v9899_v57, %v9816_v45 }
 0x33f   :  { %7301 = vmatprep.subr.bf16.mxu0 %v8914_v0  ;;  %7465 = vmatprep.subr.bf16.mxu1 %v8916_v2  ;;  %v736_v0 = vrot.slane %v9899_v57, %v9819_v3  ;;  %v4366_v2 = vld [vmem:[#allocation6 + $0x760] sm:$0xff]  ;;  %v4062_v33 = vmax.f32 %v3831_v11, 0.0 }
 0x340   :  { %v3872_v21 = vadd.f32 %v9895_v38, %v732_v47  ;;  %v760_v38 = vrot.slane %v9907_v4, %v9813_v39  ;;  %v4386_v11 = vld [vmem:[#allocation6 + $0x800] sm:$0xff] }
 0x341   :  { %v3874_v57 = vadd.f32 %v9897_v14, %v736_v0  ;;  %v768_v14 = vrot.slane %v9907_v4, %v9819_v3 }
 0x342   :  { %7302 = vmatpush1.bf16.msra.mxu0 %v8913_v30  ;;  %7466 = vmatpush1.bf16.msra.mxu1 %v8915_v50  ;;  %v8945_v30 = vcombine.low %v4354_v20, %v4358_v25  ;;  %v8947_v50 = vcombine.low %v4355_v23, %v4359_v36  ;;  %v4379_v20 = vld [vmem:[#allocation6 + $0x7c8] sm:$0xff]  ;;  %v4094_v23 = vpack.c.bf16 %v4062_v33, %v4062_v33 }
 0x343   :  { %7303 = vmatprep.subr.bf16.mxu0 %v8922_v53  ;;  %7467 = vmatprep.subr.bf16.mxu1 %v8924_v41  ;;  %v8954_v53 = vcombine.high %v4362_v10, %v4366_v2  ;;  %v8956_v41 = vcombine.high %v4363_v44, %v4367_v1  ;;  %v4383_v25 = vld [vmem:[#allocation6 + $0x7e8] sm:$0xff] }
 0x344   :  { %v8972_v1 = vcombine.high %v4379_v20, %v4383_v25 }
 0x346   :  { %7304 = vmatpush1.bf16.msra.mxu0 %v8921_v34  ;;  %7468 = vmatpush1.bf16.msra.mxu1 %v8923_v55  ;;  %v4375_v34 = vld [vmem:[#allocation6 + $0x7a8] sm:$0xff]  ;;  %v764_v55 = vrot.slane %v9907_v4, %v9816_v45 }
 0x347   :  { %7305 = vmatprep.subr.bf16.mxu0 %v8930_v27  ;;  %7469 = vmatprep.subr.bf16.mxu1 %v8932_v29  ;;  %v4063_v27 = vmax.f32 %v3833_v16, 0.0  ;;  %v8953_v29 = vcombine.low %v4362_v10, %v4366_v2  ;;  %v8964_v17 = vcombine.high %v4371_v8, %v4375_v34  ;;  %v4390_v16 = vld [vmem:[#allocation6 + $0x820] sm:$0xff] }
 0x34a   :  { %7306 = vmatpush1.bf16.msra.mxu0 %v8929_v19  ;;  %7470 = vmatpush1.bf16.msra.mxu1 %v8931_v37  ;;  %v4064_v19 = vmax.f32 %v3872_v21, 0.0  ;;  %v4065_v37 = vmax.f32 %v3874_v57, 0.0  ;;  %v4387_v57 = vld [vmem:[#allocation6 + $0x808] sm:$0xff] }
 0x34b   :  { %7307 = vmatprep.subr.bf16.mxu0 %v8938_v5  ;;  %7471 = vmatprep.subr.bf16.mxu1 %v8940_v13  ;;  %v4382_v13 = vld [vmem:[#allocation6 + $0x7e0] sm:$0xff] }
 0x34c   :  { %v8970_v44 = vcombine.high %v4378_v12, %v4382_v13 }
 0x34e   :  { %7308 = vmatpush1.bf16.msra.mxu0 %v8937_v31  ;;  %7472 = vmatpush1.bf16.msra.mxu1 %v8939_v46  ;;  %v8961_v31 = vcombine.low %v9965_v52, %v4374_v32  ;;  %v8963_v46 = vcombine.low %v4371_v8, %v4375_v34  ;;  %v4391_v32 = vld [vmem:[#allocation6 + $0x828] sm:$0xff] }
 0x34f   :  { %7309 = vmatprep.subr.bf16.mxu0 %v8946_v6  ;;  %7473 = vmatprep.subr.bf16.mxu1 %v8948_v7  ;;  %v4095_v6 = vpack.c.bf16 %v4063_v27, %v4063_v27 }
 0x352   :  { %7310 = vmatpush1.bf16.msra.mxu0 %v8945_v30  ;;  %7474 = vmatpush1.bf16.msra.mxu1 %v8947_v50 }
 0x353   :  { %7311 = vmatprep.subr.bf16.mxu0 %v8954_v53  ;;  %7475 = vmatprep.subr.bf16.mxu1 %v8956_v41  ;;  %v4096_v53 = vpack.c.bf16 %v4064_v19, %v4064_v19  ;;  %v4097_v41 = vpack.c.bf16 %v4065_v37, %v4065_v37  ;;  %v4394_v37 = vld [vmem:[#allocation6 + $0x840] sm:$0xff] }
 0x354   :  { %v3994_v5 = vpop.f32.mrb[28].mxu0  ;;  %v4035_v62 = vpop.f32.mrb[28].mxu1 }
 0x355   :  { %v3995_v36 = vadd.f32 %v3994_v5, %v756_v40  ;;  %v3996_v63 = vpop.f32.mrb[29].mxu0  ;;  %v4036_v7 = vadd.f32 %v4035_v62, %v764_v55  ;;  %v4037_v10 = vpop.f32.mrb[29].mxu1  ;;  %v8969_v40 = vcombine.low %v4378_v12, %v4382_v13  ;;  %v8971_v55 = vcombine.low %v4379_v20, %v4383_v25  ;;  %v4398_v13 = vld [vmem:[#allocation6 + $0x860] sm:$0xff]  ;;  %v4395_v20 = vld [vmem:[#allocation6 + $0x848] sm:$0xff] }
 0x356   :  { %v3997_v4 = vadd.f32 %v3996_v63, %v760_v38  ;;  %7312 = vmatpush1.bf16.msra.mxu0 %v8953_v29  ;;  %7476 = vmatpush1.bf16.msra.mxu1 %v8955_v15  ;;  %v3998_v47 = vpop.f32.mrb[30].mxu0  ;;  %v4038_v2 = vadd.f32 %v4037_v10, %v768_v14  ;;  %v4039_v50 = vpop.f32.mrb[30].mxu1  ;;  %v8978_v15 = vcombine.high %v4386_v11, %v4390_v16  ;;  %v4399_v25 = vld [vmem:[#allocation6 + $0x868] sm:$0xff] }
 0x357   :  { %v4070_v0 = vmax.f32 %v3995_v36, 0.0  ;;  %7313 = vmatprep.subr.bf16.mxu0 %v8962_v54  ;;  %7477 = vmatprep.subr.bf16.mxu1 %v8964_v17  ;;  %v3999_v30 = vpop.f32.mrb[31].mxu0  ;;  %v4072_v52 = vmax.f32 %v4036_v7, 0.0  ;;  %v4040_v8 = vpop.f32.mrb[31].mxu1  ;;  %v8980_v54 = vcombine.high %v4387_v57, %v4391_v32  ;;  %v10130_v5 = vmax.bf16 %v9849_v22, %v9841_v61 }
 0x358   :  { %v4071_v21 = vmax.f32 %v3997_v4, 0.0  ;;  %v4073_v33 = vmax.f32 %v4038_v2, 0.0  ;;  %v10131_v62 = vmax.bf16 %v9851_v28, %v9845_v26  ;;  %v10132_v63 = vmax.bf16 %v9853_v49, %v9843_v9  ;;  %v4402_v28 = vld [vmem:[#allocation6 + $0x880] sm:$0xff]  ;;  %v4403_v9 = vld [vmem:[#allocation6 + $0x888] sm:$0xff] }
 0x359   :  { %v4102_v34 = vpack.c.bf16 %v4070_v0, %v4070_v0  ;;  %v4104_v27 = vpack.c.bf16 %v4072_v52, %v4072_v52  ;;  %v10133_v61 = vmax.bf16 %v9857_v59, %v9847_v18  ;;  %v8986_v7 = vcombine.high %v4394_v37, %v4398_v13  ;;  %v4406_v4 = vld [vmem:[#allocation6 + $0x8a0] sm:$0xff]  ;;  %v4407_v49 = vld [vmem:[#allocation6 + $0x8a8] sm:$0xff] }
 0x35a   :  { %v4103_v29 = vpack.c.bf16 %v4071_v21, %v4071_v21  ;;  %7314 = vmatpush1.bf16.msra.mxu0 %v8961_v31  ;;  %7478 = vmatpush1.bf16.msra.mxu1 %v8963_v46  ;;  %v4105_v14 = vpack.c.bf16 %v4073_v33, %v4073_v33  ;;  %v8977_v46 = vcombine.low %v4386_v11, %v4390_v16  ;;  %v4410_v0 = vld [vmem:[#allocation6 + $0x8c0] sm:$0xff]  ;;  %v4419_v52 = vld [vmem:[#allocation6 + $0x908] sm:$0xff] }
 0x35b   :  { %v4118_v38 = vmax.bf16 %v4102_v34, %v4094_v23  ;;  %7315 = vmatprep.subr.bf16.mxu0 %v8970_v44  ;;  %7479 = vmatprep.subr.bf16.mxu1 %v8972_v1  ;;  %v4120_v17 = vmax.bf16 %v4104_v27, %v4096_v53  ;;  %v8988_v26 = vcombine.high %v4395_v20, %v4399_v25  ;;  %v4414_v2 = vld [vmem:[#allocation6 + $0x8e0] sm:$0xff]  ;;  %v4411_v44 = vld [vmem:[#allocation6 + $0x8c8] sm:$0xff] }
 0x35c   :  { %v4119_v19 = vmax.bf16 %v4103_v29, %v4095_v6  ;;  %v4121_v12 = vmax.bf16 %v4105_v14, %v4097_v41  ;;  %v8979_v6 = vcombine.low %v4387_v57, %v4391_v32  ;;  %v8985_v10 = vcombine.low %v4394_v37, %v4398_v13  ;;  %v4415_v1 = vld [vmem:[#allocation6 + $0x8e8] sm:$0xff]  ;;  %v4418_v53 = vld [vmem:[#allocation6 + $0x900] sm:$0xff] }
 0x35d   :  { %v9982_v36 = vmax.bf16 %v4118_v38, %v10130_v5  ;;  %v9987_v23 = vmax.bf16 %v4120_v17, %v10131_v62  ;;  %v8987_v18 = vcombine.low %v4395_v20, %v4399_v25  ;;  %v8994_v59 = vcombine.high %v4402_v28, %v4406_v4  ;;  %v4422_v41 = vld [vmem:[#allocation6 + $0x920] sm:$0xff]  ;;  %v4423_v21 = vld [vmem:[#allocation6 + $0x928] sm:$0xff] }
 0x35e   :  { %v9992_v31 = vmax.bf16 %v4119_v19, %v10132_v63  ;;  %7316 = vmatpush1.bf16.msra.mxu0 %v8969_v40  ;;  %7480 = vmatpush1.bf16.msra.mxu1 %v8971_v55  ;;  %v9997_v22 = vmax.bf16 %v4121_v12, %v10133_v61  ;;  %v8996_v47 = vcombine.high %v4403_v9, %v4407_v49  ;;  %v4426_v33 = vld [vmem:[#allocation6 + $0x940] sm:$0xff]  ;;  %v4427_v55 = vld [vmem:[#allocation6 + $0x948] sm:$0xff] }
 0x35f   :  { %7326 = vmatprep.subr.bf16.mxu0 %v8978_v15  ;;  %7490 = vmatprep.subr.bf16.mxu1 %v8980_v54  ;;  %v8993_v11 = vcombine.low %v4402_v28, %v4406_v4  ;;  %v8995_v16 = vcombine.low %v4403_v9, %v4407_v49  ;;  %v9002_v30 = vcombine.high %v4410_v0, %v4414_v2  ;;  %v4430_v40 = vld [vmem:[#allocation6 + $0x960] sm:$0xff]  ;;  %v4431_v27 = vld [vmem:[#allocation6 + $0x968] sm:$0xff] }
 0x360   :  { %v9004_v50 = vcombine.high %v4411_v44, %v4415_v1  ;;  %v9001_v57 = vcombine.low %v4410_v0, %v4414_v2  ;;  %v9003_v32 = vcombine.low %v4411_v44, %v4415_v1  ;;  %v9010_v8 = vcombine.high %v4418_v53, %v4422_v41  ;;  %v4434_v54 = vld [vmem:[#allocation6 + $0x980] sm:$0xff]  ;;  %v4435_v19 = vld [vmem:[#allocation6 + $0x988] sm:$0xff] }
 0x361   :  { %7318 = vmatmul.mubr.bf16.vlgmr.msra.gmra.mrb[32].mxu0 %v9931_v42  ;;  %7482 = vmatmul.mubr.bf16.vlgmr.msra.gmra.mrb[32].mxu1 %v9931_v42  ;;  %v9012_v34 = vcombine.high %v4419_v52, %v4423_v21  ;;  %v9009_v29 = vcombine.low %v4418_v53, %v4422_v41  ;;  %v9011_v15 = vcombine.low %v4419_v52, %v4423_v21  ;;  %v4438_v17 = vld [vmem:[#allocation6 + $0x9a0] sm:$0xff]  ;;  %v4439_v37 = vld [vmem:[#allocation6 + $0x9a8] sm:$0xff] }
 0x362   :  { %7327 = vmatpush1.bf16.msra.mxu0 %v8977_v46  ;;  %7358 = vmatprep.mubr.bf16.mxu0 %v9992_v31  ;;  %v9018_v38 = vcombine.high %v4426_v33, %v4430_v40  ;;  %v9020_v14 = vcombine.high %v4427_v55, %v4431_v27  ;;  %v9017_v5 = vcombine.low %v4426_v33, %v4430_v40  ;;  %v4442_v25 = vld [vmem:[#allocation6 + $0x9c0] sm:$0xff]  ;;  %v4443_v63 = vld [vmem:[#allocation6 + $0x9c8] sm:$0xff] }
 0x363   :  { %7491 = vmatpush1.bf16.msra.mxu1 %v8979_v6  ;;  %7522 = vmatprep.mubr.bf16.mxu1 %v9992_v31  ;;  %v9019_v12 = vcombine.low %v4427_v55, %v4431_v27  ;;  %v9026_v13 = vcombine.high %v4434_v54, %v4438_v17  ;;  %v9028_v20 = vcombine.high %v4435_v19, %v4439_v37  ;;  %v4446_v62 = vld [vmem:[#allocation6 + $0x9e0] sm:$0xff]  ;;  %v4447_v46 = vld [vmem:[#allocation6 + $0x9e8] sm:$0xff] }
 0x364   :  { %7328 = vmatprep.subr.bf16.mxu0 %v8986_v7  ;;  %7492 = vmatprep.subr.bf16.mxu1 %v8988_v26  ;;  %v9025_v61 = vcombine.low %v4434_v54, %v4438_v17  ;;  %v9027_v6 = vcombine.low %v4435_v19, %v4439_v37  ;;  %v9034_v7 = vcombine.high %v4442_v25, %v4446_v62  ;;  %v4450_v28 = vld [vmem:[#allocation6 + $0xa00] sm:$0xff]  ;;  %v4451_v9 = vld [vmem:[#allocation6 + $0xa08] sm:$0xff] }
 0x365   :  { %v9036_v26 = vcombine.high %v4443_v63, %v4447_v46  ;;  %v4454_v4 = vld [vmem:[#allocation6 + $0xa20] sm:$0xff]  ;;  %v4455_v49 = vld [vmem:[#allocation6 + $0xa28] sm:$0xff] }
 0x366   :  { %7329 = vmatpush1.bf16.msra.mxu0 %v8985_v10  ;;  %v9033_v10 = vcombine.low %v4442_v25, %v4446_v62  ;;  %v4458_v0 = vld [vmem:[#allocation6 + $0xa40] sm:$0xff]  ;;  %v4459_v44 = vld [vmem:[#allocation6 + $0xa48] sm:$0xff] }
 0x367   :  { %7493 = vmatpush1.bf16.msra.mxu1 %v8987_v18  ;;  %7330 = vmatprep.subr.bf16.mxu0 %v8994_v59  ;;  %v9035_v18 = vcombine.low %v4443_v63, %v4447_v46  ;;  %v9042_v59 = vcombine.high %v4450_v28, %v4454_v4  ;;  %v4462_v2 = vld [vmem:[#allocation6 + $0xa60] sm:$0xff]  ;;  %v4463_v1 = vld [vmem:[#allocation6 + $0xa68] sm:$0xff] }
 0x368   :  { %7494 = vmatprep.subr.bf16.mxu1 %v8996_v47  ;;  %v9044_v47 = vcombine.high %v4451_v9, %v4455_v49  ;;  %v4466_v53 = vld [vmem:[#allocation6 + $0xa80] sm:$0xff]  ;;  %v4467_v52 = vld [vmem:[#allocation6 + $0xa88] sm:$0xff] }
 0x369   :  { %v4470_v41 = vld [vmem:[#allocation6 + $0xaa0] sm:$0xff]  ;;  %v4471_v21 = vld [vmem:[#allocation6 + $0xaa8] sm:$0xff] }
 0x36a   :  { %7331 = vmatpush1.bf16.msra.mxu0 %v8993_v11  ;;  %v9041_v11 = vcombine.low %v4450_v28, %v4454_v4  ;;  %v4474_v33 = vld [vmem:[#allocation6 + $0xac0] sm:$0xff]  ;;  %v4475_v55 = vld [vmem:[#allocation6 + $0xac8] sm:$0xff] }
 0x36b   :  { %7495 = vmatpush1.bf16.msra.mxu1 %v8995_v16  ;;  %7332 = vmatprep.subr.bf16.mxu0 %v9002_v30  ;;  %v9043_v16 = vcombine.low %v4451_v9, %v4455_v49  ;;  %v9050_v30 = vcombine.high %v4458_v0, %v4462_v2  ;;  %v4478_v40 = vld [vmem:[#allocation6 + $0xae0] sm:$0xff]  ;;  %v4479_v27 = vld [vmem:[#allocation6 + $0xae8] sm:$0xff] }
 0x36c   :  { %7496 = vmatprep.subr.bf16.mxu1 %v9004_v50  ;;  %v9052_v50 = vcombine.high %v4459_v44, %v4463_v1  ;;  %v4482_v54 = vld [vmem:[#allocation6 + $0xb00] sm:$0xff]  ;;  %v4483_v19 = vld [vmem:[#allocation6 + $0xb08] sm:$0xff] }
 0x36d   :  { %v4486_v17 = vld [vmem:[#allocation6 + $0xb20] sm:$0xff]  ;;  %v4487_v37 = vld [vmem:[#allocation6 + $0xb28] sm:$0xff] }
 0x36e   :  { %7333 = vmatpush1.bf16.msra.mxu0 %v9001_v57  ;;  %v9049_v57 = vcombine.low %v4458_v0, %v4462_v2  ;;  %v4490_v25 = vld [vmem:[#allocation6 + $0xb40] sm:$0xff]  ;;  %v4491_v63 = vld [vmem:[#allocation6 + $0xb48] sm:$0xff] }
 0x36f   :  { %7497 = vmatpush1.bf16.msra.mxu1 %v9003_v32  ;;  %7334 = vmatprep.subr.bf16.mxu0 %v9010_v8  ;;  %v9051_v32 = vcombine.low %v4459_v44, %v4463_v1  ;;  %v9058_v8 = vcombine.high %v4466_v53, %v4470_v41  ;;  %v4494_v62 = vld [vmem:[#allocation6 + $0xb60] sm:$0xff]  ;;  %v4495_v46 = vld [vmem:[#allocation6 + $0xb68] sm:$0xff] }
 0x370   :  { %7498 = vmatprep.subr.bf16.mxu1 %v9012_v34  ;;  %v9060_v34 = vcombine.high %v4467_v52, %v4471_v21  ;;  %v4498_v28 = vld [vmem:[#allocation6 + $0xb80] sm:$0xff]  ;;  %v4499_v9 = vld [vmem:[#allocation6 + $0xb88] sm:$0xff] }
 0x371   :  { %v4502_v4 = vld [vmem:[#allocation6 + $0xba0] sm:$0xff]  ;;  %v4503_v49 = vld [vmem:[#allocation6 + $0xba8] sm:$0xff] }
 0x372   :  { %7335 = vmatpush1.bf16.msra.mxu0 %v9009_v29  ;;  %v9057_v29 = vcombine.low %v4466_v53, %v4470_v41  ;;  %v4506_v0 = vld [vmem:[#allocation6 + $0xbc0] sm:$0xff]  ;;  %v4507_v44 = vld [vmem:[#allocation6 + $0xbc8] sm:$0xff] }
 0x373   :  { %7499 = vmatpush1.bf16.msra.mxu1 %v9011_v15  ;;  %7336 = vmatprep.subr.bf16.mxu0 %v9018_v38  ;;  %v9059_v15 = vcombine.low %v4467_v52, %v4471_v21  ;;  %v9066_v38 = vcombine.high %v4474_v33, %v4478_v40  ;;  %v4510_v2 = vld [vmem:[#allocation6 + $0xbe0] sm:$0xff]  ;;  %v4511_v1 = vld [vmem:[#allocation6 + $0xbe8] sm:$0xff] }
 0x374   :  { %7500 = vmatprep.subr.bf16.mxu1 %v9020_v14  ;;  %v9068_v14 = vcombine.high %v4475_v55, %v4479_v27  ;;  %v4514_v53 = vld [vmem:[#allocation6 + $0xc00] sm:$0xff]  ;;  %v4515_v52 = vld [vmem:[#allocation6 + $0xc08] sm:$0xff] }
 0x375   :  { %v4518_v41 = vld [vmem:[#allocation6 + $0xc20] sm:$0xff]  ;;  %v4519_v21 = vld [vmem:[#allocation6 + $0xc28] sm:$0xff] }
 0x376   :  { %7337 = vmatpush1.bf16.msra.mxu0 %v9017_v5  ;;  %v9065_v5 = vcombine.low %v4474_v33, %v4478_v40  ;;  %v4522_v33 = vld [vmem:[#allocation6 + $0xc40] sm:$0xff] }
 0x377   :  { %7501 = vmatpush1.bf16.msra.mxu1 %v9019_v12  ;;  %7338 = vmatprep.subr.bf16.mxu0 %v9026_v13  ;;  %v9067_v12 = vcombine.low %v4475_v55, %v4479_v27  ;;  %v9074_v13 = vcombine.high %v4482_v54, %v4486_v17  ;;  %v4526_v40 = vld [vmem:[#allocation6 + $0xc60] sm:$0xff]  ;;  %v9105_v55 = vcombine.low %v4514_v53, %v4518_v41  ;;  %v4523_v27 = vld [vmem:[#allocation6 + $0xc48] sm:$0xff] }
 0x378   :  { %7502 = vmatprep.subr.bf16.mxu1 %v9028_v20  ;;  %v9076_v20 = vcombine.high %v4483_v19, %v4487_v37 }
 0x37a   :  { %7339 = vmatpush1.bf16.msra.mxu0 %v9025_v61  ;;  %v9073_v61 = vcombine.low %v4482_v54, %v4486_v17  ;;  %v4534_v54 = vld [vmem:[#allocation6 + $0xca0] sm:$0xff] }
 0x37b   :  { %7503 = vmatpush1.bf16.msra.mxu1 %v9027_v6  ;;  %7340 = vmatprep.subr.bf16.mxu0 %v9034_v7  ;;  %v9075_v6 = vcombine.low %v4483_v19, %v4487_v37  ;;  %v9082_v7 = vcombine.high %v4490_v25, %v4494_v62  ;;  %v4531_v19 = vld [vmem:[#allocation6 + $0xc88] sm:$0xff] }
 0x37c   :  { %7504 = vmatprep.subr.bf16.mxu1 %v9036_v26  ;;  %v9084_v26 = vcombine.high %v4491_v63, %v4495_v46  ;;  %v4535_v37 = vld [vmem:[#allocation6 + $0xca8] sm:$0xff] }
 0x37e   :  { %7341 = vmatpush1.bf16.msra.mxu0 %v9033_v10  ;;  %v9081_v10 = vcombine.low %v4490_v25, %v4494_v62  ;;  %v4538_v25 = vld [vmem:[#allocation6 + $0xcc0] sm:$0xff] }
 0x37f   :  { %7505 = vmatpush1.bf16.msra.mxu1 %v9035_v18  ;;  %7342 = vmatprep.subr.bf16.mxu0 %v9042_v59  ;;  %v9083_v18 = vcombine.low %v4491_v63, %v4495_v46  ;;  %v9090_v59 = vcombine.high %v4498_v28, %v4502_v4  ;;  %v4542_v62 = vld [vmem:[#allocation6 + $0xce0] sm:$0xff]  ;;  %v4539_v63 = vld [vmem:[#allocation6 + $0xcc8] sm:$0xff] }
 0x380   :  { %7506 = vmatprep.subr.bf16.mxu1 %v9044_v47  ;;  %v9092_v47 = vcombine.high %v4499_v9, %v4503_v49  ;;  %v4543_v46 = vld [vmem:[#allocation6 + $0xce8] sm:$0xff] }
 0x382   :  { %7343 = vmatpush1.bf16.msra.mxu0 %v9041_v11  ;;  %v9089_v11 = vcombine.low %v4498_v28, %v4502_v4  ;;  %v4546_v28 = vld [vmem:[#allocation6 + $0xd00] sm:$0xff] }
 0x383   :  { %7507 = vmatpush1.bf16.msra.mxu1 %v9043_v16  ;;  %7344 = vmatprep.subr.bf16.mxu0 %v9050_v30  ;;  %v9091_v16 = vcombine.low %v4499_v9, %v4503_v49  ;;  %v9098_v30 = vcombine.high %v4506_v0, %v4510_v2  ;;  %v4550_v4 = vld [vmem:[#allocation6 + $0xd20] sm:$0xff]  ;;  %v4547_v9 = vld [vmem:[#allocation6 + $0xd08] sm:$0xff] }
 0x384   :  { %7508 = vmatprep.subr.bf16.mxu1 %v9052_v50  ;;  %v9100_v50 = vcombine.high %v4507_v44, %v4511_v1  ;;  %v4551_v49 = vld [vmem:[#allocation6 + $0xd28] sm:$0xff] }
 0x386   :  { %7345 = vmatpush1.bf16.msra.mxu0 %v9049_v57  ;;  %v9097_v57 = vcombine.low %v4506_v0, %v4510_v2  ;;  %v4554_v0 = vld [vmem:[#allocation6 + $0xd40] sm:$0xff] }
 0x387   :  { %7509 = vmatpush1.bf16.msra.mxu1 %v9051_v32  ;;  %7346 = vmatprep.subr.bf16.mxu0 %v9058_v8  ;;  %v9099_v32 = vcombine.low %v4507_v44, %v4511_v1  ;;  %v9106_v8 = vcombine.high %v4514_v53, %v4518_v41  ;;  %v4558_v2 = vld [vmem:[#allocation6 + $0xd60] sm:$0xff]  ;;  %v4555_v44 = vld [vmem:[#allocation6 + $0xd48] sm:$0xff] }
 0x388   :  { %7510 = vmatprep.subr.bf16.mxu1 %v9060_v34  ;;  %v9108_v34 = vcombine.high %v4515_v52, %v4519_v21  ;;  %v4559_v1 = vld [vmem:[#allocation6 + $0xd68] sm:$0xff]  ;;  %v4562_v53 = vld [vmem:[#allocation6 + $0xd80] sm:$0xff] }
 0x389   :  { %v4566_v41 = vld [vmem:[#allocation6 + $0xda0] sm:$0xff] }
 0x38a   :  { %7347 = vmatpush1.bf16.msra.mxu0 %v9057_v29  ;;  %v4527_v29 = vld [vmem:[#allocation6 + $0xc68] sm:$0xff] }
 0x38b   :  { %7511 = vmatpush1.bf16.msra.mxu1 %v9059_v15  ;;  %7348 = vmatprep.subr.bf16.mxu0 %v9066_v38  ;;  %v9107_v15 = vcombine.low %v4515_v52, %v4519_v21  ;;  %v9114_v38 = vcombine.high %v4522_v33, %v4526_v40  ;;  %v9116_v17 = vcombine.high %v4523_v27, %v4527_v29  ;;  %v4563_v52 = vld [vmem:[#allocation6 + $0xd88] sm:$0xff] }
 0x38c   :  { %7512 = vmatprep.subr.bf16.mxu1 %v9068_v14  ;;  %v4530_v14 = vld [vmem:[#allocation6 + $0xc80] sm:$0xff]  ;;  %v4567_v21 = vld [vmem:[#allocation6 + $0xda8] sm:$0xff] }
 0x38e   :  { %7349 = vmatpush1.bf16.msra.mxu0 %v9065_v5  ;;  %v9113_v5 = vcombine.low %v4522_v33, %v4526_v40  ;;  %v4570_v33 = vld [vmem:[#allocation6 + $0xdc0] sm:$0xff] }
 0x38f   :  { %7513 = vmatpush1.bf16.msra.mxu1 %v9067_v12  ;;  %7350 = vmatprep.subr.bf16.mxu0 %v9074_v13  ;;  %v9115_v12 = vcombine.low %v4523_v27, %v4527_v29  ;;  %v9122_v13 = vcombine.high %v4530_v14, %v4534_v54  ;;  %v4574_v40 = vld [vmem:[#allocation6 + $0xde0] sm:$0xff]  ;;  %v4575_v27 = vld [vmem:[#allocation6 + $0xde8] sm:$0xff]  ;;  %v9153_v29 = vcombine.low %v4562_v53, %v4566_v41 }
 0x390   :  { %7514 = vmatprep.subr.bf16.mxu1 %v9076_v20  ;;  %v9124_v20 = vcombine.high %v4531_v19, %v4535_v37 }
 0x392   :  { %7351 = vmatpush1.bf16.msra.mxu0 %v9073_v61  ;;  %v9121_v61 = vcombine.low %v4530_v14, %v4534_v54  ;;  %v4578_v54 = vld [vmem:[#allocation6 + $0xe00] sm:$0xff] }
 0x393   :  { %7515 = vmatpush1.bf16.msra.mxu1 %v9075_v6  ;;  %7352 = vmatprep.subr.bf16.mxu0 %v9082_v7  ;;  %v9123_v6 = vcombine.low %v4531_v19, %v4535_v37  ;;  %v9130_v7 = vcombine.high %v4538_v25, %v4542_v62  ;;  %v4579_v19 = vld [vmem:[#allocation6 + $0xe08] sm:$0xff] }
 0x394   :  { %7516 = vmatprep.subr.bf16.mxu1 %v9084_v26  ;;  %v9132_v26 = vcombine.high %v4539_v63, %v4543_v46  ;;  %v4583_v37 = vld [vmem:[#allocation6 + $0xe28] sm:$0xff] }
 0x396   :  { %7353 = vmatpush1.bf16.msra.mxu0 %v9081_v10  ;;  %v9129_v10 = vcombine.low %v4538_v25, %v4542_v62  ;;  %v4586_v25 = vld [vmem:[#allocation6 + $0xe40] sm:$0xff] }
 0x397   :  { %7517 = vmatpush1.bf16.msra.mxu1 %v9083_v18  ;;  %7354 = vmatprep.subr.bf16.mxu0 %v9090_v59  ;;  %v9131_v18 = vcombine.low %v4539_v63, %v4543_v46  ;;  %v9138_v59 = vcombine.high %v4546_v28, %v4550_v4  ;;  %v4590_v62 = vld [vmem:[#allocation6 + $0xe60] sm:$0xff]  ;;  %v4587_v63 = vld [vmem:[#allocation6 + $0xe48] sm:$0xff] }
 0x398   :  { %7518 = vmatprep.subr.bf16.mxu1 %v9092_v47  ;;  %v9140_v47 = vcombine.high %v4547_v9, %v4551_v49  ;;  %v4591_v46 = vld [vmem:[#allocation6 + $0xe68] sm:$0xff] }
 0x39a   :  { %7355 = vmatpush1.bf16.msra.mxu0 %v9089_v11  ;;  %v9137_v11 = vcombine.low %v4546_v28, %v4550_v4  ;;  %v4594_v28 = vld [vmem:[#allocation6 + $0xe80] sm:$0xff] }
 0x39b   :  { %7519 = vmatpush1.bf16.msra.mxu1 %v9091_v16  ;;  %7356 = vmatprep.subr.bf16.mxu0 %v9098_v30  ;;  %v9139_v16 = vcombine.low %v4547_v9, %v4551_v49  ;;  %v9146_v30 = vcombine.high %v4554_v0, %v4558_v2  ;;  %v4598_v4 = vld [vmem:[#allocation6 + $0xea0] sm:$0xff]  ;;  %v4595_v9 = vld [vmem:[#allocation6 + $0xe88] sm:$0xff] }
 0x39c   :  { %7520 = vmatprep.subr.bf16.mxu1 %v9100_v50  ;;  %v9148_v50 = vcombine.high %v4555_v44, %v4559_v1  ;;  %v4599_v49 = vld [vmem:[#allocation6 + $0xea8] sm:$0xff] }
 0x39e   :  { %7357 = vmatpush1.bf16.msra.mxu0 %v9097_v57  ;;  %v9145_v57 = vcombine.low %v4554_v0, %v4558_v2  ;;  %v4602_v0 = vld [vmem:[#allocation6 + $0xec0] sm:$0xff] }
 0x39f   :  { %7521 = vmatpush1.bf16.msra.mxu1 %v9099_v32  ;;  %7367 = vmatprep.subr.bf16.mxu0 %v9106_v8  ;;  %v9147_v32 = vcombine.low %v4555_v44, %v4559_v1  ;;  %v9154_v8 = vcombine.high %v4562_v53, %v4566_v41  ;;  %v4606_v2 = vld [vmem:[#allocation6 + $0xee0] sm:$0xff]  ;;  %v4603_v44 = vld [vmem:[#allocation6 + $0xec8] sm:$0xff] }
 0x3a0   :  { %7531 = vmatprep.subr.bf16.mxu1 %v9108_v34  ;;  %v9156_v34 = vcombine.high %v4563_v52, %v4567_v21  ;;  %v4607_v1 = vld [vmem:[#allocation6 + $0xee8] sm:$0xff]  ;;  %v4610_v53 = vld [vmem:[#allocation6 + $0xf00] sm:$0xff] }
 0x3a1   :  { %7359 = vmatmul.mubr.bf16.vlgmr.msra.gmra.mrb[32].mxu0 %v9982_v36  ;;  %v4614_v41 = vld [vmem:[#allocation6 + $0xf20] sm:$0xff] }
 0x3a2   :  { %7523 = vmatmul.mubr.bf16.vlgmr.msra.gmra.mrb[32].mxu1 %v9982_v36  ;;  %7368 = vmatpush1.bf16.msra.mxu0 %v9105_v55  ;;  %v4571_v55 = vld [vmem:[#allocation6 + $0xdc8] sm:$0xff] }
 0x3a3   :  { %7399 = vmatprep.mubr.bf16.mxu0 %v9997_v22  ;;  %7532 = vmatpush1.bf16.msra.mxu1 %v9107_v15  ;;  %v9155_v15 = vcombine.low %v4563_v52, %v4567_v21  ;;  %v9164_v14 = vcombine.high %v4571_v55, %v4575_v27  ;;  %v4611_v52 = vld [vmem:[#allocation6 + $0xf08] sm:$0xff] }
 0x3a4   :  { %7563 = vmatprep.mubr.bf16.mxu1 %v9997_v22  ;;  %7369 = vmatprep.subr.bf16.mxu0 %v9114_v38  ;;  %v9162_v38 = vcombine.high %v4570_v33, %v4574_v40  ;;  %v4615_v21 = vld [vmem:[#allocation6 + $0xf28] sm:$0xff] }
 0x3a5   :  { %7533 = vmatprep.subr.bf16.mxu1 %v9116_v17  ;;  %v4582_v17 = vld [vmem:[#allocation6 + $0xe20] sm:$0xff] }
 0x3a6   :  { %7370 = vmatpush1.bf16.msra.mxu0 %v9113_v5  ;;  %v9161_v5 = vcombine.low %v4570_v33, %v4574_v40  ;;  %v4618_v33 = vld [vmem:[#allocation6 + $0xf40] sm:$0xff] }
 0x3a7   :  { %7534 = vmatpush1.bf16.msra.mxu1 %v9115_v12  ;;  %7371 = vmatprep.subr.bf16.mxu0 %v9122_v13  ;;  %v9163_v12 = vcombine.low %v4571_v55, %v4575_v27  ;;  %v9170_v13 = vcombine.high %v4578_v54, %v4582_v17  ;;  %v4622_v40 = vld [vmem:[#allocation6 + $0xf60] sm:$0xff]  ;;  %v4619_v55 = vld [vmem:[#allocation6 + $0xf48] sm:$0xff] }
 0x3a8   :  { %7535 = vmatprep.subr.bf16.mxu1 %v9124_v20  ;;  %v9172_v20 = vcombine.high %v4579_v19, %v4583_v37  ;;  %v4623_v27 = vld [vmem:[#allocation6 + $0xf68] sm:$0xff] }
 0x3aa   :  { %7372 = vmatpush1.bf16.msra.mxu0 %v9121_v61  ;;  %v9169_v61 = vcombine.low %v4578_v54, %v4582_v17  ;;  %v4626_v54 = vld [vmem:[#allocation6 + $0xf80] sm:$0xff] }
 0x3ab   :  { %7536 = vmatpush1.bf16.msra.mxu1 %v9123_v6  ;;  %7373 = vmatprep.subr.bf16.mxu0 %v9130_v7  ;;  %v9171_v6 = vcombine.low %v4579_v19, %v4583_v37  ;;  %v9178_v7 = vcombine.high %v4586_v25, %v4590_v62  ;;  %v4630_v17 = vld [vmem:[#allocation6 + $0xfa0] sm:$0xff]  ;;  %v4627_v19 = vld [vmem:[#allocation6 + $0xf88] sm:$0xff] }
 0x3ac   :  { %7537 = vmatprep.subr.bf16.mxu1 %v9132_v26  ;;  %v9180_v26 = vcombine.high %v4587_v63, %v4591_v46  ;;  %v4631_v37 = vld [vmem:[#allocation6 + $0xfa8] sm:$0xff] }
 0x3ae   :  { %7374 = vmatpush1.bf16.msra.mxu0 %v9129_v10  ;;  %v9177_v10 = vcombine.low %v4586_v25, %v4590_v62  ;;  %v4634_v25 = vld [vmem:[#allocation6 + $0xfc0] sm:$0xff] }
 0x3af   :  { %7538 = vmatpush1.bf16.msra.mxu1 %v9131_v18  ;;  %7375 = vmatprep.subr.bf16.mxu0 %v9138_v59  ;;  %v9179_v18 = vcombine.low %v4587_v63, %v4591_v46  ;;  %v9186_v59 = vcombine.high %v4594_v28, %v4598_v4  ;;  %v4638_v62 = vld [vmem:[#allocation6 + $0xfe0] sm:$0xff]  ;;  %v4635_v63 = vld [vmem:[#allocation6 + $0xfc8] sm:$0xff] }
 0x3b0   :  { %7539 = vmatprep.subr.bf16.mxu1 %v9140_v47  ;;  %v9188_v47 = vcombine.high %v4595_v9, %v4599_v49  ;;  %v4639_v46 = vld [vmem:[#allocation6 + $0xfe8] sm:$0xff] }
 0x3b2   :  { %7376 = vmatpush1.bf16.msra.mxu0 %v9137_v11  ;;  %v9185_v11 = vcombine.low %v4594_v28, %v4598_v4  ;;  %v4132_v28 = vld [vmem:[#allocation6 + $0x10] sm:$0xff] }
 0x3b3   :  { %7540 = vmatpush1.bf16.msra.mxu1 %v9139_v16  ;;  %7377 = vmatprep.subr.bf16.mxu0 %v9146_v30  ;;  %v9187_v16 = vcombine.low %v4595_v9, %v4599_v49  ;;  %v9194_v30 = vcombine.high %v4602_v0, %v4606_v2  ;;  %v4136_v4 = vld [vmem:[#allocation6 + $0x30] sm:$0xff]  ;;  %v4133_v9 = vld [vmem:[#allocation6 + $0x18] sm:$0xff] }
 0x3b4   :  { %7541 = vmatprep.subr.bf16.mxu1 %v9148_v50  ;;  %v9196_v50 = vcombine.high %v4603_v44, %v4607_v1  ;;  %v4137_v49 = vld [vmem:[#allocation6 + $0x38] sm:$0xff] }
 0x3b6   :  { %7378 = vmatpush1.bf16.msra.mxu0 %v9145_v57  ;;  %v9193_v57 = vcombine.low %v4602_v0, %v4606_v2  ;;  %v4140_v0 = vld [vmem:[#allocation6 + $0x50] sm:$0xff] }
 0x3b7   :  { %7542 = vmatpush1.bf16.msra.mxu1 %v9147_v32  ;;  %7379 = vmatprep.subr.bf16.mxu0 %v9154_v8  ;;  %v9195_v32 = vcombine.low %v4603_v44, %v4607_v1  ;;  %v9202_v8 = vcombine.high %v4610_v53, %v4614_v41  ;;  %v4144_v2 = vld [vmem:[#allocation6 + $0x70] sm:$0xff]  ;;  %v8725_v44 = vcombine.low %v4132_v28, %v4136_v4  ;;  %v4141_v1 = vld [vmem:[#allocation6 + $0x58] sm:$0xff] }
 0x3b8   :  { %7543 = vmatprep.subr.bf16.mxu1 %v9156_v34  ;;  %v9204_v34 = vcombine.high %v4611_v52, %v4615_v21 }
 0x3ba   :  { %7380 = vmatpush1.bf16.msra.mxu0 %v9153_v29  ;;  %v9201_v29 = vcombine.low %v4610_v53, %v4614_v41  ;;  %v4152_v53 = vld [vmem:[#allocation6 + $0xb0] sm:$0xff] }
 0x3bb   :  { %7544 = vmatpush1.bf16.msra.mxu1 %v9155_v15  ;;  %7381 = vmatprep.subr.bf16.mxu0 %v9162_v38  ;;  %v9203_v15 = vcombine.low %v4611_v52, %v4615_v21  ;;  %v9210_v38 = vcombine.high %v4618_v33, %v4622_v40  ;;  %v4149_v52 = vld [vmem:[#allocation6 + $0x98] sm:$0xff] }
 0x3bc   :  { %7545 = vmatprep.subr.bf16.mxu1 %v9164_v14  ;;  %v9212_v14 = vcombine.high %v4619_v55, %v4623_v27  ;;  %v4153_v21 = vld [vmem:[#allocation6 + $0xb8] sm:$0xff] }
 0x3be   :  { %7382 = vmatpush1.bf16.msra.mxu0 %v9161_v5  ;;  %v9209_v5 = vcombine.low %v4618_v33, %v4622_v40  ;;  %v4156_v33 = vld [vmem:[#allocation6 + $0xd0] sm:$0xff] }
 0x3bf   :  { %7546 = vmatpush1.bf16.msra.mxu1 %v9163_v12  ;;  %7383 = vmatprep.subr.bf16.mxu0 %v9170_v13  ;;  %v9211_v12 = vcombine.low %v4619_v55, %v4623_v27  ;;  %v9218_v13 = vcombine.high %v4626_v54, %v4630_v17  ;;  %v4160_v40 = vld [vmem:[#allocation6 + $0xf0] sm:$0xff]  ;;  %v4157_v55 = vld [vmem:[#allocation6 + $0xd8] sm:$0xff] }
 0x3c0   :  { %7547 = vmatprep.subr.bf16.mxu1 %v9172_v20  ;;  %v9220_v20 = vcombine.high %v4627_v19, %v4631_v37  ;;  %v4161_v27 = vld [vmem:[#allocation6 + $0xf8] sm:$0xff] }
 0x3c2   :  { %7384 = vmatpush1.bf16.msra.mxu0 %v9169_v61  ;;  %v9217_v61 = vcombine.low %v4626_v54, %v4630_v17  ;;  %v4164_v54 = vld [vmem:[#allocation6 + $0x110] sm:$0xff] }
 0x3c3   :  { %7548 = vmatpush1.bf16.msra.mxu1 %v9171_v6  ;;  %7385 = vmatprep.subr.bf16.mxu0 %v9178_v7  ;;  %v9219_v6 = vcombine.low %v4627_v19, %v4631_v37  ;;  %v9226_v7 = vcombine.high %v4634_v25, %v4638_v62  ;;  %v4168_v17 = vld [vmem:[#allocation6 + $0x130] sm:$0xff]  ;;  %v4165_v19 = vld [vmem:[#allocation6 + $0x118] sm:$0xff] }
 0x3c4   :  { %7549 = vmatprep.subr.bf16.mxu1 %v9180_v26  ;;  %v9228_v26 = vcombine.high %v4635_v63, %v4639_v46  ;;  %v4169_v37 = vld [vmem:[#allocation6 + $0x138] sm:$0xff] }
 0x3c6   :  { %7386 = vmatpush1.bf16.msra.mxu0 %v9177_v10  ;;  %v9225_v10 = vcombine.low %v4634_v25, %v4638_v62  ;;  %v4176_v25 = vld [vmem:[#allocation6 + $0x170] sm:$0xff]  ;;  %v4173_v62 = vld [vmem:[#allocation6 + $0x158] sm:$0xff] }
 0x3c7   :  { %7550 = vmatpush1.bf16.msra.mxu1 %v9179_v18  ;;  %7387 = vmatprep.subr.bf16.mxu0 %v9186_v59  ;;  %v9227_v18 = vcombine.low %v4635_v63, %v4639_v46  ;;  %v8726_v59 = vcombine.high %v4132_v28, %v4136_v4  ;;  %v4177_v63 = vld [vmem:[#allocation6 + $0x178] sm:$0xff]  ;;  %v8757_v46 = vcombine.low %v4164_v54, %v4168_v17  ;;  %v4184_v28 = vld [vmem:[#allocation6 + $0x1b0] sm:$0xff] }
 0x3c8   :  { %7551 = vmatprep.subr.bf16.mxu1 %v9188_v47  ;;  %v8728_v47 = vcombine.high %v4133_v9, %v4137_v49  ;;  %v4181_v4 = vld [vmem:[#allocation6 + $0x198] sm:$0xff] }
 0x3ca   :  { %7388 = vmatpush1.bf16.msra.mxu0 %v9185_v11  ;;  %v4145_v11 = vld [vmem:[#allocation6 + $0x78] sm:$0xff] }
 0x3cb   :  { %7552 = vmatpush1.bf16.msra.mxu1 %v9187_v16  ;;  %7389 = vmatprep.subr.bf16.mxu0 %v9194_v30  ;;  %v8727_v16 = vcombine.low %v4133_v9, %v4137_v49  ;;  %v8734_v30 = vcombine.high %v4140_v0, %v4144_v2  ;;  %v8736_v41 = vcombine.high %v4141_v1, %v4145_v11  ;;  %v4185_v9 = vld [vmem:[#allocation6 + $0x1b8] sm:$0xff] }
 0x3cc   :  { %7553 = vmatprep.subr.bf16.mxu1 %v9196_v50  ;;  %v4148_v50 = vld [vmem:[#allocation6 + $0x90] sm:$0xff] }
 0x3ce   :  { %7390 = vmatpush1.bf16.msra.mxu0 %v9193_v57  ;;  %v8733_v57 = vcombine.low %v4140_v0, %v4144_v2  ;;  %v4192_v0 = vld [vmem:[#allocation6 + $0x1f0] sm:$0xff]  ;;  %v4189_v2 = vld [vmem:[#allocation6 + $0x1d8] sm:$0xff] }
 0x3cf   :  { %7554 = vmatpush1.bf16.msra.mxu1 %v9195_v32  ;;  %7391 = vmatprep.subr.bf16.mxu0 %v9202_v8  ;;  %v8735_v32 = vcombine.low %v4141_v1, %v4145_v11  ;;  %v8742_v8 = vcombine.high %v4148_v50, %v4152_v53  ;;  %v8775_v11 = vcombine.low %v4181_v4, %v4185_v9 }
 0x3d0   :  { %7555 = vmatprep.subr.bf16.mxu1 %v9204_v34  ;;  %v8744_v34 = vcombine.high %v4149_v52, %v4153_v21 }
 0x3d2   :  { %7392 = vmatpush1.bf16.msra.mxu0 %v9201_v29  ;;  %v8741_v29 = vcombine.low %v4148_v50, %v4152_v53  ;;  %v4196_v50 = vld [vmem:[#allocation6 + $0x210] sm:$0xff] }
 0x3d3   :  { %7556 = vmatpush1.bf16.msra.mxu1 %v9203_v15  ;;  %7393 = vmatprep.subr.bf16.mxu0 %v9210_v38  ;;  %v8743_v15 = vcombine.low %v4149_v52, %v4153_v21  ;;  %v8750_v38 = vcombine.high %v4156_v33, %v4160_v40  ;;  %v4200_v53 = vld [vmem:[#allocation6 + $0x230] sm:$0xff]  ;;  %v4201_v52 = vld [vmem:[#allocation6 + $0x238] sm:$0xff] }
 0x3d4   :  { %7557 = vmatprep.subr.bf16.mxu1 %v9212_v14  ;;  %v8752_v14 = vcombine.high %v4157_v55, %v4161_v27 }
 0x3d6   :  { %7394 = vmatpush1.bf16.msra.mxu0 %v9209_v5  ;;  %v8751_v5 = vcombine.low %v4157_v55, %v4161_v27  ;;  %v4209_v55 = vld [vmem:[#allocation6 + $0x278] sm:$0xff]  ;;  %v8789_v27 = vcombine.low %v4196_v50, %v4200_v53 }
 0x3d7   :  { %7558 = vmatpush1.bf16.msra.mxu1 %v9211_v12  ;;  %7395 = vmatprep.subr.bf16.mxu0 %v9218_v13  ;;  %v8758_v12 = vcombine.high %v4164_v54, %v4168_v17  ;;  %v8760_v13 = vcombine.high %v4165_v19, %v4169_v37  ;;  %v4216_v54 = vld [vmem:[#allocation6 + $0x2b0] sm:$0xff]  ;;  %v4213_v17 = vld [vmem:[#allocation6 + $0x298] sm:$0xff] }
 0x3d8   :  { %7559 = vmatprep.subr.bf16.mxu1 %v9220_v20  ;;  %v4172_v20 = vld [vmem:[#allocation6 + $0x150] sm:$0xff] }
 0x3d9   :  { %v8765_v49 = vcombine.low %v4172_v20, %v4176_v25 }
 0x3da   :  { %7396 = vmatpush1.bf16.msra.mxu0 %v9217_v61  ;;  %v8759_v61 = vcombine.low %v4165_v19, %v4169_v37  ;;  %v4217_v19 = vld [vmem:[#allocation6 + $0x2b8] sm:$0xff] }
 0x3db   :  { %7560 = vmatpush1.bf16.msra.mxu1 %v9219_v6  ;;  %7397 = vmatprep.subr.bf16.mxu0 %v9226_v7  ;;  %v8766_v6 = vcombine.high %v4172_v20, %v4176_v25  ;;  %v8768_v7 = vcombine.high %v4173_v62, %v4177_v63  ;;  %v4224_v20 = vld [vmem:[#allocation6 + $0x2f0] sm:$0xff]  ;;  %v4221_v25 = vld [vmem:[#allocation6 + $0x2d8] sm:$0xff] }
 0x3dc   :  { %7561 = vmatprep.subr.bf16.mxu1 %v9228_v26  ;;  %v4180_v26 = vld [vmem:[#allocation6 + $0x190] sm:$0xff] }
 0x3dd   :  { %v8773_v1 = vcombine.low %v4180_v26, %v4184_v28 }
 0x3de   :  { %7398 = vmatpush1.bf16.msra.mxu0 %v9225_v10  ;;  %v8767_v10 = vcombine.low %v4173_v62, %v4177_v63  ;;  %v4225_v62 = vld [vmem:[#allocation6 + $0x2f8] sm:$0xff] }
 0x3df   :  { %7562 = vmatpush1.bf16.msra.mxu1 %v9227_v18  ;;  %7572 = vmatprep.subr.bf16.mxu0 %v8726_v59  ;;  %v8774_v18 = vcombine.high %v4180_v26, %v4184_v28  ;;  %v8776_v59 = vcombine.high %v4181_v4, %v4185_v9  ;;  %v4232_v26 = vld [vmem:[#allocation6 + $0x330] sm:$0xff]  ;;  %v4229_v28 = vld [vmem:[#allocation6 + $0x318] sm:$0xff] }
 0x3e0   :  { %7736 = vmatprep.subr.bf16.mxu1 %v8728_v47  ;;  %v4188_v47 = vld [vmem:[#allocation6 + $0x1d0] sm:$0xff]  ;;  %v4233_v4 = vld [vmem:[#allocation6 + $0x338] sm:$0xff] }
 0x3e1   :  { %7400 = vmatmul.mubr.bf16.vlgmr.msra.gmra.mrb[32].mxu0 %v9987_v23  ;;  %v8781_v21 = vcombine.low %v4188_v47, %v4192_v0 }
 0x3e2   :  { %7564 = vmatmul.mubr.bf16.vlgmr.msra.gmra.mrb[32].mxu1 %v9987_v23  ;;  %7573 = vmatpush1.bf16.msra.mxu0 %v8725_v44  ;;  %v4193_v44 = vld [vmem:[#allocation6 + $0x1f8] sm:$0xff] }
 0x3e3   :  { %7604 = vmatprep.mubr.bf16.mxu0 %v9936_v24  ;;  %7737 = vmatpush1.bf16.msra.mxu1 %v8727_v16  ;;  %v8782_v16 = vcombine.high %v4188_v47, %v4192_v0  ;;  %v4240_v47 = vld [vmem:[#allocation6 + $0x370] sm:$0xff]  ;;  %v4237_v0 = vld [vmem:[#allocation6 + $0x358] sm:$0xff] }
 0x3e4   :  { %7768 = vmatprep.mubr.bf16.mxu1 %v9936_v24  ;;  %7574 = vmatprep.subr.bf16.mxu0 %v8734_v30  ;;  %v8749_v24 = vcombine.low %v4156_v33, %v4160_v40  ;;  %v8784_v30 = vcombine.high %v4189_v2, %v4193_v44  ;;  %v4208_v33 = vld [vmem:[#allocation6 + $0x270] sm:$0xff]  ;;  %v4205_v40 = vld [vmem:[#allocation6 + $0x258] sm:$0xff] }
 0x3e5   :  { %7738 = vmatprep.subr.bf16.mxu1 %v8736_v41  ;;  %v4197_v41 = vld [vmem:[#allocation6 + $0x218] sm:$0xff] }
 0x3e6   :  { %7575 = vmatpush1.bf16.msra.mxu0 %v8733_v57  ;;  %v8783_v57 = vcombine.low %v4189_v2, %v4193_v44  ;;  %v4241_v2 = vld [vmem:[#allocation6 + $0x378] sm:$0xff] }
 0x3e7   :  { %7739 = vmatpush1.bf16.msra.mxu1 %v8735_v32  ;;  %7576 = vmatprep.subr.bf16.mxu0 %v8742_v8  ;;  %v8790_v32 = vcombine.high %v4196_v50, %v4200_v53  ;;  %v8792_v8 = vcombine.high %v4197_v41, %v4201_v52  ;;  %v4248_v50 = vld [vmem:[#allocation6 + $0x3b0] sm:$0xff]  ;;  %v4245_v53 = vld [vmem:[#allocation6 + $0x398] sm:$0xff] }
 0x3e8   :  { %7740 = vmatprep.subr.bf16.mxu1 %v8744_v34  ;;  %v4204_v34 = vld [vmem:[#allocation6 + $0x250] sm:$0xff] }
 0x3e9   :  { %v8797_v37 = vcombine.low %v4204_v34, %v4208_v33 }
 0x3ea   :  { %7577 = vmatpush1.bf16.msra.mxu0 %v8741_v29  ;;  %v8791_v29 = vcombine.low %v4197_v41, %v4201_v52  ;;  %v4249_v41 = vld [vmem:[#allocation6 + $0x3b8] sm:$0xff] }
 0x3eb   :  { %7741 = vmatpush1.bf16.msra.mxu1 %v8743_v15  ;;  %7578 = vmatprep.subr.bf16.mxu0 %v8750_v38  ;;  %v8798_v15 = vcombine.high %v4204_v34, %v4208_v33  ;;  %v8800_v38 = vcombine.high %v4205_v40, %v4209_v55  ;;  %v4256_v34 = vld [vmem:[#allocation6 + $0x3f0] sm:$0xff]  ;;  %v4253_v33 = vld [vmem:[#allocation6 + $0x3d8] sm:$0xff] }
 0x3ec   :  { %7742 = vmatprep.subr.bf16.mxu1 %v8752_v14  ;;  %v4212_v14 = vld [vmem:[#allocation6 + $0x290] sm:$0xff] }
 0x3ed   :  { %v8805_v63 = vcombine.low %v4212_v14, %v4216_v54 }
 0x3ee   :  { %7579 = vmatpush1.bf16.msra.mxu0 %v8749_v24  ;;  %v8799_v24 = vcombine.low %v4205_v40, %v4209_v55  ;;  %v4257_v40 = vld [vmem:[#allocation6 + $0x3f8] sm:$0xff] }
 0x3ef   :  { %7743 = vmatpush1.bf16.msra.mxu1 %v8751_v5  ;;  %7580 = vmatprep.subr.bf16.mxu0 %v8758_v12  ;;  %v8806_v5 = vcombine.high %v4212_v14, %v4216_v54  ;;  %v8808_v12 = vcombine.high %v4213_v17, %v4217_v19  ;;  %v4264_v14 = vld [vmem:[#allocation6 + $0x430] sm:$0xff]  ;;  %v4261_v54 = vld [vmem:[#allocation6 + $0x418] sm:$0xff] }
 0x3f0   :  { %7744 = vmatprep.subr.bf16.mxu1 %v8760_v13  ;;  %v4220_v13 = vld [vmem:[#allocation6 + $0x2d0] sm:$0xff] }
 0x3f1   :  { %v8813_v9 = vcombine.low %v4220_v13, %v4224_v20 }
 0x3f2   :  { %7581 = vmatpush1.bf16.msra.mxu0 %v8757_v46  ;;  %v8807_v46 = vcombine.low %v4213_v17, %v4217_v19  ;;  %v4265_v17 = vld [vmem:[#allocation6 + $0x438] sm:$0xff] }
 0x3f3   :  { %7745 = vmatpush1.bf16.msra.mxu1 %v8759_v61  ;;  %7582 = vmatprep.subr.bf16.mxu0 %v8766_v6  ;;  %v8814_v61 = vcombine.high %v4220_v13, %v4224_v20  ;;  %v8816_v6 = vcombine.high %v4221_v25, %v4225_v62  ;;  %v4272_v13 = vld [vmem:[#allocation6 + $0x470] sm:$0xff] }
 0x3f4   :  { %7746 = vmatprep.subr.bf16.mxu1 %v8768_v7  ;;  %v4228_v7 = vld [vmem:[#allocation6 + $0x310] sm:$0xff] }
 0x3f5   :  { %v8821_v44 = vcombine.low %v4228_v7, %v4232_v26 }
 0x3f6   :  { %7583 = vmatpush1.bf16.msra.mxu0 %v8765_v49  ;;  %v8815_v49 = vcombine.low %v4221_v25, %v4225_v62  ;;  %v4269_v25 = vld [vmem:[#allocation6 + $0x458] sm:$0xff] }
 0x3f7   :  { %7747 = vmatpush1.bf16.msra.mxu1 %v8767_v10  ;;  %7584 = vmatprep.subr.bf16.mxu0 %v8774_v18  ;;  %v8822_v10 = vcombine.high %v4228_v7, %v4232_v26  ;;  %v8824_v18 = vcombine.high %v4229_v28, %v4233_v4  ;;  %v4273_v62 = vld [vmem:[#allocation6 + $0x478] sm:$0xff] }
 0x3f8   :  { %7748 = vmatprep.subr.bf16.mxu1 %v8776_v59  ;;  %v4236_v59 = vld [vmem:[#allocation6 + $0x350] sm:$0xff]  ;;  %v8864_v7 = vcombine.high %v4269_v25, %v4273_v62  ;;  %v4277_v26 = vld [vmem:[#allocation6 + $0x498] sm:$0xff] }
 0x3f9   :  { %v8829_v52 = vcombine.low %v4236_v59, %v4240_v47 }
 0x3fa   :  { %7585 = vmatpush1.bf16.msra.mxu0 %v8773_v1  ;;  %v8823_v1 = vcombine.low %v4229_v28, %v4233_v4  ;;  %v4281_v28 = vld [vmem:[#allocation6 + $0x4b8] sm:$0xff] }
 0x3fb   :  { %7749 = vmatpush1.bf16.msra.mxu1 %v8775_v11  ;;  %7586 = vmatprep.subr.bf16.mxu0 %v8782_v16  ;;  %v8830_v11 = vcombine.high %v4236_v59, %v4240_v47  ;;  %v8832_v16 = vcombine.high %v4237_v0, %v4241_v2  ;;  %v4288_v59 = vld [vmem:[#allocation6 + $0x4f0] sm:$0xff]  ;;  %v4285_v47 = vld [vmem:[#allocation6 + $0x4d8] sm:$0xff] }
 0x3fc   :  { %7750 = vmatprep.subr.bf16.mxu1 %v8784_v30  ;;  %v4244_v30 = vld [vmem:[#allocation6 + $0x390] sm:$0xff] }
 0x3fd   :  { %v8837_v55 = vcombine.low %v4244_v30, %v4248_v50 }
 0x3fe   :  { %7587 = vmatpush1.bf16.msra.mxu0 %v8781_v21  ;;  %v8831_v21 = vcombine.low %v4237_v0, %v4241_v2  ;;  %v4289_v0 = vld [vmem:[#allocation6 + $0x4f8] sm:$0xff] }
 0x3ff   :  { %7751 = vmatpush1.bf16.msra.mxu1 %v8783_v57  ;;  %7588 = vmatprep.subr.bf16.mxu0 %v8790_v32  ;;  %v8838_v57 = vcombine.high %v4244_v30, %v4248_v50  ;;  %v8840_v32 = vcombine.high %v4245_v53, %v4249_v41  ;;  %v4293_v30 = vld [vmem:[#allocation6 + $0x518] sm:$0xff] }
 0x400   :  { %7752 = vmatprep.subr.bf16.mxu1 %v8792_v8  ;;  %v4252_v8 = vld [vmem:[#allocation6 + $0x3d0] sm:$0xff]  ;;  %v4297_v50 = vld [vmem:[#allocation6 + $0x538] sm:$0xff] }
 0x401   :  { %v8845_v19 = vcombine.low %v4252_v8, %v4256_v34 }
 0x402   :  { %7589 = vmatpush1.bf16.msra.mxu0 %v8789_v27  ;;  %v8839_v27 = vcombine.low %v4245_v53, %v4249_v41  ;;  %v8879_v53 = vcombine.low %v4285_v47, %v4289_v0 }
 0x403   :  { %7753 = vmatpush1.bf16.msra.mxu1 %v8791_v29  ;;  %7590 = vmatprep.subr.bf16.mxu0 %v8798_v15  ;;  %v8846_v29 = vcombine.high %v4252_v8, %v4256_v34  ;;  %v8848_v15 = vcombine.high %v4253_v33, %v4257_v40  ;;  %v4305_v8 = vld [vmem:[#allocation6 + $0x578] sm:$0xff] }
 0x404   :  { %7754 = vmatprep.subr.bf16.mxu1 %v8800_v38  ;;  %v4260_v38 = vld [vmem:[#allocation6 + $0x410] sm:$0xff] }
 0x405   :  { %v8853_v20 = vcombine.low %v4260_v38, %v4264_v14 }
 0x406   :  { %7591 = vmatpush1.bf16.msra.mxu0 %v8797_v37  ;;  %v8847_v37 = vcombine.low %v4253_v33, %v4257_v40  ;;  %v8887_v33 = vcombine.low %v4293_v30, %v4297_v50 }
 0x407   :  { %7755 = vmatpush1.bf16.msra.mxu1 %v8799_v24  ;;  %7592 = vmatprep.subr.bf16.mxu0 %v8806_v5  ;;  %v8854_v24 = vcombine.high %v4260_v38, %v4264_v14  ;;  %v8856_v5 = vcombine.high %v4261_v54, %v4265_v17  ;;  %v4313_v38 = vld [vmem:[#allocation6 + $0x5b8] sm:$0xff] }
 0x408   :  { %7756 = vmatprep.subr.bf16.mxu1 %v8808_v12  ;;  %v4268_v12 = vld [vmem:[#allocation6 + $0x450] sm:$0xff] }
 0x409   :  { %v8861_v4 = vcombine.low %v4268_v12, %v4272_v13 }
 0x40a   :  { %7593 = vmatpush1.bf16.msra.mxu0 %v8805_v63  ;;  %v8855_v63 = vcombine.low %v4261_v54, %v4265_v17 }
 0x40b   :  { %7757 = vmatpush1.bf16.msra.mxu1 %v8807_v46  ;;  %7594 = vmatprep.subr.bf16.mxu0 %v8814_v61  ;;  %v8862_v46 = vcombine.high %v4268_v12, %v4272_v13  ;;  %v4276_v61 = vld [vmem:[#allocation6 + $0x490] sm:$0xff]  ;;  %v4321_v12 = vld [vmem:[#allocation6 + $0x5f8] sm:$0xff] }
 0x40c   :  { %7758 = vmatprep.subr.bf16.mxu1 %v8816_v6  ;;  %v4280_v6 = vld [vmem:[#allocation6 + $0x4b0] sm:$0xff] }
 0x40d   :  { %v8869_v2 = vcombine.low %v4276_v61, %v4280_v6 }
 0x40e   :  { %7595 = vmatpush1.bf16.msra.mxu0 %v8813_v9  ;;  %v8863_v9 = vcombine.low %v4269_v25, %v4273_v62 }
 0x40f   :  { %7759 = vmatpush1.bf16.msra.mxu1 %v8815_v49  ;;  %7596 = vmatprep.subr.bf16.mxu0 %v8822_v10  ;;  %v8870_v49 = vcombine.high %v4276_v61, %v4280_v6  ;;  %v8872_v10 = vcombine.high %v4277_v26, %v4281_v28  ;;  %v4325_v61 = vld [vmem:[#allocation6 + $0x618] sm:$0xff] }
 0x410   :  { %7760 = vmatprep.subr.bf16.mxu1 %v8824_v18  ;;  %v4284_v18 = vld [vmem:[#allocation6 + $0x4d0] sm:$0xff]  ;;  %v4329_v6 = vld [vmem:[#allocation6 + $0x638] sm:$0xff] }
 0x412   :  { %7597 = vmatpush1.bf16.msra.mxu0 %v8821_v44  ;;  %v8878_v44 = vcombine.high %v4284_v18, %v4288_v59 }
 0x413   :  { %7761 = vmatpush1.bf16.msra.mxu1 %v8823_v1  ;;  %7598 = vmatprep.subr.bf16.mxu0 %v8830_v11  ;;  %v8880_v1 = vcombine.high %v4285_v47, %v4289_v0  ;;  %v4292_v11 = vld [vmem:[#allocation6 + $0x510] sm:$0xff]  ;;  %v8919_v47 = vcombine.low %v4325_v61, %v4329_v6 }
 0x414   :  { %7762 = vmatprep.subr.bf16.mxu1 %v8832_v16  ;;  %v4296_v16 = vld [vmem:[#allocation6 + $0x530] sm:$0xff] }
 0x415   :  { %v8886_v41 = vcombine.high %v4292_v11, %v4296_v16  ;;  %v8885_v34 = vcombine.low %v4292_v11, %v4296_v16  ;;  %v4345_v11 = vld [vmem:[#allocation6 + $0x6b8] sm:$0xff] }
 0x416   :  { %7599 = vmatpush1.bf16.msra.mxu0 %v8829_v52  ;;  %v8888_v52 = vcombine.high %v4293_v30, %v4297_v50 }
 0x417   :  { %7763 = vmatpush1.bf16.msra.mxu1 %v8831_v21  ;;  %7600 = vmatprep.subr.bf16.mxu0 %v8838_v57  ;;  %v4300_v21 = vld [vmem:[#allocation6 + $0x550] sm:$0xff] }
 0x418   :  { %7764 = vmatprep.subr.bf16.mxu1 %v8840_v32  ;;  %v4304_v57 = vld [vmem:[#allocation6 + $0x570] sm:$0xff]  ;;  %v4301_v32 = vld [vmem:[#allocation6 + $0x558] sm:$0xff] }
 0x419   :  { %v8894_v40 = vcombine.high %v4300_v21, %v4304_v57  ;;  %v8893_v14 = vcombine.low %v4300_v21, %v4304_v57  ;;  %v8895_v54 = vcombine.low %v4301_v32, %v4305_v8  ;;  %v4353_v21 = vld [vmem:[#allocation6 + $0x6f8] sm:$0xff] }
 0x41a   :  { %7601 = vmatpush1.bf16.msra.mxu0 %v8837_v55  ;;  %v8896_v55 = vcombine.high %v4301_v32, %v4305_v8 }
 0x41b   :  { %7765 = vmatpush1.bf16.msra.mxu1 %v8839_v27  ;;  %7602 = vmatprep.subr.bf16.mxu0 %v8846_v29  ;;  %v4308_v27 = vld [vmem:[#allocation6 + $0x590] sm:$0xff] }
 0x41c   :  { %7766 = vmatprep.subr.bf16.mxu1 %v8848_v15  ;;  %v4312_v29 = vld [vmem:[#allocation6 + $0x5b0] sm:$0xff]  ;;  %v4309_v15 = vld [vmem:[#allocation6 + $0x598] sm:$0xff] }
 0x41d   :  { %v8902_v17 = vcombine.high %v4308_v27, %v4312_v29  ;;  %v8901_v13 = vcombine.low %v4308_v27, %v4312_v29  ;;  %v4361_v27 = vld [vmem:[#allocation6 + $0x738] sm:$0xff] }
 0x41e   :  { %7603 = vmatpush1.bf16.msra.mxu0 %v8845_v19  ;;  %v8904_v19 = vcombine.high %v4309_v15, %v4313_v38 }
 0x41f   :  { %7767 = vmatpush1.bf16.msra.mxu1 %v8847_v37  ;;  %7613 = vmatprep.subr.bf16.mxu0 %v8854_v24  ;;  %v4316_v37 = vld [vmem:[#allocation6 + $0x5d0] sm:$0xff] }
 0x420   :  { %7777 = vmatprep.subr.bf16.mxu1 %v8856_v5  ;;  %v4320_v24 = vld [vmem:[#allocation6 + $0x5f0] sm:$0xff]  ;;  %v4317_v5 = vld [vmem:[#allocation6 + $0x5d8] sm:$0xff] }
 0x421   :  { %7605 = vmatmul.mubr.bf16.vlgmr.msra.gmra.mrb[36].mxu0 %v9926_v56  ;;  %v8910_v25 = vcombine.high %v4316_v37, %v4320_v24  ;;  %v8912_v62 = vcombine.high %v4317_v5, %v4321_v12 }
 0x422   :  { %7769 = vmatmul.mubr.bf16.vlgmr.msra.gmra.mrb[36].mxu1 %v9926_v56  ;;  %7614 = vmatpush1.bf16.msra.mxu0 %v8853_v20  ;;  %v8871_v56 = vcombine.low %v4277_v26, %v4281_v28  ;;  %v8903_v20 = vcombine.low %v4309_v15, %v4313_v38  ;;  %v8911_v26 = vcombine.low %v4317_v5, %v4321_v12 }
 0x423   :  { %7645 = vmatprep.mubr.bf16.mxu0 %v9941_v48  ;;  %7778 = vmatpush1.bf16.msra.mxu1 %v8855_v63  ;;  %v4324_v63 = vld [vmem:[#allocation6 + $0x610] sm:$0xff] }
 0x424   :  { %7809 = vmatprep.mubr.bf16.mxu1 %v9941_v48  ;;  %7615 = vmatprep.subr.bf16.mxu0 %v8862_v46  ;;  %v8877_v48 = vcombine.low %v4284_v18, %v4288_v59  ;;  %v4328_v46 = vld [vmem:[#allocation6 + $0x630] sm:$0xff]  ;;  %v4337_v18 = vld [vmem:[#allocation6 + $0x678] sm:$0xff] }
 0x425   :  { %7779 = vmatprep.subr.bf16.mxu1 %v8864_v7  ;;  %v8909_v7 = vcombine.low %v4316_v37, %v4320_v24  ;;  %v8918_v28 = vcombine.high %v4324_v63, %v4328_v46  ;;  %v8917_v59 = vcombine.low %v4324_v63, %v4328_v46  ;;  %v4369_v37 = vld [vmem:[#allocation6 + $0x778] sm:$0xff] }
 0x426   :  { %7616 = vmatpush1.bf16.msra.mxu0 %v8861_v4  ;;  %v8920_v4 = vcombine.high %v4325_v61, %v4329_v6  ;;  %v4377_v63 = vld [vmem:[#allocation6 + $0x7b8] sm:$0xff] }
 0x427   :  { %7780 = vmatpush1.bf16.msra.mxu1 %v8863_v9  ;;  %7617 = vmatprep.subr.bf16.mxu0 %v8870_v49  ;;  %v4332_v9 = vld [vmem:[#allocation6 + $0x650] sm:$0xff] }
 0x428   :  { %7781 = vmatprep.subr.bf16.mxu1 %v8872_v10  ;;  %v4336_v49 = vld [vmem:[#allocation6 + $0x670] sm:$0xff]  ;;  %v4333_v10 = vld [vmem:[#allocation6 + $0x658] sm:$0xff] }
 0x429   :  { %v8926_v0 = vcombine.high %v4332_v9, %v4336_v49  ;;  %v8925_v16 = vcombine.low %v4332_v9, %v4336_v49  ;;  %v8927_v30 = vcombine.low %v4333_v10, %v4337_v18  ;;  %v4385_v9 = vld [vmem:[#allocation6 + $0x7f8] sm:$0xff] }
 0x42a   :  { %7618 = vmatpush1.bf16.msra.mxu0 %v8869_v2  ;;  %v8928_v2 = vcombine.high %v4333_v10, %v4337_v18 }
 0x42b   :  { %7782 = vmatpush1.bf16.msra.mxu1 %v8871_v56  ;;  %7619 = vmatprep.subr.bf16.mxu0 %v8878_v44  ;;  %v4340_v56 = vld [vmem:[#allocation6 + $0x690] sm:$0xff] }
 0x42c   :  { %7783 = vmatprep.subr.bf16.mxu1 %v8880_v1  ;;  %v4344_v44 = vld [vmem:[#allocation6 + $0x6b0] sm:$0xff]  ;;  %v4341_v1 = vld [vmem:[#allocation6 + $0x698] sm:$0xff] }
 0x42d   :  { %v8934_v50 = vcombine.high %v4340_v56, %v4344_v44  ;;  %v8933_v57 = vcombine.low %v4340_v56, %v4344_v44  ;;  %v8935_v32 = vcombine.low %v4341_v1, %v4345_v11  ;;  %v4393_v56 = vld [vmem:[#allocation6 + $0x838] sm:$0xff] }
 0x42e   :  { %7620 = vmatpush1.bf16.msra.mxu0 %v8877_v48  ;;  %v8936_v48 = vcombine.high %v4341_v1, %v4345_v11 }
 0x42f   :  { %7784 = vmatpush1.bf16.msra.mxu1 %v8879_v53  ;;  %7621 = vmatprep.subr.bf16.mxu0 %v8886_v41  ;;  %v4348_v53 = vld [vmem:[#allocation6 + $0x6d0] sm:$0xff] }
 0x430   :  { %7785 = vmatprep.subr.bf16.mxu1 %v8888_v52  ;;  %v4352_v41 = vld [vmem:[#allocation6 + $0x6f0] sm:$0xff]  ;;  %v4349_v52 = vld [vmem:[#allocation6 + $0x6d8] sm:$0xff] }
 0x431   :  { %v8942_v8 = vcombine.high %v4348_v53, %v4352_v41  ;;  %v8941_v29 = vcombine.low %v4348_v53, %v4352_v41  ;;  %v8943_v15 = vcombine.low %v4349_v52, %v4353_v21  ;;  %v4397_v53 = vld [vmem:[#allocation6 + $0x858] sm:$0xff] }
 0x432   :  { %7622 = vmatpush1.bf16.msra.mxu0 %v8885_v34  ;;  %v8944_v34 = vcombine.high %v4349_v52, %v4353_v21  ;;  %v4401_v41 = vld [vmem:[#allocation6 + $0x878] sm:$0xff] }
 0x433   :  { %7786 = vmatpush1.bf16.msra.mxu1 %v8887_v33  ;;  %7623 = vmatprep.subr.bf16.mxu0 %v8894_v40  ;;  %v4356_v33 = vld [vmem:[#allocation6 + $0x710] sm:$0xff] }
 0x434   :  { %7787 = vmatprep.subr.bf16.mxu1 %v8896_v55  ;;  %v4360_v40 = vld [vmem:[#allocation6 + $0x730] sm:$0xff]  ;;  %v4357_v55 = vld [vmem:[#allocation6 + $0x718] sm:$0xff] }
 0x435   :  { %v8950_v38 = vcombine.high %v4356_v33, %v4360_v40  ;;  %v8949_v24 = vcombine.low %v4356_v33, %v4360_v40  ;;  %v8951_v5 = vcombine.low %v4357_v55, %v4361_v27  ;;  %v4409_v33 = vld [vmem:[#allocation6 + $0x8b8] sm:$0xff] }
 0x436   :  { %7624 = vmatpush1.bf16.msra.mxu0 %v8893_v14  ;;  %v8952_v14 = vcombine.high %v4357_v55, %v4361_v27  ;;  %v8991_v55 = vcombine.low %v4397_v53, %v4401_v41 }
 0x437   :  { %7788 = vmatpush1.bf16.msra.mxu1 %v8895_v54  ;;  %7625 = vmatprep.subr.bf16.mxu0 %v8902_v17  ;;  %v4364_v54 = vld [vmem:[#allocation6 + $0x750] sm:$0xff] }
 0x438   :  { %7789 = vmatprep.subr.bf16.mxu1 %v8904_v19  ;;  %v4368_v17 = vld [vmem:[#allocation6 + $0x770] sm:$0xff]  ;;  %v4365_v19 = vld [vmem:[#allocation6 + $0x758] sm:$0xff] }
 0x439   :  { %v8958_v12 = vcombine.high %v4364_v54, %v4368_v17  ;;  %v8957_v46 = vcombine.low %v4364_v54, %v4368_v17  ;;  %v8959_v61 = vcombine.low %v4365_v19, %v4369_v37  ;;  %v4417_v54 = vld [vmem:[#allocation6 + $0x8f8] sm:$0xff] }
 0x43a   :  { %7626 = vmatpush1.bf16.msra.mxu0 %v8901_v13  ;;  %v8960_v13 = vcombine.high %v4365_v19, %v4369_v37 }
 0x43b   :  { %7790 = vmatpush1.bf16.msra.mxu1 %v8903_v20  ;;  %7627 = vmatprep.subr.bf16.mxu0 %v8910_v25  ;;  %v4372_v20 = vld [vmem:[#allocation6 + $0x790] sm:$0xff] }
 0x43c   :  { %7791 = vmatprep.subr.bf16.mxu1 %v8912_v62  ;;  %v4376_v25 = vld [vmem:[#allocation6 + $0x7b0] sm:$0xff]  ;;  %v4373_v62 = vld [vmem:[#allocation6 + $0x798] sm:$0xff] }
 0x43d   :  { %v8966_v6 = vcombine.high %v4372_v20, %v4376_v25  ;;  %v8965_v49 = vcombine.low %v4372_v20, %v4376_v25  ;;  %v8967_v10 = vcombine.low %v4373_v62, %v4377_v63 }
 0x43e   :  { %7628 = vmatpush1.bf16.msra.mxu0 %v8909_v7  ;;  %v8968_v7 = vcombine.high %v4373_v62, %v4377_v63  ;;  %v4428_v63 = vld [vmem:[#allocation6 + $0x950] sm:$0xff] }
 0x43f   :  { %7792 = vmatpush1.bf16.msra.mxu1 %v8911_v26  ;;  %7629 = vmatprep.subr.bf16.mxu0 %v8918_v28  ;;  %v4380_v26 = vld [vmem:[#allocation6 + $0x7d0] sm:$0xff] }
 0x440   :  { %7793 = vmatprep.subr.bf16.mxu1 %v8920_v4  ;;  %v4384_v28 = vld [vmem:[#allocation6 + $0x7f0] sm:$0xff]  ;;  %v4381_v4 = vld [vmem:[#allocation6 + $0x7d8] sm:$0xff] }
 0x441   :  { %v8974_v18 = vcombine.high %v4380_v26, %v4384_v28  ;;  %v8973_v44 = vcombine.low %v4380_v26, %v4384_v28  ;;  %v8975_v1 = vcombine.low %v4381_v4, %v4385_v9 }
 0x442   :  { %7630 = vmatpush1.bf16.msra.mxu0 %v8917_v59  ;;  %v8976_v59 = vcombine.high %v4381_v4, %v4385_v9  ;;  %v4436_v9 = vld [vmem:[#allocation6 + $0x990] sm:$0xff] }
 0x443   :  { %7794 = vmatpush1.bf16.msra.mxu1 %v8919_v47  ;;  %7631 = vmatprep.subr.bf16.mxu0 %v8926_v0  ;;  %v4388_v47 = vld [vmem:[#allocation6 + $0x810] sm:$0xff] }
 0x444   :  { %7795 = vmatprep.subr.bf16.mxu1 %v8928_v2  ;;  %v4392_v0 = vld [vmem:[#allocation6 + $0x830] sm:$0xff]  ;;  %v4389_v2 = vld [vmem:[#allocation6 + $0x818] sm:$0xff] }
 0x445   :  { %v8982_v11 = vcombine.high %v4388_v47, %v4392_v0  ;;  %v8983_v52 = vcombine.low %v4389_v2, %v4393_v56 }
 0x446   :  { %7632 = vmatpush1.bf16.msra.mxu0 %v8925_v16  ;;  %v8984_v16 = vcombine.high %v4389_v2, %v4393_v56  ;;  %v4444_v56 = vld [vmem:[#allocation6 + $0x9d0] sm:$0xff] }
 0x447   :  { %7796 = vmatpush1.bf16.msra.mxu1 %v8927_v30  ;;  %7633 = vmatprep.subr.bf16.mxu0 %v8934_v50  ;;  %v4396_v30 = vld [vmem:[#allocation6 + $0x850] sm:$0xff] }
 0x448   :  { %7797 = vmatprep.subr.bf16.mxu1 %v8936_v48  ;;  %v4400_v50 = vld [vmem:[#allocation6 + $0x870] sm:$0xff]  ;;  %v8981_v48 = vcombine.low %v4388_v47, %v4392_v0 }
 0x449   :  { %v8990_v21 = vcombine.high %v4396_v30, %v4400_v50  ;;  %v8989_v40 = vcombine.low %v4396_v30, %v4400_v50 }
 0x44a   :  { %7634 = vmatpush1.bf16.msra.mxu0 %v8933_v57  ;;  %v4404_v57 = vld [vmem:[#allocation6 + $0x890] sm:$0xff] }
 0x44b   :  { %7798 = vmatpush1.bf16.msra.mxu1 %v8935_v32  ;;  %7635 = vmatprep.subr.bf16.mxu0 %v8942_v8  ;;  %v4408_v32 = vld [vmem:[#allocation6 + $0x8b0] sm:$0xff]  ;;  %v8992_v8 = vcombine.high %v4397_v53, %v4401_v41 }
 0x44c   :  { %7799 = vmatprep.subr.bf16.mxu1 %v8944_v34  ;;  %v4405_v34 = vld [vmem:[#allocation6 + $0x898] sm:$0xff]  ;;  %v8998_v27 = vcombine.high %v4404_v57, %v4408_v32  ;;  %v8997_v17 = vcombine.low %v4404_v57, %v4408_v32  ;;  %v4452_v53 = vld [vmem:[#allocation6 + $0xa10] sm:$0xff] }
 0x44d   :  { %v4456_v41 = vld [vmem:[#allocation6 + $0xa30] sm:$0xff] }
 0x44e   :  { %7636 = vmatpush1.bf16.msra.mxu0 %v8941_v29  ;;  %v9000_v29 = vcombine.high %v4405_v34, %v4409_v33 }
 0x44f   :  { %7800 = vmatpush1.bf16.msra.mxu1 %v8943_v15  ;;  %7637 = vmatprep.subr.bf16.mxu0 %v8950_v38  ;;  %v4412_v15 = vld [vmem:[#allocation6 + $0x8d0] sm:$0xff] }
 0x450   :  { %7801 = vmatprep.subr.bf16.mxu1 %v8952_v14  ;;  %v4416_v38 = vld [vmem:[#allocation6 + $0x8f0] sm:$0xff]  ;;  %v4413_v14 = vld [vmem:[#allocation6 + $0x8d8] sm:$0xff] }
 0x451   :  { %v9006_v19 = vcombine.high %v4412_v15, %v4416_v38  ;;  %v9008_v37 = vcombine.high %v4413_v14, %v4417_v54  ;;  %v9007_v20 = vcombine.low %v4413_v14, %v4417_v54  ;;  %v4468_v54 = vld [vmem:[#allocation6 + $0xa90] sm:$0xff] }
 0x452   :  { %7638 = vmatpush1.bf16.msra.mxu0 %v8949_v24  ;;  %v4420_v24 = vld [vmem:[#allocation6 + $0x910] sm:$0xff] }
 0x453   :  { %7802 = vmatpush1.bf16.msra.mxu1 %v8951_v5  ;;  %7639 = vmatprep.subr.bf16.mxu0 %v8958_v12  ;;  %v4424_v5 = vld [vmem:[#allocation6 + $0x930] sm:$0xff]  ;;  %v4421_v12 = vld [vmem:[#allocation6 + $0x918] sm:$0xff] }
 0x454   :  { %7803 = vmatprep.subr.bf16.mxu1 %v8960_v13  ;;  %v4425_v13 = vld [vmem:[#allocation6 + $0x938] sm:$0xff]  ;;  %v9014_v25 = vcombine.high %v4420_v24, %v4424_v5 }
 0x455   :  { %v9016_v62 = vcombine.high %v4421_v12, %v4425_v13  ;;  %v9015_v26 = vcombine.low %v4421_v12, %v4425_v13  ;;  %v4476_v13 = vld [vmem:[#allocation6 + $0xad0] sm:$0xff] }
 0x456   :  { %7640 = vmatpush1.bf16.msra.mxu0 %v8957_v46  ;;  %v4432_v46 = vld [vmem:[#allocation6 + $0x970] sm:$0xff] }
 0x457   :  { %7804 = vmatpush1.bf16.msra.mxu1 %v8959_v61  ;;  %7641 = vmatprep.subr.bf16.mxu0 %v8966_v6  ;;  %v4429_v61 = vld [vmem:[#allocation6 + $0x958] sm:$0xff]  ;;  %v9022_v28 = vcombine.high %v4428_v63, %v4432_v46 }
 0x458   :  { %7805 = vmatprep.subr.bf16.mxu1 %v8968_v7  ;;  %v4433_v6 = vld [vmem:[#allocation6 + $0x978] sm:$0xff]  ;;  %v9013_v7 = vcombine.low %v4420_v24, %v4424_v5 }
 0x459   :  { %v9024_v4 = vcombine.high %v4429_v61, %v4433_v6  ;;  %v9023_v47 = vcombine.low %v4429_v61, %v4433_v6  ;;  %v4484_v6 = vld [vmem:[#allocation6 + $0xb10] sm:$0xff] }
 0x45a   :  { %7642 = vmatpush1.bf16.msra.mxu0 %v8965_v49  ;;  %v4440_v49 = vld [vmem:[#allocation6 + $0x9b0] sm:$0xff] }
 0x45b   :  { %7806 = vmatpush1.bf16.msra.mxu1 %v8967_v10  ;;  %7643 = vmatprep.subr.bf16.mxu0 %v8974_v18  ;;  %v4437_v10 = vld [vmem:[#allocation6 + $0x998] sm:$0xff]  ;;  %v9030_v0 = vcombine.high %v4436_v9, %v4440_v49 }
 0x45c   :  { %7807 = vmatprep.subr.bf16.mxu1 %v8976_v59  ;;  %v4441_v18 = vld [vmem:[#allocation6 + $0x9b8] sm:$0xff]  ;;  %v9021_v59 = vcombine.low %v4428_v63, %v4432_v46 }
 0x45d   :  { %v9032_v2 = vcombine.high %v4437_v10, %v4441_v18  ;;  %v9031_v30 = vcombine.low %v4437_v10, %v4441_v18  ;;  %v4492_v18 = vld [vmem:[#allocation6 + $0xb50] sm:$0xff] }
 0x45e   :  { %7644 = vmatpush1.bf16.msra.mxu0 %v8973_v44  ;;  %v4448_v44 = vld [vmem:[#allocation6 + $0x9f0] sm:$0xff] }
 0x45f   :  { %7808 = vmatpush1.bf16.msra.mxu1 %v8975_v1  ;;  %7654 = vmatprep.subr.bf16.mxu0 %v8982_v11  ;;  %v4445_v1 = vld [vmem:[#allocation6 + $0x9d8] sm:$0xff]  ;;  %v9038_v50 = vcombine.high %v4444_v56, %v4448_v44  ;;  %v9037_v57 = vcombine.low %v4444_v56, %v4448_v44 }
 0x460   :  { %7818 = vmatprep.subr.bf16.mxu1 %v8984_v16  ;;  %v4449_v11 = vld [vmem:[#allocation6 + $0x9f8] sm:$0xff]  ;;  %v9029_v16 = vcombine.low %v4436_v9, %v4440_v49 }
 0x461   :  { %7646 = vmatmul.mubr.bf16.vlgmr.msra.gmra.mrb[36].mxu0 %v9931_v42  ;;  %v9039_v32 = vcombine.low %v4445_v1, %v4449_v11 }
 0x462   :  { %7810 = vmatmul.mubr.bf16.vlgmr.msra.gmra.mrb[36].mxu1 %v9931_v42  ;;  %7655 = vmatpush1.bf16.msra.mxu0 %v8981_v48  ;;  %v8999_v42 = vcombine.low %v4405_v34, %v4409_v33  ;;  %v9040_v48 = vcombine.high %v4445_v1, %v4449_v11  ;;  %v4460_v33 = vld [vmem:[#allocation6 + $0xa50] sm:$0xff] }
 0x463   :  { %7686 = vmatprep.mubr.bf16.mxu0 %v9992_v31  ;;  %7819 = vmatpush1.bf16.msra.mxu1 %v8983_v52  ;;  %v4453_v52 = vld [vmem:[#allocation6 + $0xa18] sm:$0xff]  ;;  %v4500_v11 = vld [vmem:[#allocation6 + $0xb90] sm:$0xff] }
 0x464   :  { %7850 = vmatprep.mubr.bf16.mxu1 %v9992_v31  ;;  %7656 = vmatprep.subr.bf16.mxu0 %v8990_v21  ;;  %v9005_v31 = vcombine.low %v4412_v15, %v4416_v38  ;;  %v4457_v21 = vld [vmem:[#allocation6 + $0xa38] sm:$0xff] }
 0x465   :  { %7820 = vmatprep.subr.bf16.mxu1 %v8992_v8  ;;  %v9046_v8 = vcombine.high %v4452_v53, %v4456_v41  ;;  %v9048_v34 = vcombine.high %v4453_v52, %v4457_v21  ;;  %v9047_v15 = vcombine.low %v4453_v52, %v4457_v21  ;;  %v4508_v21 = vld [vmem:[#allocation6 + $0xbd0] sm:$0xff] }
 0x466   :  { %7657 = vmatpush1.bf16.msra.mxu0 %v8989_v40  ;;  %v4464_v40 = vld [vmem:[#allocation6 + $0xa70] sm:$0xff] }
 0x467   :  { %7821 = vmatpush1.bf16.msra.mxu1 %v8991_v55  ;;  %7658 = vmatprep.subr.bf16.mxu0 %v8998_v27  ;;  %v4461_v55 = vld [vmem:[#allocation6 + $0xa58] sm:$0xff]  ;;  %v9054_v38 = vcombine.high %v4460_v33, %v4464_v40 }
 0x468   :  { %7822 = vmatprep.subr.bf16.mxu1 %v9000_v29  ;;  %v4465_v27 = vld [vmem:[#allocation6 + $0xa78] sm:$0xff]  ;;  %v9045_v29 = vcombine.low %v4452_v53, %v4456_v41 }
 0x469   :  { %v9056_v14 = vcombine.high %v4461_v55, %v4465_v27  ;;  %v9055_v24 = vcombine.low %v4461_v55, %v4465_v27  ;;  %v4516_v27 = vld [vmem:[#allocation6 + $0xc10] sm:$0xff] }
 0x46a   :  { %7659 = vmatpush1.bf16.msra.mxu0 %v8997_v17  ;;  %v4472_v17 = vld [vmem:[#allocation6 + $0xab0] sm:$0xff] }
 0x46b   :  { %7823 = vmatpush1.bf16.msra.mxu1 %v8999_v42  ;;  %7660 = vmatprep.subr.bf16.mxu0 %v9006_v19  ;;  %v4469_v42 = vld [vmem:[#allocation6 + $0xa98] sm:$0xff]  ;;  %v9062_v5 = vcombine.high %v4468_v54, %v4472_v17 }
 0x46c   :  { %7824 = vmatprep.subr.bf16.mxu1 %v9008_v37  ;;  %v4473_v19 = vld [vmem:[#allocation6 + $0xab8] sm:$0xff]  ;;  %v9053_v37 = vcombine.low %v4460_v33, %v4464_v40 }
 0x46d   :  { %v9064_v12 = vcombine.high %v4469_v42, %v4473_v19  ;;  %v9063_v63 = vcombine.low %v4469_v42, %v4473_v19  ;;  %v4524_v19 = vld [vmem:[#allocation6 + $0xc50] sm:$0xff] }
 0x46e   :  { %7661 = vmatpush1.bf16.msra.mxu0 %v9005_v31  ;;  %v4480_v31 = vld [vmem:[#allocation6 + $0xaf0] sm:$0xff] }
 0x46f   :  { %7825 = vmatpush1.bf16.msra.mxu1 %v9007_v20  ;;  %7662 = vmatprep.subr.bf16.mxu0 %v9014_v25  ;;  %v4477_v20 = vld [vmem:[#allocation6 + $0xad8] sm:$0xff]  ;;  %v9070_v46 = vcombine.high %v4476_v13, %v4480_v31 }
 0x470   :  { %7826 = vmatprep.subr.bf16.mxu1 %v9016_v62  ;;  %v4481_v25 = vld [vmem:[#allocation6 + $0xaf8] sm:$0xff]  ;;  %v9061_v62 = vcombine.low %v4468_v54, %v4472_v17 }
 0x471   :  { %v9072_v61 = vcombine.high %v4477_v20, %v4481_v25  ;;  %v9071_v9 = vcombine.low %v4477_v20, %v4481_v25  ;;  %v4532_v20 = vld [vmem:[#allocation6 + $0xc90] sm:$0xff] }
 0x472   :  { %7663 = vmatpush1.bf16.msra.mxu0 %v9013_v7  ;;  %v4488_v7 = vld [vmem:[#allocation6 + $0xb30] sm:$0xff] }
 0x473   :  { %7827 = vmatpush1.bf16.msra.mxu1 %v9015_v26  ;;  %7664 = vmatprep.subr.bf16.mxu0 %v9022_v28  ;;  %v4485_v26 = vld [vmem:[#allocation6 + $0xb18] sm:$0xff]  ;;  %v9078_v49 = vcombine.high %v4484_v6, %v4488_v7  ;;  %v4536_v25 = vld [vmem:[#allocation6 + $0xcb0] sm:$0xff] }
 0x474   :  { %7828 = vmatprep.subr.bf16.mxu1 %v9024_v4  ;;  %v4489_v28 = vld [vmem:[#allocation6 + $0xb38] sm:$0xff]  ;;  %v9069_v4 = vcombine.low %v4476_v13, %v4480_v31 }
 0x475   :  { %v9080_v10 = vcombine.high %v4485_v26, %v4489_v28  ;;  %v9079_v56 = vcombine.low %v4485_v26, %v4489_v28  ;;  %v4540_v28 = vld [vmem:[#allocation6 + $0xcd0] sm:$0xff] }
 0x476   :  { %7665 = vmatpush1.bf16.msra.mxu0 %v9021_v59  ;;  %v4496_v59 = vld [vmem:[#allocation6 + $0xb70] sm:$0xff] }
 0x477   :  { %7829 = vmatpush1.bf16.msra.mxu1 %v9023_v47  ;;  %7666 = vmatprep.subr.bf16.mxu0 %v9030_v0  ;;  %v4493_v47 = vld [vmem:[#allocation6 + $0xb58] sm:$0xff]  ;;  %v9086_v44 = vcombine.high %v4492_v18, %v4496_v59 }
 0x478   :  { %7830 = vmatprep.subr.bf16.mxu1 %v9032_v2  ;;  %v4497_v0 = vld [vmem:[#allocation6 + $0xb78] sm:$0xff]  ;;  %v9077_v2 = vcombine.low %v4484_v6, %v4488_v7  ;;  %v9126_v7 = vcombine.high %v4532_v20, %v4536_v25 }
 0x479   :  { %v9088_v1 = vcombine.high %v4493_v47, %v4497_v0  ;;  %v9087_v53 = vcombine.low %v4493_v47, %v4497_v0  ;;  %v4548_v47 = vld [vmem:[#allocation6 + $0xd10] sm:$0xff] }
 0x47a   :  { %7667 = vmatpush1.bf16.msra.mxu0 %v9029_v16  ;;  %v4504_v16 = vld [vmem:[#allocation6 + $0xbb0] sm:$0xff] }
 0x47b   :  { %7831 = vmatpush1.bf16.msra.mxu1 %v9031_v30  ;;  %7668 = vmatprep.subr.bf16.mxu0 %v9038_v50  ;;  %v4501_v30 = vld [vmem:[#allocation6 + $0xb98] sm:$0xff]  ;;  %v9094_v41 = vcombine.high %v4500_v11, %v4504_v16  ;;  %v4552_v0 = vld [vmem:[#allocation6 + $0xd30] sm:$0xff] }
 0x47c   :  { %7832 = vmatprep.subr.bf16.mxu1 %v9040_v48  ;;  %v4505_v50 = vld [vmem:[#allocation6 + $0xbb8] sm:$0xff]  ;;  %v9085_v48 = vcombine.low %v4492_v18, %v4496_v59 }
 0x47d   :  { %v9096_v52 = vcombine.high %v4501_v30, %v4505_v50  ;;  %v9095_v33 = vcombine.low %v4501_v30, %v4505_v50  ;;  %v4560_v30 = vld [vmem:[#allocation6 + $0xd70] sm:$0xff]  ;;  %v4557_v50 = vld [vmem:[#allocation6 + $0xd58] sm:$0xff] }
 0x47e   :  { %7669 = vmatpush1.bf16.msra.mxu0 %v9037_v57  ;;  %v4512_v57 = vld [vmem:[#allocation6 + $0xbf0] sm:$0xff] }
 0x47f   :  { %7833 = vmatpush1.bf16.msra.mxu1 %v9039_v32  ;;  %7670 = vmatprep.subr.bf16.mxu0 %v9046_v8  ;;  %v4509_v32 = vld [vmem:[#allocation6 + $0xbd8] sm:$0xff]  ;;  %v9102_v40 = vcombine.high %v4508_v21, %v4512_v57 }
 0x480   :  { %7834 = vmatprep.subr.bf16.mxu1 %v9048_v34  ;;  %v4513_v8 = vld [vmem:[#allocation6 + $0xbf8] sm:$0xff]  ;;  %v9093_v34 = vcombine.low %v4500_v11, %v4504_v16  ;;  %v4556_v16 = vld [vmem:[#allocation6 + $0xd50] sm:$0xff] }
 0x481   :  { %v9104_v55 = vcombine.high %v4509_v32, %v4513_v8  ;;  %v9103_v54 = vcombine.low %v4509_v32, %v4513_v8  ;;  %v4564_v32 = vld [vmem:[#allocation6 + $0xd90] sm:$0xff] }
 0x482   :  { %7671 = vmatpush1.bf16.msra.mxu0 %v9045_v29  ;;  %v4520_v29 = vld [vmem:[#allocation6 + $0xc30] sm:$0xff] }
 0x483   :  { %7835 = vmatpush1.bf16.msra.mxu1 %v9047_v15  ;;  %7672 = vmatprep.subr.bf16.mxu0 %v9054_v38  ;;  %v4517_v15 = vld [vmem:[#allocation6 + $0xc18] sm:$0xff]  ;;  %v9110_v17 = vcombine.high %v4516_v27, %v4520_v29  ;;  %v4568_v8 = vld [vmem:[#allocation6 + $0xdb0] sm:$0xff] }
 0x484   :  { %7836 = vmatprep.subr.bf16.mxu1 %v9056_v14  ;;  %v4521_v38 = vld [vmem:[#allocation6 + $0xc38] sm:$0xff]  ;;  %v9101_v14 = vcombine.low %v4508_v21, %v4512_v57  ;;  %v9150_v21 = vcombine.high %v4556_v16, %v4560_v30 }
 0x485   :  { %v9112_v42 = vcombine.high %v4517_v15, %v4521_v38  ;;  %v9111_v13 = vcombine.low %v4517_v15, %v4521_v38 }
 0x486   :  { %7673 = vmatpush1.bf16.msra.mxu0 %v9053_v37  ;;  %v4528_v37 = vld [vmem:[#allocation6 + $0xc70] sm:$0xff] }
 0x487   :  { %7837 = vmatpush1.bf16.msra.mxu1 %v9055_v24  ;;  %7674 = vmatprep.subr.bf16.mxu0 %v9062_v5  ;;  %v9109_v24 = vcombine.low %v4516_v27, %v4520_v29  ;;  %v4525_v5 = vld [vmem:[#allocation6 + $0xc58] sm:$0xff]  ;;  %v9118_v31 = vcombine.high %v4524_v19, %v4528_v37  ;;  %v9149_v29 = vcombine.low %v4556_v16, %v4560_v30  ;;  %v4588_v30 = vld [vmem:[#allocation6 + $0xe50] sm:$0xff] }
 0x488   :  { %7838 = vmatprep.subr.bf16.mxu1 %v9064_v12  ;;  %v4529_v12 = vld [vmem:[#allocation6 + $0xc78] sm:$0xff] }
 0x489   :  { %v9119_v6 = vcombine.low %v4525_v5, %v4529_v12 }
 0x48a   :  { %7675 = vmatpush1.bf16.msra.mxu0 %v9061_v62  ;;  %v9120_v62 = vcombine.high %v4525_v5, %v4529_v12  ;;  %v4577_v12 = vld [vmem:[#allocation6 + $0xdf8] sm:$0xff] }
 0x48b   :  { %7839 = vmatpush1.bf16.msra.mxu1 %v9063_v63  ;;  %7676 = vmatprep.subr.bf16.mxu0 %v9070_v46  ;;  %v4533_v63 = vld [vmem:[#allocation6 + $0xc98] sm:$0xff] }
 0x48c   :  { %7840 = vmatprep.subr.bf16.mxu1 %v9072_v61  ;;  %v4537_v46 = vld [vmem:[#allocation6 + $0xcb8] sm:$0xff]  ;;  %v9117_v61 = vcombine.low %v4524_v19, %v4528_v37  ;;  %v4576_v19 = vld [vmem:[#allocation6 + $0xdf0] sm:$0xff] }
 0x48d   :  { %v9128_v26 = vcombine.high %v4533_v63, %v4537_v46 }
 0x48e   :  { %7677 = vmatpush1.bf16.msra.mxu0 %v9069_v4  ;;  %v4544_v4 = vld [vmem:[#allocation6 + $0xcf0] sm:$0xff] }
 0x48f   :  { %7841 = vmatpush1.bf16.msra.mxu1 %v9071_v9  ;;  %7678 = vmatprep.subr.bf16.mxu0 %v9078_v49  ;;  %v4541_v9 = vld [vmem:[#allocation6 + $0xcd8] sm:$0xff]  ;;  %v9134_v18 = vcombine.high %v4540_v28, %v4544_v4 }
 0x490   :  { %7842 = vmatprep.subr.bf16.mxu1 %v9080_v10  ;;  %v4545_v49 = vld [vmem:[#allocation6 + $0xcf8] sm:$0xff]  ;;  %v9125_v10 = vcombine.low %v4532_v20, %v4536_v25 }
 0x491   :  { %v9136_v59 = vcombine.high %v4541_v9, %v4545_v49 }
 0x492   :  { %7679 = vmatpush1.bf16.msra.mxu0 %v9077_v2  ;;  %v4549_v2 = vld [vmem:[#allocation6 + $0xd18] sm:$0xff] }
 0x493   :  { %7843 = vmatpush1.bf16.msra.mxu1 %v9079_v56  ;;  %7680 = vmatprep.subr.bf16.mxu0 %v9086_v44  ;;  %v4553_v56 = vld [vmem:[#allocation6 + $0xd38] sm:$0xff]  ;;  %v9135_v44 = vcombine.low %v4541_v9, %v4545_v49  ;;  %v4580_v49 = vld [vmem:[#allocation6 + $0xe10] sm:$0xff] }
 0x494   :  { %7844 = vmatprep.subr.bf16.mxu1 %v9088_v1  ;;  %v9142_v1 = vcombine.high %v4548_v47, %v4552_v0  ;;  %v9144_v11 = vcombine.high %v4549_v2, %v4553_v56 }
 0x496   :  { %7681 = vmatpush1.bf16.msra.mxu0 %v9085_v48  ;;  %v4561_v48 = vld [vmem:[#allocation6 + $0xd78] sm:$0xff] }
 0x497   :  { %7845 = vmatpush1.bf16.msra.mxu1 %v9087_v53  ;;  %7682 = vmatprep.subr.bf16.mxu0 %v9094_v41  ;;  %v9141_v53 = vcombine.low %v4548_v47, %v4552_v0  ;;  %v10023_v41 = vld [vmem:[#allocation7] sm:$0xff]  ;;  %v9152_v57 = vcombine.high %v4557_v50, %v4561_v48  ;;  %v9151_v38 = vcombine.low %v4557_v50, %v4561_v48  ;;  %v4585_v47 = vld [vmem:[#allocation6 + $0xe38] sm:$0xff]  ;;  %v4592_v50 = vld [vmem:[#allocation6 + $0xe70] sm:$0xff] }
 0x498   :  { %7846 = vmatprep.subr.bf16.mxu1 %v9096_v52  ;;  %v9143_v52 = vcombine.low %v4549_v2, %v4553_v56  ;;  %v4651_v27 = vrot.slane %v10023_v41, %v9751_v51  ;;  %v4659_v15 = vrot.slane %v10023_v41, %v9757_v60 }
 0x49a   :  { %7683 = vmatpush1.bf16.msra.mxu0 %v9093_v34  ;;  %v4647_v34 = vrot.slane %v10023_v41, %v9746_v43 }
 0x49b   :  { %7847 = vmatpush1.bf16.msra.mxu1 %v9095_v33  ;;  %7684 = vmatprep.subr.bf16.mxu0 %v9102_v40  ;;  %v4565_v33 = vld [vmem:[#allocation6 + $0xd98] sm:$0xff] }
 0x49c   :  { %7848 = vmatprep.subr.bf16.mxu1 %v9104_v55  ;;  %v4569_v40 = vld [vmem:[#allocation6 + $0xdb8] sm:$0xff]  ;;  %v4655_v55 = vrot.slane %v10023_v41, %v9754_v58 }
 0x49d   :  { %v4573_v58 = vld [vmem:[#allocation6 + $0xdd8] sm:$0xff] }
 0x49e   :  { %7685 = vmatpush1.bf16.msra.mxu0 %v9101_v14  ;;  %v9158_v14 = vcombine.high %v4564_v32, %v4568_v8  ;;  %v9168_v9 = vcombine.high %v4573_v58, %v4577_v12 }
 0x49f   :  { %7849 = vmatpush1.bf16.msra.mxu1 %v9103_v54  ;;  %7695 = vmatprep.subr.bf16.mxu0 %v9110_v17  ;;  %v9160_v17 = vcombine.high %v4565_v33, %v4569_v40 }
 0x4a0   :  { %7859 = vmatprep.subr.bf16.mxu1 %v9112_v42  ;;  %v4572_v42 = vld [vmem:[#allocation6 + $0xdd0] sm:$0xff] }
 0x4a1   :  { %7687 = vmatmul.mubr.bf16.vlgmr.msra.gmra.mrb[36].mxu0 %v9982_v36  ;;  %v9165_v56 = vcombine.low %v4572_v42, %v4576_v19 }
 0x4a2   :  { %7851 = vmatmul.mubr.bf16.vlgmr.msra.gmra.mrb[36].mxu1 %v9982_v36  ;;  %7696 = vmatpush1.bf16.msra.mxu0 %v9109_v24  ;;  %v9127_v36 = vcombine.low %v4533_v63, %v4537_v46 }
 0x4a3   :  { %7727 = vmatprep.mubr.bf16.mxu0 %v9997_v22  ;;  %7860 = vmatpush1.bf16.msra.mxu1 %v9111_v13 }
 0x4a4   :  { %7891 = vmatprep.mubr.bf16.mxu1 %v9997_v22  ;;  %7697 = vmatprep.subr.bf16.mxu0 %v9118_v31  ;;  %v9133_v22 = vcombine.low %v4540_v28, %v4544_v4 }
 0x4a5   :  { %7861 = vmatprep.subr.bf16.mxu1 %v9120_v62  ;;  %v9157_v62 = vcombine.low %v4564_v32, %v4568_v8  ;;  %v9182_v32 = vcombine.high %v4588_v30, %v4592_v50 }
 0x4a6   :  { %7698 = vmatpush1.bf16.msra.mxu0 %v9117_v61 }
 0x4a7   :  { %7862 = vmatpush1.bf16.msra.mxu1 %v9119_v6  ;;  %7699 = vmatprep.subr.bf16.mxu0 %v9126_v7  ;;  %v9159_v6 = vcombine.low %v4565_v33, %v4569_v40  ;;  %v9166_v7 = vcombine.high %v4572_v42, %v4576_v19  ;;  %v4600_v33 = vld [vmem:[#allocation6 + $0xeb0] sm:$0xff]  ;;  %v4597_v40 = vld [vmem:[#allocation6 + $0xe98] sm:$0xff] }
 0x4a8   :  { %7863 = vmatprep.subr.bf16.mxu1 %v9128_v26  ;;  %v4609_v42 = vld [vmem:[#allocation6 + $0xef8] sm:$0xff] }
 0x4aa   :  { %7700 = vmatpush1.bf16.msra.mxu0 %v9125_v10  ;;  %v4584_v10 = vld [vmem:[#allocation6 + $0xe30] sm:$0xff] }
 0x4ab   :  { %7864 = vmatpush1.bf16.msra.mxu1 %v9127_v36  ;;  %7701 = vmatprep.subr.bf16.mxu0 %v9134_v18 }
 0x4ac   :  { %7865 = vmatprep.subr.bf16.mxu1 %v9136_v59  ;;  %v4581_v59 = vld [vmem:[#allocation6 + $0xe18] sm:$0xff] }
 0x4ad   :  { %v9176_v16 = vcombine.high %v4581_v59, %v4585_v47 }
 0x4ae   :  { %7702 = vmatpush1.bf16.msra.mxu0 %v9133_v22 }
 0x4af   :  { %7866 = vmatpush1.bf16.msra.mxu1 %v9135_v44  ;;  %7703 = vmatprep.subr.bf16.mxu0 %v9142_v1  ;;  %v9167_v44 = vcombine.low %v4573_v58, %v4577_v12  ;;  %v9174_v1 = vcombine.high %v4580_v49, %v4584_v10  ;;  %v4612_v58 = vld [vmem:[#allocation6 + $0xf10] sm:$0xff] }
 0x4b0   :  { %7867 = vmatprep.subr.bf16.mxu1 %v9144_v11  ;;  %v4616_v12 = vld [vmem:[#allocation6 + $0xf30] sm:$0xff] }
 0x4b2   :  { %7704 = vmatpush1.bf16.msra.mxu0 %v9141_v53  ;;  %v4589_v53 = vld [vmem:[#allocation6 + $0xe58] sm:$0xff] }
 0x4b3   :  { %7868 = vmatpush1.bf16.msra.mxu1 %v9143_v52  ;;  %7705 = vmatprep.subr.bf16.mxu0 %v9150_v21  ;;  %v4593_v52 = vld [vmem:[#allocation6 + $0xe78] sm:$0xff]  ;;  %v9173_v21 = vcombine.low %v4580_v49, %v4584_v10  ;;  %v4632_v49 = vld [vmem:[#allocation6 + $0xfb0] sm:$0xff] }
 0x4b4   :  { %v7401_v54 = vpop.f32.mrb[32].mxu0  ;;  %7869 = vmatprep.subr.bf16.mxu1 %v9152_v57  ;;  %v9175_v57 = vcombine.low %v4581_v59, %v4585_v47  ;;  %v9184_v8 = vcombine.high %v4589_v53, %v4593_v52  ;;  %v4629_v10 = vld [vmem:[#allocation6 + $0xf98] sm:$0xff] }
 0x4b5   :  { %v9279_v37 = vadd.f32 %v7401_v54, %v4647_v34  ;;  %v7565_v24 = vpop.f32.mrb[32].mxu1  ;;  %v7403_v5 = vpop.f32.mrb[33].mxu0  ;;  %v4596_v34 = vld [vmem:[#allocation6 + $0xe90] sm:$0xff] }
 0x4b6   :  { %v9281_v13 = vadd.f32 %v7565_v24, %v4655_v55  ;;  %v9280_v31 = vadd.f32 %v7403_v5, %v4651_v27  ;;  %v7567_v20 = vpop.f32.mrb[33].mxu1  ;;  %v7405_v25 = vpop.f32.mrb[34].mxu0  ;;  %7706 = vmatpush1.bf16.msra.mxu0 %v9149_v29  ;;  %v4601_v55 = vld [vmem:[#allocation6 + $0xeb8] sm:$0xff]  ;;  %v9181_v27 = vcombine.low %v4588_v30, %v4592_v50  ;;  %v9183_v29 = vcombine.low %v4589_v53, %v4593_v52  ;;  %v4608_v54 = vld [vmem:[#allocation6 + $0xef0] sm:$0xff] }
 0x4b7   :  { %v7900_v60 = vmax.f32 %v9279_v37, 0.0  ;;  %v9282_v63 = vadd.f32 %v7567_v20, %v4659_v15  ;;  %v7569_v46 = vpop.f32.mrb[34].mxu1  ;;  %7870 = vmatpush1.bf16.msra.mxu1 %v9151_v38  ;;  %v7406_v61 = vpop.f32.mrb[35].mxu0  ;;  %7707 = vmatprep.subr.bf16.mxu0 %v9158_v14  ;;  %v9190_v15 = vcombine.high %v4596_v34, %v4600_v33  ;;  %v9192_v38 = vcombine.high %v4597_v40, %v4601_v55  ;;  %v4604_v14 = vld [vmem:[#allocation6 + $0xed0] sm:$0xff]  ;;  %v4637_v30 = vld [vmem:[#allocation6 + $0xfd8] sm:$0xff] }
 0x4b8   :  { %v7902_v26 = vmax.f32 %v9281_v13, 0.0  ;;  %v7901_v28 = vmax.f32 %v9280_v31, 0.0  ;;  %v7570_v4 = vpop.f32.mrb[35].mxu1  ;;  %7871 = vmatprep.subr.bf16.mxu1 %v9160_v17  ;;  %v4605_v17 = vld [vmem:[#allocation6 + $0xed8] sm:$0xff]  ;;  %v9189_v19 = vcombine.low %v4596_v34, %v4600_v33  ;;  %v9191_v37 = vcombine.low %v4597_v40, %v4601_v55  ;;  %v4624_v46 = vld [vmem:[#allocation6 + $0xf70] sm:$0xff]  ;;  %v9349_v34 = vld [vmem:[%s10119_s5 + $0x40] sm:$0xff]  }
 0x4b9   :  { %v10033_v36 = vpack.c.bf16 %v7900_v60, %v7900_v60  ;;  %v7903_v18 = vmax.f32 %v9282_v63, 0.0  ;;  %v9198_v24 = vcombine.high %v4604_v14, %v4608_v54  ;;  %v9200_v5 = vcombine.high %v4605_v17, %v4609_v42  ;;  %v4613_v13 = vld [vmem:[#allocation6 + $0xf18] sm:$0xff]  ;;  %v4620_v63 = vld [vmem:[#allocation6 + $0xf50] sm:$0xff]  ;;  %v9350_v33 = vld [vmem:[%s10119_s5] sm:$0xff]  }
 0x4ba   :  { %v10035_v0 = vpack.c.bf16 %v7902_v26, %v7902_v26  ;;  %v10037_v2 = vpack.c.bf16 %v7901_v28, %v7901_v28  ;;  %7708 = vmatpush1.bf16.msra.mxu0 %v9157_v62  ;;  %v4617_v31 = vld [vmem:[#allocation6 + $0xf38] sm:$0xff]  ;;  %v9197_v20 = vcombine.low %v4604_v14, %v4608_v54  ;;  %v9199_v25 = vcombine.low %v4605_v17, %v4609_v42  ;;  %v9351_v40 = vld [vmem:[%s10119_s5 + $0x48] sm:$0xff]   ;;  %v9358_v14 = vld [vmem:[%s10119_s5 + $0x20] sm:$0xff]  }
 0x4bb   :  { %v10039_v22 = vpack.c.bf16 %v7903_v18, %v7903_v18  ;;  %7872 = vmatpush1.bf16.msra.mxu1 %v9159_v6  ;;  %7709 = vmatprep.subr.bf16.mxu0 %v9166_v7  ;;  %v9206_v62 = vcombine.high %v4612_v58, %v4616_v12  ;;  %v9208_v60 = vcombine.high %v4613_v13, %v4617_v31  ;;  %v4621_v61 = vld [vmem:[#allocation6 + $0xf58] sm:$0xff]  ;;  %v9352_v55 = vld [vmem:[%s10119_s5 + $0x8] sm:$0xff]   ;;  %v9361_v42 = vld [vmem:[%s10119_s5 + $0x70] sm:$0xff]  }
 0x4bc   :  { %v7916_v11 = vmax.bf16 %v10035_v0, %v10033_v36  ;;  %7873 = vmatprep.subr.bf16.mxu1 %v9168_v9  ;;  %v4625_v6 = vld [vmem:[#allocation6 + $0xf78] sm:$0xff]  ;;  %v9205_v7 = vcombine.low %v4612_v58, %v4616_v12  ;;  %v9207_v26 = vcombine.low %v4613_v13, %v4617_v31  ;;  %v9214_v28 = vcombine.high %v4620_v63, %v4624_v46  ;;  %v4628_v9 = vld [vmem:[#allocation6 + $0xf90] sm:$0xff]  ;;  %v9359_v54 = vld [vmem:[%s10119_s5 + $0x68] sm:$0xff]  }
 0x4bd   :  { %v7917_v48 = vmax.bf16 %v10039_v22, %v10037_v2  ;;  %v9216_v4 = vcombine.high %v4621_v61, %v4625_v6  ;;  %v4633_v18 = vld [vmem:[#allocation6 + $0xfb8] sm:$0xff]  ;;  %v9213_v59 = vcombine.low %v4620_v63, %v4624_v46  ;;  %v9215_v47 = vcombine.low %v4621_v61, %v4625_v6  ;;  %v9360_v17 = vld [vmem:[%s10119_s5 + $0x28] sm:$0xff]  }
 0x4be   :  { %7710 = vmatpush1.bf16.msra.mxu0 %v9165_v56  ;;  %v9222_v56 = vcombine.high %v4628_v9, %v4632_v49  ;;  %v4641_v50 = vld [vmem:[#allocation6 + $0xff8] sm:$0xff]  ;;  %v9221_v53 = vcombine.low %v4628_v9, %v4632_v49  ;;  %v9223_v52 = vcombine.low %v4629_v10, %v4633_v18  ;;  %v4671_v58 = vrot.slane %v10023_v41, %v9816_v45  ;;  %v9233_v0 = vld [vmem:[#allocation9] ss:$0 sm:$0xff] }
 0x4bf   :  { %7874 = vmatpush1.bf16.msra.mxu1 %v9167_v44  ;;  %7711 = vmatprep.subr.bf16.mxu0 %v9174_v1  ;;  %v9224_v44 = vcombine.high %v4629_v10, %v4633_v18  ;;  %v4636_v1 = vld [vmem:[#allocation6 + $0xfd0] sm:$0xff]  ;;  %v4667_v12 = vrot.slane %v10023_v41, %v9813_v39  ;;  %v4675_v13 = vrot.slane %v10023_v41, %v9819_v3 }
 0x4c0   :  { %7875 = vmatprep.subr.bf16.mxu1 %v9176_v16  ;;  %v4640_v16 = vld [vmem:[#allocation6 + $0xff0] sm:$0xff] }
 0x4c2   :  { %7712 = vmatpush1.bf16.msra.mxu0 %v9173_v21  ;;  %v9230_v21 = vcombine.high %v4636_v1, %v4640_v16 }
 0x4c3   :  { %7876 = vmatpush1.bf16.msra.mxu1 %v9175_v57  ;;  %7713 = vmatprep.subr.bf16.mxu0 %v9182_v32  ;;  %v9232_v57 = vcombine.high %v4637_v30, %v4641_v50  ;;  %v9229_v32 = vcombine.low %v4636_v1, %v4640_v16  ;;  %v8106_v1 = vld [vmem:[#allocation10 + $0x10] sm:$0x33] }
 0x4c4   :  { %7877 = vmatprep.subr.bf16.mxu1 %v9184_v8  ;;  %v9231_v8 = vcombine.low %v4637_v30, %v4641_v50  ;;  %v9253_v16 = vcombine.high %v8106_v1, %v8106_v1  ;;  %v9252_v30 = vcombine.low %v8106_v1, %v8106_v1 }
 0x4c6   :  { %7714 = vmatpush1.bf16.msra.mxu0 %v9181_v27  ;;  %v9353_v27 = vld [vmem:[%s10119_s5 + $0x50] sm:$0xff]   ;;  %v8140_v50 = vsel %vm8138_vm0, %v9252_v30, 0 }
 0x4c7   :  { %7878 = vmatpush1.bf16.msra.mxu1 %v9183_v29  ;;  %7715 = vmatprep.subr.bf16.mxu0 %v9190_v15  ;;  %v9354_v29 = vld [vmem:[%s10119_s5 + $0x10] sm:$0xff]   ;;  %v9356_v15 = vld [vmem:[%s10119_s5 + $0x18] sm:$0xff]  }
 0x4c8   :  { %7879 = vmatprep.subr.bf16.mxu1 %v9192_v38  ;;  %v9357_v38 = vld [vmem:[%s10119_s5 + $0x60] sm:$0xff]  }
 0x4ca   :  { %7716 = vmatpush1.bf16.msra.mxu0 %v9189_v19  ;;  %v9362_v19 = vld [vmem:[%s10119_s5 + $0x30] sm:$0xff]  }
 0x4cb   :  { %7880 = vmatpush1.bf16.msra.mxu1 %v9191_v37  ;;  %7717 = vmatprep.subr.bf16.mxu0 %v9198_v24  ;;  %v9363_v37 = vld [vmem:[%s10119_s5 + $0x78] sm:$0xff]  }
 0x4cc   :  { %7881 = vmatprep.subr.bf16.mxu1 %v9200_v5  ;;  %v9364_v24 = vld [vmem:[%s10119_s5 + $0x38] sm:$0xff]   ;;  %v4663_v5 = vrot.slane %v10023_v41, %v9810_v35 }
 0x4ce   :  { %7718 = vmatpush1.bf16.msra.mxu0 %v9197_v20 }
 0x4cf   :  { %7882 = vmatpush1.bf16.msra.mxu1 %v9199_v25  ;;  %7719 = vmatprep.subr.bf16.mxu0 %v9206_v62 }
 0x4d0   :  { %7883 = vmatprep.subr.bf16.mxu1 %v9208_v60 }
 0x4d2   :  { %7720 = vmatpush1.bf16.msra.mxu0 %v9205_v7 }
 0x4d3   :  { %7884 = vmatpush1.bf16.msra.mxu1 %v9207_v26  ;;  %7721 = vmatprep.subr.bf16.mxu0 %v9214_v28 }
 0x4d4   :  { %7885 = vmatprep.subr.bf16.mxu1 %v9216_v4 }
 0x4d6   :  { %7722 = vmatpush1.bf16.msra.mxu0 %v9213_v59 }
 0x4d7   :  { %7886 = vmatpush1.bf16.msra.mxu1 %v9215_v47  ;;  %7723 = vmatprep.subr.bf16.mxu0 %v9222_v56  ;;  %v9367_v56 = vld [vmem:[#allocation10 + $0x4] ss:$8 sps:$4 sm:$0xff]  }
 0x4d8   :  { %7887 = vmatprep.subr.bf16.mxu1 %v9224_v44  ;;  %v9365_v44 = vld [vmem:[#allocation10] ss:$8 sps:$4 sm:$0xff]  }
 0x4da   :  { %7724 = vmatpush1.bf16.msra.mxu0 %v9221_v53  ;;  %v9549_v53 = vmov 0  }
 0x4db   :  { %7888 = vmatpush1.bf16.msra.mxu1 %v9223_v52  ;;  %7725 = vmatprep.subr.bf16.mxu0 %v9230_v21 }
 0x4dc   :  { %7889 = vmatprep.subr.bf16.mxu1 %v9232_v57 }
 0x4de   :  { %7726 = vmatpush1.bf16.msra.mxu0 %v9229_v32 }
 0x4df   :  { %7890 = vmatpush1.bf16.msra.mxu1 %v9231_v8  ;;  %9257 = vmatprep.subr.bf16.mxu0 %v9349_v34 }
 0x4e0   :  { %8145 = vmatprep.subr.bf16.mxu1 %v9367_v56 }
 0x4e1   :  { %7728 = vmatmul.mubr.bf16.vlgmr.msra.gmra.mrb[36].mxu0 %v9987_v23 }
 0x4e2   :  { %7892 = vmatmul.mubr.bf16.vlgmr.msra.gmra.mrb[36].mxu1 %v9987_v23  ;;  %9258 = vmatpush3.bf16.msra.mxu0 %v9350_v33  ;;  %v9355_v23 = vld [vmem:[%s10119_s5 + $0x58] sm:$0xff]  }
 0x4e3   :  { %9259 = vmatprep.subr.bf16.mxu0 %v9351_v40  ;;  %8146 = vmatpush1.bf16.msra.mxu1 %v9365_v44  ;;  %v8107_v40 = vld [vmem:[#allocation12] sm:$0x3] }
 0x4e4   :  { %9254 = vmatprep.subr.msk.bf16.mxu1 %vm8138_vm0, %v9253_v16  ;;  %8177 = vmatprep.mubr.bf16.mxu1 %v9549_v53 }
 0x4e6   :  { %9260 = vmatpush3.bf16.msra.mxu0 %v9352_v55  ;;  %v8112_v55 = vrot.slane %v8107_v40, %v9746_v43 }
 0x4e7   :  { %9261 = vmatprep.subr.bf16.mxu0 %v9353_v27  ;;  %8148 = vmatpush1.bf16.msra.mxu1 %v8140_v50  ;;  %v8116_v27 = vrot.slane %v8107_v40, %v9751_v51 }
 0x4ea   :  { %9262 = vmatpush3.bf16.msra.mxu0 %v9354_v29 }
 0x4eb   :  { %9263 = vmatprep.subr.bf16.mxu0 %v9355_v23 }
 0x4ee   :  { %9264 = vmatpush3.bf16.msra.mxu0 %v9356_v15 }
 0x4ef   :  { %9265 = vmatprep.subr.bf16.mxu0 %v9357_v38 }
 0x4f2   :  { %9266 = vmatpush3.bf16.msra.mxu0 %v9358_v14 }
 0x4f3   :  { %9267 = vmatprep.subr.bf16.mxu0 %v9359_v54 }
 0x4f6   :  { %9268 = vmatpush3.bf16.msra.mxu0 %v9360_v17 }
 0x4f7   :  { %9269 = vmatprep.subr.bf16.mxu0 %v9361_v42 }
 0x4fa   :  { %9270 = vmatpush3.bf16.msra.mxu0 %v9362_v19 }
 0x4fb   :  { %9271 = vmatprep.subr.bf16.mxu0 %v9363_v37 }
 0x4fe   :  { %9272 = vmatpush3.bf16.msra.mxu0 %v9364_v24 }
 0x5b4   :  { %v7729_v31 = vpop.f32.mrb[36].mxu0 }
 0x5b5   :  { %v9283_v20 = vadd.f32 %v7729_v31, %v4663_v5  ;;  %v7893_v25 = vpop.f32.mrb[36].mxu1  ;;  %v7731_v62 = vpop.f32.mrb[37].mxu0 }
 0x5b6   :  { %v9285_v60 = vadd.f32 %v7893_v25, %v4671_v58  ;;  %v9284_v63 = vadd.f32 %v7731_v62, %v4667_v12  ;;  %v7895_v46 = vpop.f32.mrb[37].mxu1  ;;  %v7733_v61 = vpop.f32.mrb[38].mxu0 }
 0x5b7   :  { %v7904_v6 = vmax.f32 %v9283_v20, 0.0  ;;  %v9286_v7 = vadd.f32 %v7895_v46, %v4675_v13  ;;  %v7897_v35 = vpop.f32.mrb[38].mxu1  ;;  %v7734_v26 = vpop.f32.mrb[39].mxu0 }
 0x5b8   :  { %v7906_v28 = vmax.f32 %v9285_v60, 0.0  ;;  %v7905_v45 = vmax.f32 %v9284_v63, 0.0  ;;  %v7898_v4 = vpop.f32.mrb[39].mxu1 }
 0x5b9   :  { %v7912_v9 = vpack.c.bf16 %v7904_v6, %v7904_v6  ;;  %v7907_v39 = vmax.f32 %v9286_v7, 0.0 }
 0x5ba   :  { %v7914_v49 = vpack.c.bf16 %v7906_v28, %v7906_v28  ;;  %v7913_v10 = vpack.c.bf16 %v7905_v45, %v7905_v45 }
 0x5bb   :  { %v7915_v3 = vpack.c.bf16 %v7907_v39, %v7907_v39 }
 0x5bc   :  { %v7918_v41 = vmax.bf16 %v7914_v49, %v7912_v9 }
 0x5bd   :  { %v7919_v18 = vmax.bf16 %v7915_v3, %v7913_v10 }
 0x5be   :  { %v7920_v59 = vmax.bf16 %v7918_v41, %v7916_v11 }
 0x5bf   :  { %v7921_v47 = vmax.bf16 %v7919_v18, %v7917_v48 }
 0x5c1   :  { %8089 = vmatprep.mubr.bf16.mxu0 %v7921_v47 }
 0x5c2   :  { %8090 = vmatmul.mubr.bf16.vlgmr.msra.gmra.mrb[40].mxu0 %v7920_v59 }
 0x695   :  { %v9273_v36 = vpop.f32.mrb[40].mxu0 }
 0x696   :  { %v9274_v11 = vpop.f32.mrb[41].mxu0 }
 0x697   :  { %v9275_v2 = vadd.f32 %v9274_v11, %v9273_v36  ;;  %v9276_v22 = vpop.f32.mrb[42].mxu0 }
 0x698   :  { %v9277_v48 = vpop.f32.mrb[43].mxu0 }
 0x699   :  { %v8092_v52 = vadd.f32 %v9275_v2, %v9233_v0 }
 0x69b   :  { %v8097_v21 = vsub.f32 0.0, %v8092_v52 }
 0x69d   :  { %v8098_v57 = vmul.f32 1.442695, %v8097_v21 }
 0x69f   :  { %9370 = vpow2.f32 %v8098_v57 }
 0x6a9   :  { %v9371_v32 = vpop.eup %9370 }
 0x6aa   :  { %v8100_v8 = vadd.f32 1.0, %v9371_v32 }
 0x6ac   :  { %9372 = vrcp.f32 %v8100_v8 }
 0x6b6   :  { %v9373_v34 = vpop.eup %9372 }
 0x6b7   :  { %v8103_v33 = vpack.c.bf16 %v9373_v34, %v9373_v34 }
 0x6b9   :  { %9255 = vmatmul.mubr.msk.bf16.vlgmr.msra.gmra.mrb[40].mxu1 %vm8134_vm1, %v8103_v33 }
 0x78c   :  { %v8179_v29 = vpop.f32.mrb[40].mxu1 }
 0x78d   :  { %v8180_v23 = vadd.f32 %v8179_v29, %v8112_v55  ;;  %v8181_v15 = vpop.f32.mrb[41].mxu1 }
 0x78e   :  { %v8182_v38 = vadd.f32 %v8181_v15, %v8116_v27  ;;  %v8183_v14 = vpop.f32.mrb[42].mxu1 }
 0x78f   :  { %v8186_v54 = vmax.f32 %v8180_v23, 0.0  ;;  %v8184_v17 = vpop.f32.mrb[43].mxu1 }
 0x790   :  { %v8187_v42 = vmax.f32 %v8182_v38, 0.0 }
 0x792   :  { %v8190_v19 = vcombine.low %v8186_v54, %v8187_v42 }
 0x794   :  { %9256 = vst.sshfl [vmem:[%s10123_s9] sm:$0x33 pattern:$0x76325410] %v8190_v19 }
 0x795   :  { %8204 = vsyncpa [#allocation3], 1 }
 0x796   :  { %8205 = vsyncpa [#allocation5], 1 }
 0x797   :  { %8206 = vsyncpa [#allocation8], 1 }
 0x798   :  { %8207 = vsyncpa [#allocation11], 1 }

</bundles_post_ra>
